<compile_context>
chip_gen: v7x
topology: tpu7x:2x2x1
jax: 0.10.0
libtpu: 0.0.40
codegen_flags: <defaults>
</compile_context>

<pallas_src>
import numpy as np
import jax
import jax.numpy as jnp
from jax import lax
from jax.experimental import pallas as pl
from jax.experimental.pallas import tpu as pltpu

MXU_DTYPE = jnp.bfloat16   # operand dtype for every big MXU matmul (f32 accumulation)


# ---------------------------------------------------------------------------
# Fused Pallas kernel (one batch tile per grid step)
# ---------------------------------------------------------------------------
def _net_kernel(x_ref, t1_ref, c1b_ref, t2e_ref, t2o_ref, c2b_ref,
                fc1w_ref, fc1b_ref, fc2w_ref, fc2b_ref, out_ref):
    """Layouts (tb = batch tile, rows inside a tile are py*tb + b):

      x_ref    (6, 12*tb, 28) bf16   X[d][py*tb+b, :] = image[b, 2*py+d, :]
      t1_ref   (3, 28, 208)  bf16    conv1 Toeplitz (per ky), lane = xw*8 + oc
      c1b_ref  (1, 208)      f32     conv1 bias tiled over width
      t2e_ref  (3, 208, 144) bf16    conv2 Toeplitz, even output columns (x = 2*px)
      t2o_ref  (3, 208, 144) bf16    conv2 Toeplitz, odd  output columns (x = 2*px+1)
      c2b_ref  (1, 144)      f32     conv2 bias tiled over width
      fc1w_ref (12, 144, 128) bf16   fc1 weight regrouped per pooled row py
      fc2w_ref (128, 10)     f32     fc2 weight (transposed)
      out_ref  (tb, 10)      f32     log-probs
    """
    tb = out_ref.shape[0]
    c1b = c1b_ref[...]                     # (1, 208)
    c2b = c2b_ref[...]                     # (1, 144)

    # ---- conv1 + ReLU -----------------------------------------------------
    # G[e][py*tb+b, xw*8+oc] = relu(conv1)[b, oc, 2*py+e, xw],  e = 0..3
    # (exactly the four conv1 rows each pooled output row needs).
    g = []
    for e in range(4):
        acc = jnp.dot(x_ref[e], t1_ref[0], preferred_element_type=jnp.float32)
        acc = acc + jnp.dot(x_ref[e + 1], t1_ref[1],
                            preferred_element_type=jnp.float32)
        acc = acc + jnp.dot(x_ref[e + 2], t1_ref[2],
                            preferred_element_type=jnp.float32)
        g.append(jnp.maximum(acc + c1b, 0.0).astype(MXU_DTYPE))   # (12*tb, 208)

    # ---- conv2, split by output row parity (e/o) and column parity (t2e/t2o)
    def conv2(g0, g1, g2, t_ref):
        acc = jnp.dot(g0, t_ref[0], preferred_element_type=jnp.float32)
        acc = acc + jnp.dot(g1, t_ref[1], preferred_element_type=jnp.float32)
        acc = acc + jnp.dot(g2, t_ref[2], preferred_element_type=jnp.float32)
        return acc + c2b                                           # (12*tb, 144)

    a_ee = conv2(g[0], g[1], g[2], t2e_ref)   # conv2[b, oc, 2py,   2px]
    a_eo = conv2(g[0], g[1], g[2], t2o_ref)   # conv2[b, oc, 2py,   2px+1]
    a_oe = conv2(g[1], g[2], g[3], t2e_ref)   # conv2[b, oc, 2py+1, 2px]
    a_oo = conv2(g[1], g[2], g[3], t2o_ref)   # conv2[b, oc, 2py+1, 2px+1]

    # ---- max_pool2d(2): pure element-wise max of the four parity slabs ----
    pooled = jnp.maximum(jnp.maximum(a_ee, a_eo), jnp.maximum(a_oe, a_oo))
    pooled = pooled.astype(MXU_DTYPE)         # (12*tb, 144), lane = px*12 + oc

    # dropout1 / dropout2: identity in eval mode.
    # ---- fc1 + ReLU: 12 accumulated matmuls over contiguous (tb,144) blocks --
    h = jnp.dot(pooled[0:tb, :], fc1w_ref[0], preferred_element_type=jnp.float32)
    for py in range(1, 12):
        h = h + jnp.dot(pooled[py * tb:(py + 1) * tb, :], fc1w_ref[py],
                        preferred_element_type=jnp.float32)
    h = jnp.maximum(h + fc1b_ref[...], 0.0)                        # (tb, 128)

    # ---- fc2 + log_softmax ------------------------------------------------
    logits = jnp.dot(h, fc2w_ref[...],
                     preferred_element_type=jnp.float32) + fc2b_ref[...]
    m = jnp.max(logits, axis=-1, keepdims=True)
    z = logits - m
    lse = jnp.log(jnp.sum(jnp.exp(z), axis=-1, keepdims=True))
    out_ref[...] = (z - lse).astype(out_ref.dtype)


# ---------------------------------------------------------------------------
# One-time weight preprocessing (outside the jitted forward)
# ---------------------------------------------------------------------------
def _toeplitz(w, w_in, c_in, out_xs, c_out):
    """Per-ky Toeplitz matrices for a 3x3 valid conv on a (rows, lanes=W*C_in)
    activation slab, restricted to the output positions `out_xs`.

      T[ky][wi*c_in + ic, j*c_out + oc] = w[oc, ic, ky, wi - out_xs[j]]
                                          if 0 <= wi - out_xs[j] <= 2 else 0
    Returns (3, w_in*c_in, len(out_xs)*c_out) in MXU_DTYPE."""
    w = np.asarray(w, np.float32)
    out_xs = np.asarray(out_xs)
    rows = np.arange(w_in * c_in)
    wi, ic = rows // c_in, rows % c_in
    cols = np.arange(len(out_xs) * c_out)
    x, oc = out_xs[cols // c_out], cols % c_out
    kx = wi[:, None] - x[None, :]
    valid = (kx >= 0) & (kx <= 2)
    kxc = np.clip(kx, 0, 2)
    oc_b = np.broadcast_to(oc[None, :], kx.shape)
    ic_b = np.broadcast_to(ic[:, None], kx.shape)
    mats = [np.where(valid, w[oc_b, ic_b, ky, kxc], 0.0) for ky in range(3)]
    return jnp.asarray(np.stack(mats, 0), dtype=MXU_DTYPE)


def prepare_params(params):
    """Pre-reshape / permute / cast all weights once (not per forward)."""
    w1, b1 = params["w1"], params["b1"]                 # (8,1,3,3), (8,)
    w2, b2 = params["w2"], params["b2"]                 # (12,8,3,3), (12,)
    fc1_w, fc1_b = params["fc1_w"], params["fc1_b"]     # (128,1728), (128,)
    fc2_w, fc2_b = params["fc2_w"], params["fc2_b"]     # (10,128), (10,)

    t1 = _toeplitz(w1, 28, 1, np.arange(26), 8)             # (3, 28, 208)
    t2e = _toeplitz(w2, 26, 8, np.arange(0, 24, 2), 12)     # (3, 208, 144)
    t2o = _toeplitz(w2, 26, 8, np.arange(1, 24, 2), 12)     # (3, 208, 144)
    c1b = jnp.tile(b1, 26).reshape(1, 208).astype(jnp.float32)
    c2b = jnp.tile(b2, 12).reshape(1, 144).astype(jnp.float32)

    # torch flatten (NCHW) index = oc*144 + py*12 + px.  Kernel contracts per
    # pooled row py against lanes px*12 + oc  ->  fc1w[py, px*12+oc, n].
    fc1w = (fc1_w.reshape(128, 12, 12, 12)      # (n, c, py, px)
                 .transpose(2, 3, 1, 0)         # (py, px, c, n)
                 .reshape(12, 144, 128)
                 .astype(MXU_DTYPE))
    return {
        "t1": t1, "c1b": c1b, "t2e": t2e, "t2o": t2o, "c2b": c2b,
        "fc1_w": fc1w,
        "fc1_b": fc1_b.reshape(1, 128).astype(jnp.float32),
        "fc2_w": fc2_w.T.astype(jnp.float32),               # (128, 10)
        "fc2_b": fc2_b.reshape(1, 10).astype(jnp.float32),
    }


# ---------------------------------------------------------------------------
# Forward wrapper (single pallas_call)
# ---------------------------------------------------------------------------
def _pick_batch_tile(B):
    if B >= 256:
        tb = 128
    else:
        tb = min(128, max(8, 8 * ((B + 15) // 16)))   # ~B/2, rounded up to 8
    nt = max(2, pl.cdiv(B, tb))                       # >= 2 grid steps (2 TCs)
    return tb, nt


def net_forward(prep, x):
    """x: (B, 1, 28, 28) float32 NCHW, as in the torch module."""
    B = x.shape[0]
    assert x.shape[1:] == (1, 28, 28), x.shape
    x2 = x.reshape(B, 28, 28)

    tb, nt = _pick_batch_tile(B)
    b_pad = nt * tb
    if b_pad > B:
        x2 = jnp.pad(x2, ((0, b_pad - B), (0, 0), (0, 0)))

    # Wrapper-side layout plumbing: six row-shifted, parity-strided slabs.
    #   X[d][tile*(12*tb) + py*tb + b, :] = image[tile*tb + b, 2*py + d, :]
    slabs = []
    for d in range(6):
        s = x2[:, d:d + 23:2, :]                             # (b_pad, 12, 28)
        s = (s.reshape(nt, tb, 12, 28)
              .transpose(0, 2, 1, 3)
              .reshape(nt * 12 * tb, 28))
        slabs.append(s)
    xsh = jnp.stack(slabs, 0).astype(MXU_DTYPE)              # (6, b_pad*12, 28)

    rows = 12 * tb
    const2 = lambda i: (0, 0)
    const3 = lambda i: (0, 0, 0)
    grid_spec = pltpu.PrefetchScalarGridSpec(
        num_scalar_prefetch=0,
        grid=(nt,),
        in_specs=[
            pl.BlockSpec((6, rows, 28), lambda i: (0, i, 0)),  # shifted inputs
            pl.BlockSpec((3, 28, 208), const3),                # conv1 Toeplitz
            pl.BlockSpec((1, 208), const2),                    # conv1 bias
            pl.BlockSpec((3, 208, 144), const3),               # conv2 Toeplitz (even x)
            pl.BlockSpec((3, 208, 144), const3),               # conv2 Toeplitz (odd x)
            pl.BlockSpec((1, 144), const2),                    # conv2 bias
            pl.BlockSpec((12, 144, 128), const3),              # fc1 weight (per py)
            pl.BlockSpec((1, 128), const2),                    # fc1 bias
            pl.BlockSpec((128, 10), const2),                   # fc2 weight
            pl.BlockSpec((1, 10), const2),                     # fc2 bias
        ],
        out_specs=pl.BlockSpec((tb, 10), lambda i: (i, 0)),
    )
    out = pl.pallas_call(
        _net_kernel,
        out_shape=jax.ShapeDtypeStruct((b_pad, 10), jnp.float32),
        grid_spec=grid_spec,
        compiler_params=pltpu.CompilerParams(
            dimension_semantics=("parallel",),
            vmem_limit_bytes=40 * 1024 * 1024),
    )(xsh, prep["t1"], prep["c1b"], prep["t2e"], prep["t2o"], prep["c2b"],
      prep["fc1_w"], prep["fc1_b"], prep["fc2_w"], prep["fc2_b"])
    return out[:B]


# ---------------------------------------------------------------------------
# Pure-JAX reference (float32) for correctness checking
# ---------------------------------------------------------------------------
def net_reference(params, x):
    dn = ("NCHW", "OIHW", "NCHW")
    y = lax.conv_general_dilated(x, params["w1"], (1, 1), "VALID",
                                 dimension_numbers=dn)
    y = jnp.maximum(y + params["b1"].reshape(1, 8, 1, 1), 0.0)
    y = lax.conv_general_dilated(y, params["w2"], (1, 1), "VALID",
                                 dimension_numbers=dn)
    y = y + params["b2"].reshape(1, 12, 1, 1)
    B = y.shape[0]
    y = y.reshape(B, 12, 12, 2, 12, 2).max(axis=(3, 5))      # max_pool2d(2)
    y = y.reshape(B, 1728)
    y = jnp.maximum(y @ params["fc1_w"].T + params["fc1_b"], 0.0)
    y = y @ params["fc2_w"].T + params["fc2_b"]
    return jax.nn.log_softmax(y, axis=-1)


# ---------------------------------------------------------------------------
# Parameters (same shapes as the torch module)
# ---------------------------------------------------------------------------
def init_params(key):
    ks = jax.random.split(key, 8)
    s = 0.05
    return {
        "w1":    jax.random.normal(ks[0], (8, 1, 3, 3), jnp.float32) * s,
        "b1":    jax.random.normal(ks[1], (8,), jnp.float32) * s,
        "w2":    jax.random.normal(ks[2], (12, 8, 3, 3), jnp.float32) * s,
        "b2":    jax.random.normal(ks[3], (12,), jnp.float32) * s,
        "fc1_w": jax.random.normal(ks[4], (128, 1728), jnp.float32) * s,
        "fc1_b": jax.random.normal(ks[5], (128,), jnp.float32) * s,
        "fc2_w": jax.random.normal(ks[6], (10, 128), jnp.float32) * s,
        "fc2_b": jax.random.normal(ks[7], (10,), jnp.float32) * s,
    }


if __name__ == "__main__":
    key = jax.random.PRNGKey(0)
    pkey, xkey = jax.random.split(key)
    params = init_params(pkey)
    prep = prepare_params(params)          # one-time weight preprocessing

    # batch=2, 1 channel, 28x28 (fc1's 1728 = 12*12*12 forces 28x28 inputs).
    x = jax.random.normal(xkey, (2, 1, 28, 28), jnp.float32)

    out = jax.jit(net_forward)(prep, x)
    out = jax.block_until_ready(out)

    assert out.shape == (2, 10), out.shape
    assert out.dtype == jnp.float32
    assert bool(jnp.all(jnp.isfinite(out)))
    # log_softmax rows must exponentiate-sum to 1.
    probs = jnp.exp(out).sum(axis=1)
    assert bool(jnp.all(jnp.abs(probs - 1.0) < 1e-3)), probs
    # Match the float32 reference (bf16 MXU operands => loose-ish tolerance).
    ref = net_reference(params, x)
    max_err = float(jnp.max(jnp.abs(out - ref)))
    assert max_err < 2e-2, max_err
    print("KERNEL_OK")
</pallas_src>

<mosaic_0001>
module attributes {stable_mosaic.version = 11 : i64} {
  func.func @_net_kernel(%arg0: i32, %arg1: memref<6x96x28xbf16, #tpu.memory_space<vmem>>, %arg2: memref<3x28x208xbf16, #tpu.memory_space<vmem>>, %arg3: memref<1x208xf32, #tpu.memory_space<vmem>>, %arg4: memref<3x208x144xbf16, #tpu.memory_space<vmem>>, %arg5: memref<3x208x144xbf16, #tpu.memory_space<vmem>>, %arg6: memref<1x144xf32, #tpu.memory_space<vmem>>, %arg7: memref<12x144x128xbf16, #tpu.memory_space<vmem>>, %arg8: memref<1x128xf32, #tpu.memory_space<vmem>>, %arg9: memref<128x10xf32, #tpu.memory_space<vmem>>, %arg10: memref<1x10xf32, #tpu.memory_space<vmem>>, %arg11: memref<8x10xf32, #tpu.memory_space<vmem>>) attributes {dimension_semantics = [#tpu.dimension_semantics<parallel>], iteration_bounds = array<i64: 2>, scalar_prefetch = 0 : i64, scratch_operands = 0 : i64, tpu.core_type = #tpu.core_type<tc>, window_params = [{transform_indices = @transform_0, window_bounds = array<i64: 6, 96, 28>}, {pipeline_mode = #tpu.pipeline_mode<synchronous>, transform_indices = @transform_1, window_bounds = array<i64: 3, 28, 208>}, {pipeline_mode = #tpu.pipeline_mode<synchronous>, transform_indices = @transform_2, window_bounds = array<i64: 1, 208>}, {pipeline_mode = #tpu.pipeline_mode<synchronous>, transform_indices = @transform_3, window_bounds = array<i64: 3, 208, 144>}, {pipeline_mode = #tpu.pipeline_mode<synchronous>, transform_indices = @transform_4, window_bounds = array<i64: 3, 208, 144>}, {pipeline_mode = #tpu.pipeline_mode<synchronous>, transform_indices = @transform_5, window_bounds = array<i64: 1, 144>}, {pipeline_mode = #tpu.pipeline_mode<synchronous>, transform_indices = @transform_6, window_bounds = array<i64: 12, 144, 128>}, {pipeline_mode = #tpu.pipeline_mode<synchronous>, transform_indices = @transform_7, window_bounds = array<i64: 1, 128>}, {pipeline_mode = #tpu.pipeline_mode<synchronous>, transform_indices = @transform_8, window_bounds = array<i64: 128, 10>}, {pipeline_mode = #tpu.pipeline_mode<synchronous>, transform_indices = @transform_9, window_bounds = array<i64: 1, 10>}, {transform_indices = @transform_10, window_bounds = array<i64: 8, 10>}]} {
    %c0 = arith.constant 0 : index
    %c0_0 = arith.constant 0 : index
    %0 = vector.load %arg3[%c0, %c0_0] : memref<1x208xf32, #tpu.memory_space<vmem>>, vector<1x208xf32>
    %c0_1 = arith.constant 0 : index
    %c0_2 = arith.constant 0 : index
    %1 = vector.load %arg6[%c0_1, %c0_2] : memref<1x144xf32, #tpu.memory_space<vmem>>, vector<1x144xf32>
    %c0_3 = arith.constant 0 : index
    %c0_4 = arith.constant 0 : index
    %c0_5 = arith.constant 0 : index
    %2 = vector.load %arg1[%c0_3, %c0_4, %c0_5] : memref<6x96x28xbf16, #tpu.memory_space<vmem>>, vector<1x96x28xbf16>
    %3 = vector.shape_cast %2 : vector<1x96x28xbf16> to vector<96x28xbf16>
    %c0_6 = arith.constant 0 : index
    %c0_7 = arith.constant 0 : index
    %c0_8 = arith.constant 0 : index
    %4 = vector.load %arg2[%c0_6, %c0_7, %c0_8] : memref<3x28x208xbf16, #tpu.memory_space<vmem>>, vector<1x28x208xbf16>
    %5 = vector.shape_cast %4 : vector<1x28x208xbf16> to vector<28x208xbf16>
    %cst = arith.constant dense<0.000000e+00> : vector<96x208xf32>
    %6 = tpu.matmul %3, %5, %cst {dimension_numbers = #tpu.dot_dimension_numbers<[1], [0], [0], [1], [0, 0, 1, 1], [], []>} : vector<96x28xbf16>, vector<28x208xbf16>, vector<96x208xf32> -> vector<96x208xf32>
    %c1 = arith.constant 1 : index
    %c0_9 = arith.constant 0 : index
    %c0_10 = arith.constant 0 : index
    %7 = vector.load %arg1[%c1, %c0_9, %c0_10] : memref<6x96x28xbf16, #tpu.memory_space<vmem>>, vector<1x96x28xbf16>
    %8 = vector.shape_cast %7 : vector<1x96x28xbf16> to vector<96x28xbf16>
    %c1_11 = arith.constant 1 : index
    %c0_12 = arith.constant 0 : index
    %c0_13 = arith.constant 0 : index
    %9 = vector.load %arg2[%c1_11, %c0_12, %c0_13] : memref<3x28x208xbf16, #tpu.memory_space<vmem>>, vector<1x28x208xbf16>
    %10 = vector.shape_cast %9 : vector<1x28x208xbf16> to vector<28x208xbf16>
    %cst_14 = arith.constant dense<0.000000e+00> : vector<96x208xf32>
    %11 = tpu.matmul %8, %10, %cst_14 {dimension_numbers = #tpu.dot_dimension_numbers<[1], [0], [0], [1], [0, 0, 1, 1], [], []>} : vector<96x28xbf16>, vector<28x208xbf16>, vector<96x208xf32> -> vector<96x208xf32>
    %12 = arith.addf %6, %11 : vector<96x208xf32>
    %c2 = arith.constant 2 : index
    %c0_15 = arith.constant 0 : index
    %c0_16 = arith.constant 0 : index
    %13 = vector.load %arg1[%c2, %c0_15, %c0_16] : memref<6x96x28xbf16, #tpu.memory_space<vmem>>, vector<1x96x28xbf16>
    %14 = vector.shape_cast %13 : vector<1x96x28xbf16> to vector<96x28xbf16>
    %c2_17 = arith.constant 2 : index
    %c0_18 = arith.constant 0 : index
    %c0_19 = arith.constant 0 : index
    %15 = vector.load %arg2[%c2_17, %c0_18, %c0_19] : memref<3x28x208xbf16, #tpu.memory_space<vmem>>, vector<1x28x208xbf16>
    %16 = vector.shape_cast %15 : vector<1x28x208xbf16> to vector<28x208xbf16>
    %cst_20 = arith.constant dense<0.000000e+00> : vector<96x208xf32>
    %17 = tpu.matmul %14, %16, %cst_20 {dimension_numbers = #tpu.dot_dimension_numbers<[1], [0], [0], [1], [0, 0, 1, 1], [], []>} : vector<96x28xbf16>, vector<28x208xbf16>, vector<96x208xf32> -> vector<96x208xf32>
    %18 = arith.addf %12, %17 : vector<96x208xf32>
    %19 = vector.broadcast %0 : vector<1x208xf32> to vector<96x208xf32>
    %20 = arith.addf %18, %19 : vector<96x208xf32>
    %cst_21 = arith.constant 0.000000e+00 : f32
    %21 = vector.broadcast %cst_21 : f32 to vector<96x208xf32>
    %22 = arith.maximumf %20, %21 : vector<96x208xf32>
    %23 = arith.truncf %22 : vector<96x208xf32> to vector<96x208xbf16>
    %c1_22 = arith.constant 1 : index
    %c0_23 = arith.constant 0 : index
    %c0_24 = arith.constant 0 : index
    %24 = vector.load %arg1[%c1_22, %c0_23, %c0_24] : memref<6x96x28xbf16, #tpu.memory_space<vmem>>, vector<1x96x28xbf16>
    %25 = vector.shape_cast %24 : vector<1x96x28xbf16> to vector<96x28xbf16>
    %c0_25 = arith.constant 0 : index
    %c0_26 = arith.constant 0 : index
    %c0_27 = arith.constant 0 : index
    %26 = vector.load %arg2[%c0_25, %c0_26, %c0_27] : memref<3x28x208xbf16, #tpu.memory_space<vmem>>, vector<1x28x208xbf16>
    %27 = vector.shape_cast %26 : vector<1x28x208xbf16> to vector<28x208xbf16>
    %cst_28 = arith.constant dense<0.000000e+00> : vector<96x208xf32>
    %28 = tpu.matmul %25, %27, %cst_28 {dimension_numbers = #tpu.dot_dimension_numbers<[1], [0], [0], [1], [0, 0, 1, 1], [], []>} : vector<96x28xbf16>, vector<28x208xbf16>, vector<96x208xf32> -> vector<96x208xf32>
    %c2_29 = arith.constant 2 : index
    %c0_30 = arith.constant 0 : index
    %c0_31 = arith.constant 0 : index
    %29 = vector.load %arg1[%c2_29, %c0_30, %c0_31] : memref<6x96x28xbf16, #tpu.memory_space<vmem>>, vector<1x96x28xbf16>
    %30 = vector.shape_cast %29 : vector<1x96x28xbf16> to vector<96x28xbf16>
    %c1_32 = arith.constant 1 : index
    %c0_33 = arith.constant 0 : index
    %c0_34 = arith.constant 0 : index
    %31 = vector.load %arg2[%c1_32, %c0_33, %c0_34] : memref<3x28x208xbf16, #tpu.memory_space<vmem>>, vector<1x28x208xbf16>
    %32 = vector.shape_cast %31 : vector<1x28x208xbf16> to vector<28x208xbf16>
    %cst_35 = arith.constant dense<0.000000e+00> : vector<96x208xf32>
    %33 = tpu.matmul %30, %32, %cst_35 {dimension_numbers = #tpu.dot_dimension_numbers<[1], [0], [0], [1], [0, 0, 1, 1], [], []>} : vector<96x28xbf16>, vector<28x208xbf16>, vector<96x208xf32> -> vector<96x208xf32>
    %34 = arith.addf %28, %33 : vector<96x208xf32>
    %c3 = arith.constant 3 : index
    %c0_36 = arith.constant 0 : index
    %c0_37 = arith.constant 0 : index
    %35 = vector.load %arg1[%c3, %c0_36, %c0_37] : memref<6x96x28xbf16, #tpu.memory_space<vmem>>, vector<1x96x28xbf16>
    %36 = vector.shape_cast %35 : vector<1x96x28xbf16> to vector<96x28xbf16>
    %c2_38 = arith.constant 2 : index
    %c0_39 = arith.constant 0 : index
    %c0_40 = arith.constant 0 : index
    %37 = vector.load %arg2[%c2_38, %c0_39, %c0_40] : memref<3x28x208xbf16, #tpu.memory_space<vmem>>, vector<1x28x208xbf16>
    %38 = vector.shape_cast %37 : vector<1x28x208xbf16> to vector<28x208xbf16>
    %cst_41 = arith.constant dense<0.000000e+00> : vector<96x208xf32>
    %39 = tpu.matmul %36, %38, %cst_41 {dimension_numbers = #tpu.dot_dimension_numbers<[1], [0], [0], [1], [0, 0, 1, 1], [], []>} : vector<96x28xbf16>, vector<28x208xbf16>, vector<96x208xf32> -> vector<96x208xf32>
    %40 = arith.addf %34, %39 : vector<96x208xf32>
    %41 = vector.broadcast %0 : vector<1x208xf32> to vector<96x208xf32>
    %42 = arith.addf %40, %41 : vector<96x208xf32>
    %cst_42 = arith.constant 0.000000e+00 : f32
    %43 = vector.broadcast %cst_42 : f32 to vector<96x208xf32>
    %44 = arith.maximumf %42, %43 : vector<96x208xf32>
    %45 = arith.truncf %44 : vector<96x208xf32> to vector<96x208xbf16>
    %c2_43 = arith.constant 2 : index
    %c0_44 = arith.constant 0 : index
    %c0_45 = arith.constant 0 : index
    %46 = vector.load %arg1[%c2_43, %c0_44, %c0_45] : memref<6x96x28xbf16, #tpu.memory_space<vmem>>, vector<1x96x28xbf16>
    %47 = vector.shape_cast %46 : vector<1x96x28xbf16> to vector<96x28xbf16>
    %c0_46 = arith.constant 0 : index
    %c0_47 = arith.constant 0 : index
    %c0_48 = arith.constant 0 : index
    %48 = vector.load %arg2[%c0_46, %c0_47, %c0_48] : memref<3x28x208xbf16, #tpu.memory_space<vmem>>, vector<1x28x208xbf16>
    %49 = vector.shape_cast %48 : vector<1x28x208xbf16> to vector<28x208xbf16>
    %cst_49 = arith.constant dense<0.000000e+00> : vector<96x208xf32>
    %50 = tpu.matmul %47, %49, %cst_49 {dimension_numbers = #tpu.dot_dimension_numbers<[1], [0], [0], [1], [0, 0, 1, 1], [], []>} : vector<96x28xbf16>, vector<28x208xbf16>, vector<96x208xf32> -> vector<96x208xf32>
    %c3_50 = arith.constant 3 : index
    %c0_51 = arith.constant 0 : index
    %c0_52 = arith.constant 0 : index
    %51 = vector.load %arg1[%c3_50, %c0_51, %c0_52] : memref<6x96x28xbf16, #tpu.memory_space<vmem>>, vector<1x96x28xbf16>
    %52 = vector.shape_cast %51 : vector<1x96x28xbf16> to vector<96x28xbf16>
    %c1_53 = arith.constant 1 : index
    %c0_54 = arith.constant 0 : index
    %c0_55 = arith.constant 0 : index
    %53 = vector.load %arg2[%c1_53, %c0_54, %c0_55] : memref<3x28x208xbf16, #tpu.memory_space<vmem>>, vector<1x28x208xbf16>
    %54 = vector.shape_cast %53 : vector<1x28x208xbf16> to vector<28x208xbf16>
    %cst_56 = arith.constant dense<0.000000e+00> : vector<96x208xf32>
    %55 = tpu.matmul %52, %54, %cst_56 {dimension_numbers = #tpu.dot_dimension_numbers<[1], [0], [0], [1], [0, 0, 1, 1], [], []>} : vector<96x28xbf16>, vector<28x208xbf16>, vector<96x208xf32> -> vector<96x208xf32>
    %56 = arith.addf %50, %55 : vector<96x208xf32>
    %c4 = arith.constant 4 : index
    %c0_57 = arith.constant 0 : index
    %c0_58 = arith.constant 0 : index
    %57 = vector.load %arg1[%c4, %c0_57, %c0_58] : memref<6x96x28xbf16, #tpu.memory_space<vmem>>, vector<1x96x28xbf16>
    %58 = vector.shape_cast %57 : vector<1x96x28xbf16> to vector<96x28xbf16>
    %c2_59 = arith.constant 2 : index
    %c0_60 = arith.constant 0 : index
    %c0_61 = arith.constant 0 : index
    %59 = vector.load %arg2[%c2_59, %c0_60, %c0_61] : memref<3x28x208xbf16, #tpu.memory_space<vmem>>, vector<1x28x208xbf16>
    %60 = vector.shape_cast %59 : vector<1x28x208xbf16> to vector<28x208xbf16>
    %cst_62 = arith.constant dense<0.000000e+00> : vector<96x208xf32>
    %61 = tpu.matmul %58, %60, %cst_62 {dimension_numbers = #tpu.dot_dimension_numbers<[1], [0], [0], [1], [0, 0, 1, 1], [], []>} : vector<96x28xbf16>, vector<28x208xbf16>, vector<96x208xf32> -> vector<96x208xf32>
    %62 = arith.addf %56, %61 : vector<96x208xf32>
    %63 = vector.broadcast %0 : vector<1x208xf32> to vector<96x208xf32>
    %64 = arith.addf %62, %63 : vector<96x208xf32>
    %cst_63 = arith.constant 0.000000e+00 : f32
    %65 = vector.broadcast %cst_63 : f32 to vector<96x208xf32>
    %66 = arith.maximumf %64, %65 : vector<96x208xf32>
    %67 = arith.truncf %66 : vector<96x208xf32> to vector<96x208xbf16>
    %c3_64 = arith.constant 3 : index
    %c0_65 = arith.constant 0 : index
    %c0_66 = arith.constant 0 : index
    %68 = vector.load %arg1[%c3_64, %c0_65, %c0_66] : memref<6x96x28xbf16, #tpu.memory_space<vmem>>, vector<1x96x28xbf16>
    %69 = vector.shape_cast %68 : vector<1x96x28xbf16> to vector<96x28xbf16>
    %c0_67 = arith.constant 0 : index
    %c0_68 = arith.constant 0 : index
    %c0_69 = arith.constant 0 : index
    %70 = vector.load %arg2[%c0_67, %c0_68, %c0_69] : memref<3x28x208xbf16, #tpu.memory_space<vmem>>, vector<1x28x208xbf16>
    %71 = vector.shape_cast %70 : vector<1x28x208xbf16> to vector<28x208xbf16>
    %cst_70 = arith.constant dense<0.000000e+00> : vector<96x208xf32>
    %72 = tpu.matmul %69, %71, %cst_70 {dimension_numbers = #tpu.dot_dimension_numbers<[1], [0], [0], [1], [0, 0, 1, 1], [], []>} : vector<96x28xbf16>, vector<28x208xbf16>, vector<96x208xf32> -> vector<96x208xf32>
    %c4_71 = arith.constant 4 : index
    %c0_72 = arith.constant 0 : index
    %c0_73 = arith.constant 0 : index
    %73 = vector.load %arg1[%c4_71, %c0_72, %c0_73] : memref<6x96x28xbf16, #tpu.memory_space<vmem>>, vector<1x96x28xbf16>
    %74 = vector.shape_cast %73 : vector<1x96x28xbf16> to vector<96x28xbf16>
    %c1_74 = arith.constant 1 : index
    %c0_75 = arith.constant 0 : index
    %c0_76 = arith.constant 0 : index
    %75 = vector.load %arg2[%c1_74, %c0_75, %c0_76] : memref<3x28x208xbf16, #tpu.memory_space<vmem>>, vector<1x28x208xbf16>
    %76 = vector.shape_cast %75 : vector<1x28x208xbf16> to vector<28x208xbf16>
    %cst_77 = arith.constant dense<0.000000e+00> : vector<96x208xf32>
    %77 = tpu.matmul %74, %76, %cst_77 {dimension_numbers = #tpu.dot_dimension_numbers<[1], [0], [0], [1], [0, 0, 1, 1], [], []>} : vector<96x28xbf16>, vector<28x208xbf16>, vector<96x208xf32> -> vector<96x208xf32>
    %78 = arith.addf %72, %77 : vector<96x208xf32>
    %c5 = arith.constant 5 : index
    %c0_78 = arith.constant 0 : index
    %c0_79 = arith.constant 0 : index
    %79 = vector.load %arg1[%c5, %c0_78, %c0_79] : memref<6x96x28xbf16, #tpu.memory_space<vmem>>, vector<1x96x28xbf16>
    %80 = vector.shape_cast %79 : vector<1x96x28xbf16> to vector<96x28xbf16>
    %c2_80 = arith.constant 2 : index
    %c0_81 = arith.constant 0 : index
    %c0_82 = arith.constant 0 : index
    %81 = vector.load %arg2[%c2_80, %c0_81, %c0_82] : memref<3x28x208xbf16, #tpu.memory_space<vmem>>, vector<1x28x208xbf16>
    %82 = vector.shape_cast %81 : vector<1x28x208xbf16> to vector<28x208xbf16>
    %cst_83 = arith.constant dense<0.000000e+00> : vector<96x208xf32>
    %83 = tpu.matmul %80, %82, %cst_83 {dimension_numbers = #tpu.dot_dimension_numbers<[1], [0], [0], [1], [0, 0, 1, 1], [], []>} : vector<96x28xbf16>, vector<28x208xbf16>, vector<96x208xf32> -> vector<96x208xf32>
    %84 = arith.addf %78, %83 : vector<96x208xf32>
    %85 = vector.broadcast %0 : vector<1x208xf32> to vector<96x208xf32>
    %86 = arith.addf %84, %85 : vector<96x208xf32>
    %cst_84 = arith.constant 0.000000e+00 : f32
    %87 = vector.broadcast %cst_84 : f32 to vector<96x208xf32>
    %88 = arith.maximumf %86, %87 : vector<96x208xf32>
    %89 = arith.truncf %88 : vector<96x208xf32> to vector<96x208xbf16>
    %c0_85 = arith.constant 0 : index
    %c0_86 = arith.constant 0 : index
    %c0_87 = arith.constant 0 : index
    %90 = vector.load %arg4[%c0_85, %c0_86, %c0_87] : memref<3x208x144xbf16, #tpu.memory_space<vmem>>, vector<1x208x144xbf16>
    %91 = vector.shape_cast %90 : vector<1x208x144xbf16> to vector<208x144xbf16>
    %cst_88 = arith.constant dense<0.000000e+00> : vector<96x144xf32>
    %92 = tpu.matmul %23, %91, %cst_88 {dimension_numbers = #tpu.dot_dimension_numbers<[1], [0], [0], [1], [0, 0, 1, 1], [], []>} : vector<96x208xbf16>, vector<208x144xbf16>, vector<96x144xf32> -> vector<96x144xf32>
    %c1_89 = arith.constant 1 : index
    %c0_90 = arith.constant 0 : index
    %c0_91 = arith.constant 0 : index
    %93 = vector.load %arg4[%c1_89, %c0_90, %c0_91] : memref<3x208x144xbf16, #tpu.memory_space<vmem>>, vector<1x208x144xbf16>
    %94 = vector.shape_cast %93 : vector<1x208x144xbf16> to vector<208x144xbf16>
    %cst_92 = arith.constant dense<0.000000e+00> : vector<96x144xf32>
    %95 = tpu.matmul %45, %94, %cst_92 {dimension_numbers = #tpu.dot_dimension_numbers<[1], [0], [0], [1], [0, 0, 1, 1], [], []>} : vector<96x208xbf16>, vector<208x144xbf16>, vector<96x144xf32> -> vector<96x144xf32>
    %96 = arith.addf %92, %95 : vector<96x144xf32>
    %c2_93 = arith.constant 2 : index
    %c0_94 = arith.constant 0 : index
    %c0_95 = arith.constant 0 : index
    %97 = vector.load %arg4[%c2_93, %c0_94, %c0_95] : memref<3x208x144xbf16, #tpu.memory_space<vmem>>, vector<1x208x144xbf16>
    %98 = vector.shape_cast %97 : vector<1x208x144xbf16> to vector<208x144xbf16>
    %cst_96 = arith.constant dense<0.000000e+00> : vector<96x144xf32>
    %99 = tpu.matmul %67, %98, %cst_96 {dimension_numbers = #tpu.dot_dimension_numbers<[1], [0], [0], [1], [0, 0, 1, 1], [], []>} : vector<96x208xbf16>, vector<208x144xbf16>, vector<96x144xf32> -> vector<96x144xf32>
    %100 = arith.addf %96, %99 : vector<96x144xf32>
    %101 = vector.broadcast %1 : vector<1x144xf32> to vector<96x144xf32>
    %102 = arith.addf %100, %101 : vector<96x144xf32>
    %c0_97 = arith.constant 0 : index
    %c0_98 = arith.constant 0 : index
    %c0_99 = arith.constant 0 : index
    %103 = vector.load %arg5[%c0_97, %c0_98, %c0_99] : memref<3x208x144xbf16, #tpu.memory_space<vmem>>, vector<1x208x144xbf16>
    %104 = vector.shape_cast %103 : vector<1x208x144xbf16> to vector<208x144xbf16>
    %cst_100 = arith.constant dense<0.000000e+00> : vector<96x144xf32>
    %105 = tpu.matmul %23, %104, %cst_100 {dimension_numbers = #tpu.dot_dimension_numbers<[1], [0], [0], [1], [0, 0, 1, 1], [], []>} : vector<96x208xbf16>, vector<208x144xbf16>, vector<96x144xf32> -> vector<96x144xf32>
    %c1_101 = arith.constant 1 : index
    %c0_102 = arith.constant 0 : index
    %c0_103 = arith.constant 0 : index
    %106 = vector.load %arg5[%c1_101, %c0_102, %c0_103] : memref<3x208x144xbf16, #tpu.memory_space<vmem>>, vector<1x208x144xbf16>
    %107 = vector.shape_cast %106 : vector<1x208x144xbf16> to vector<208x144xbf16>
    %cst_104 = arith.constant dense<0.000000e+00> : vector<96x144xf32>
    %108 = tpu.matmul %45, %107, %cst_104 {dimension_numbers = #tpu.dot_dimension_numbers<[1], [0], [0], [1], [0, 0, 1, 1], [], []>} : vector<96x208xbf16>, vector<208x144xbf16>, vector<96x144xf32> -> vector<96x144xf32>
    %109 = arith.addf %105, %108 : vector<96x144xf32>
    %c2_105 = arith.constant 2 : index
    %c0_106 = arith.constant 0 : index
    %c0_107 = arith.constant 0 : index
    %110 = vector.load %arg5[%c2_105, %c0_106, %c0_107] : memref<3x208x144xbf16, #tpu.memory_space<vmem>>, vector<1x208x144xbf16>
    %111 = vector.shape_cast %110 : vector<1x208x144xbf16> to vector<208x144xbf16>
    %cst_108 = arith.constant dense<0.000000e+00> : vector<96x144xf32>
    %112 = tpu.matmul %67, %111, %cst_108 {dimension_numbers = #tpu.dot_dimension_numbers<[1], [0], [0], [1], [0, 0, 1, 1], [], []>} : vector<96x208xbf16>, vector<208x144xbf16>, vector<96x144xf32> -> vector<96x144xf32>
    %113 = arith.addf %109, %112 : vector<96x144xf32>
    %114 = vector.broadcast %1 : vector<1x144xf32> to vector<96x144xf32>
    %115 = arith.addf %113, %114 : vector<96x144xf32>
    %c0_109 = arith.constant 0 : index
    %c0_110 = arith.constant 0 : index
    %c0_111 = arith.constant 0 : index
    %116 = vector.load %arg4[%c0_109, %c0_110, %c0_111] : memref<3x208x144xbf16, #tpu.memory_space<vmem>>, vector<1x208x144xbf16>
    %117 = vector.shape_cast %116 : vector<1x208x144xbf16> to vector<208x144xbf16>
    %cst_112 = arith.constant dense<0.000000e+00> : vector<96x144xf32>
    %118 = tpu.matmul %45, %117, %cst_112 {dimension_numbers = #tpu.dot_dimension_numbers<[1], [0], [0], [1], [0, 0, 1, 1], [], []>} : vector<96x208xbf16>, vector<208x144xbf16>, vector<96x144xf32> -> vector<96x144xf32>
    %c1_113 = arith.constant 1 : index
    %c0_114 = arith.constant 0 : index
    %c0_115 = arith.constant 0 : index
    %119 = vector.load %arg4[%c1_113, %c0_114, %c0_115] : memref<3x208x144xbf16, #tpu.memory_space<vmem>>, vector<1x208x144xbf16>
    %120 = vector.shape_cast %119 : vector<1x208x144xbf16> to vector<208x144xbf16>
    %cst_116 = arith.constant dense<0.000000e+00> : vector<96x144xf32>
    %121 = tpu.matmul %67, %120, %cst_116 {dimension_numbers = #tpu.dot_dimension_numbers<[1], [0], [0], [1], [0, 0, 1, 1], [], []>} : vector<96x208xbf16>, vector<208x144xbf16>, vector<96x144xf32> -> vector<96x144xf32>
    %122 = arith.addf %118, %121 : vector<96x144xf32>
    %c2_117 = arith.constant 2 : index
    %c0_118 = arith.constant 0 : index
    %c0_119 = arith.constant 0 : index
    %123 = vector.load %arg4[%c2_117, %c0_118, %c0_119] : memref<3x208x144xbf16, #tpu.memory_space<vmem>>, vector<1x208x144xbf16>
    %124 = vector.shape_cast %123 : vector<1x208x144xbf16> to vector<208x144xbf16>
    %cst_120 = arith.constant dense<0.000000e+00> : vector<96x144xf32>
    %125 = tpu.matmul %89, %124, %cst_120 {dimension_numbers = #tpu.dot_dimension_numbers<[1], [0], [0], [1], [0, 0, 1, 1], [], []>} : vector<96x208xbf16>, vector<208x144xbf16>, vector<96x144xf32> -> vector<96x144xf32>
    %126 = arith.addf %122, %125 : vector<96x144xf32>
    %127 = vector.broadcast %1 : vector<1x144xf32> to vector<96x144xf32>
    %128 = arith.addf %126, %127 : vector<96x144xf32>
    %c0_121 = arith.constant 0 : index
    %c0_122 = arith.constant 0 : index
    %c0_123 = arith.constant 0 : index
    %129 = vector.load %arg5[%c0_121, %c0_122, %c0_123] : memref<3x208x144xbf16, #tpu.memory_space<vmem>>, vector<1x208x144xbf16>
    %130 = vector.shape_cast %129 : vector<1x208x144xbf16> to vector<208x144xbf16>
    %cst_124 = arith.constant dense<0.000000e+00> : vector<96x144xf32>
    %131 = tpu.matmul %45, %130, %cst_124 {dimension_numbers = #tpu.dot_dimension_numbers<[1], [0], [0], [1], [0, 0, 1, 1], [], []>} : vector<96x208xbf16>, vector<208x144xbf16>, vector<96x144xf32> -> vector<96x144xf32>
    %c1_125 = arith.constant 1 : index
    %c0_126 = arith.constant 0 : index
    %c0_127 = arith.constant 0 : index
    %132 = vector.load %arg5[%c1_125, %c0_126, %c0_127] : memref<3x208x144xbf16, #tpu.memory_space<vmem>>, vector<1x208x144xbf16>
    %133 = vector.shape_cast %132 : vector<1x208x144xbf16> to vector<208x144xbf16>
    %cst_128 = arith.constant dense<0.000000e+00> : vector<96x144xf32>
    %134 = tpu.matmul %67, %133, %cst_128 {dimension_numbers = #tpu.dot_dimension_numbers<[1], [0], [0], [1], [0, 0, 1, 1], [], []>} : vector<96x208xbf16>, vector<208x144xbf16>, vector<96x144xf32> -> vector<96x144xf32>
    %135 = arith.addf %131, %134 : vector<96x144xf32>
    %c2_129 = arith.constant 2 : index
    %c0_130 = arith.constant 0 : index
    %c0_131 = arith.constant 0 : index
    %136 = vector.load %arg5[%c2_129, %c0_130, %c0_131] : memref<3x208x144xbf16, #tpu.memory_space<vmem>>, vector<1x208x144xbf16>
    %137 = vector.shape_cast %136 : vector<1x208x144xbf16> to vector<208x144xbf16>
    %cst_132 = arith.constant dense<0.000000e+00> : vector<96x144xf32>
    %138 = tpu.matmul %89, %137, %cst_132 {dimension_numbers = #tpu.dot_dimension_numbers<[1], [0], [0], [1], [0, 0, 1, 1], [], []>} : vector<96x208xbf16>, vector<208x144xbf16>, vector<96x144xf32> -> vector<96x144xf32>
    %139 = arith.addf %135, %138 : vector<96x144xf32>
    %140 = vector.broadcast %1 : vector<1x144xf32> to vector<96x144xf32>
    %141 = arith.addf %139, %140 : vector<96x144xf32>
    %142 = arith.maximumf %102, %115 : vector<96x144xf32>
    %143 = arith.maximumf %128, %141 : vector<96x144xf32>
    %144 = arith.maximumf %142, %143 : vector<96x144xf32>
    %145 = arith.truncf %144 : vector<96x144xf32> to vector<96x144xbf16>
    %146 = vector.extract_strided_slice %145 {offsets = [0, 0], sizes = [8, 144], strides = [1, 1]} : vector<96x144xbf16> to vector<8x144xbf16>
    %c0_133 = arith.constant 0 : index
    %c0_134 = arith.constant 0 : index
    %c0_135 = arith.constant 0 : index
    %147 = vector.load %arg7[%c0_133, %c0_134, %c0_135] : memref<12x144x128xbf16, #tpu.memory_space<vmem>>, vector<1x144x128xbf16>
    %148 = vector.shape_cast %147 : vector<1x144x128xbf16> to vector<144x128xbf16>
    %cst_136 = arith.constant dense<0.000000e+00> : vector<8x128xf32>
    %149 = tpu.matmul %146, %148, %cst_136 {dimension_numbers = #tpu.dot_dimension_numbers<[1], [0], [0], [1], [0, 0, 1, 1], [], []>} : vector<8x144xbf16>, vector<144x128xbf16>, vector<8x128xf32> -> vector<8x128xf32>
    %150 = vector.extract_strided_slice %145 {offsets = [8, 0], sizes = [8, 144], strides = [1, 1]} : vector<96x144xbf16> to vector<8x144xbf16>
    %c1_137 = arith.constant 1 : index
    %c0_138 = arith.constant 0 : index
    %c0_139 = arith.constant 0 : index
    %151 = vector.load %arg7[%c1_137, %c0_138, %c0_139] : memref<12x144x128xbf16, #tpu.memory_space<vmem>>, vector<1x144x128xbf16>
    %152 = vector.shape_cast %151 : vector<1x144x128xbf16> to vector<144x128xbf16>
    %cst_140 = arith.constant dense<0.000000e+00> : vector<8x128xf32>
    %153 = tpu.matmul %150, %152, %cst_140 {dimension_numbers = #tpu.dot_dimension_numbers<[1], [0], [0], [1], [0, 0, 1, 1], [], []>} : vector<8x144xbf16>, vector<144x128xbf16>, vector<8x128xf32> -> vector<8x128xf32>
    %154 = arith.addf %149, %153 : vector<8x128xf32>
    %155 = vector.extract_strided_slice %145 {offsets = [16, 0], sizes = [8, 144], strides = [1, 1]} : vector<96x144xbf16> to vector<8x144xbf16>
    %c2_141 = arith.constant 2 : index
    %c0_142 = arith.constant 0 : index
    %c0_143 = arith.constant 0 : index
    %156 = vector.load %arg7[%c2_141, %c0_142, %c0_143] : memref<12x144x128xbf16, #tpu.memory_space<vmem>>, vector<1x144x128xbf16>
    %157 = vector.shape_cast %156 : vector<1x144x128xbf16> to vector<144x128xbf16>
    %cst_144 = arith.constant dense<0.000000e+00> : vector<8x128xf32>
    %158 = tpu.matmul %155, %157, %cst_144 {dimension_numbers = #tpu.dot_dimension_numbers<[1], [0], [0], [1], [0, 0, 1, 1], [], []>} : vector<8x144xbf16>, vector<144x128xbf16>, vector<8x128xf32> -> vector<8x128xf32>
    %159 = arith.addf %154, %158 : vector<8x128xf32>
    %160 = vector.extract_strided_slice %145 {offsets = [24, 0], sizes = [8, 144], strides = [1, 1]} : vector<96x144xbf16> to vector<8x144xbf16>
    %c3_145 = arith.constant 3 : index
    %c0_146 = arith.constant 0 : index
    %c0_147 = arith.constant 0 : index
    %161 = vector.load %arg7[%c3_145, %c0_146, %c0_147] : memref<12x144x128xbf16, #tpu.memory_space<vmem>>, vector<1x144x128xbf16>
    %162 = vector.shape_cast %161 : vector<1x144x128xbf16> to vector<144x128xbf16>
    %cst_148 = arith.constant dense<0.000000e+00> : vector<8x128xf32>
    %163 = tpu.matmul %160, %162, %cst_148 {dimension_numbers = #tpu.dot_dimension_numbers<[1], [0], [0], [1], [0, 0, 1, 1], [], []>} : vector<8x144xbf16>, vector<144x128xbf16>, vector<8x128xf32> -> vector<8x128xf32>
    %164 = arith.addf %159, %163 : vector<8x128xf32>
    %165 = vector.extract_strided_slice %145 {offsets = [32, 0], sizes = [8, 144], strides = [1, 1]} : vector<96x144xbf16> to vector<8x144xbf16>
    %c4_149 = arith.constant 4 : index
    %c0_150 = arith.constant 0 : index
    %c0_151 = arith.constant 0 : index
    %166 = vector.load %arg7[%c4_149, %c0_150, %c0_151] : memref<12x144x128xbf16, #tpu.memory_space<vmem>>, vector<1x144x128xbf16>
    %167 = vector.shape_cast %166 : vector<1x144x128xbf16> to vector<144x128xbf16>
    %cst_152 = arith.constant dense<0.000000e+00> : vector<8x128xf32>
    %168 = tpu.matmul %165, %167, %cst_152 {dimension_numbers = #tpu.dot_dimension_numbers<[1], [0], [0], [1], [0, 0, 1, 1], [], []>} : vector<8x144xbf16>, vector<144x128xbf16>, vector<8x128xf32> -> vector<8x128xf32>
    %169 = arith.addf %164, %168 : vector<8x128xf32>
    %170 = vector.extract_strided_slice %145 {offsets = [40, 0], sizes = [8, 144], strides = [1, 1]} : vector<96x144xbf16> to vector<8x144xbf16>
    %c5_153 = arith.constant 5 : index
    %c0_154 = arith.constant 0 : index
    %c0_155 = arith.constant 0 : index
    %171 = vector.load %arg7[%c5_153, %c0_154, %c0_155] : memref<12x144x128xbf16, #tpu.memory_space<vmem>>, vector<1x144x128xbf16>
    %172 = vector.shape_cast %171 : vector<1x144x128xbf16> to vector<144x128xbf16>
    %cst_156 = arith.constant dense<0.000000e+00> : vector<8x128xf32>
    %173 = tpu.matmul %170, %172, %cst_156 {dimension_numbers = #tpu.dot_dimension_numbers<[1], [0], [0], [1], [0, 0, 1, 1], [], []>} : vector<8x144xbf16>, vector<144x128xbf16>, vector<8x128xf32> -> vector<8x128xf32>
    %174 = arith.addf %169, %173 : vector<8x128xf32>
    %175 = vector.extract_strided_slice %145 {offsets = [48, 0], sizes = [8, 144], strides = [1, 1]} : vector<96x144xbf16> to vector<8x144xbf16>
    %c6 = arith.constant 6 : index
    %c0_157 = arith.constant 0 : index
    %c0_158 = arith.constant 0 : index
    %176 = vector.load %arg7[%c6, %c0_157, %c0_158] : memref<12x144x128xbf16, #tpu.memory_space<vmem>>, vector<1x144x128xbf16>
    %177 = vector.shape_cast %176 : vector<1x144x128xbf16> to vector<144x128xbf16>
    %cst_159 = arith.constant dense<0.000000e+00> : vector<8x128xf32>
    %178 = tpu.matmul %175, %177, %cst_159 {dimension_numbers = #tpu.dot_dimension_numbers<[1], [0], [0], [1], [0, 0, 1, 1], [], []>} : vector<8x144xbf16>, vector<144x128xbf16>, vector<8x128xf32> -> vector<8x128xf32>
    %179 = arith.addf %174, %178 : vector<8x128xf32>
    %180 = vector.extract_strided_slice %145 {offsets = [56, 0], sizes = [8, 144], strides = [1, 1]} : vector<96x144xbf16> to vector<8x144xbf16>
    %c7 = arith.constant 7 : index
    %c0_160 = arith.constant 0 : index
    %c0_161 = arith.constant 0 : index
    %181 = vector.load %arg7[%c7, %c0_160, %c0_161] : memref<12x144x128xbf16, #tpu.memory_space<vmem>>, vector<1x144x128xbf16>
    %182 = vector.shape_cast %181 : vector<1x144x128xbf16> to vector<144x128xbf16>
    %cst_162 = arith.constant dense<0.000000e+00> : vector<8x128xf32>
    %183 = tpu.matmul %180, %182, %cst_162 {dimension_numbers = #tpu.dot_dimension_numbers<[1], [0], [0], [1], [0, 0, 1, 1], [], []>} : vector<8x144xbf16>, vector<144x128xbf16>, vector<8x128xf32> -> vector<8x128xf32>
    %184 = arith.addf %179, %183 : vector<8x128xf32>
    %185 = vector.extract_strided_slice %145 {offsets = [64, 0], sizes = [8, 144], strides = [1, 1]} : vector<96x144xbf16> to vector<8x144xbf16>
    %c8 = arith.constant 8 : index
    %c0_163 = arith.constant 0 : index
    %c0_164 = arith.constant 0 : index
    %186 = vector.load %arg7[%c8, %c0_163, %c0_164] : memref<12x144x128xbf16, #tpu.memory_space<vmem>>, vector<1x144x128xbf16>
    %187 = vector.shape_cast %186 : vector<1x144x128xbf16> to vector<144x128xbf16>
    %cst_165 = arith.constant dense<0.000000e+00> : vector<8x128xf32>
    %188 = tpu.matmul %185, %187, %cst_165 {dimension_numbers = #tpu.dot_dimension_numbers<[1], [0], [0], [1], [0, 0, 1, 1], [], []>} : vector<8x144xbf16>, vector<144x128xbf16>, vector<8x128xf32> -> vector<8x128xf32>
    %189 = arith.addf %184, %188 : vector<8x128xf32>
    %190 = vector.extract_strided_slice %145 {offsets = [72, 0], sizes = [8, 144], strides = [1, 1]} : vector<96x144xbf16> to vector<8x144xbf16>
    %c9 = arith.constant 9 : index
    %c0_166 = arith.constant 0 : index
    %c0_167 = arith.constant 0 : index
    %191 = vector.load %arg7[%c9, %c0_166, %c0_167] : memref<12x144x128xbf16, #tpu.memory_space<vmem>>, vector<1x144x128xbf16>
    %192 = vector.shape_cast %191 : vector<1x144x128xbf16> to vector<144x128xbf16>
    %cst_168 = arith.constant dense<0.000000e+00> : vector<8x128xf32>
    %193 = tpu.matmul %190, %192, %cst_168 {dimension_numbers = #tpu.dot_dimension_numbers<[1], [0], [0], [1], [0, 0, 1, 1], [], []>} : vector<8x144xbf16>, vector<144x128xbf16>, vector<8x128xf32> -> vector<8x128xf32>
    %194 = arith.addf %189, %193 : vector<8x128xf32>
    %195 = vector.extract_strided_slice %145 {offsets = [80, 0], sizes = [8, 144], strides = [1, 1]} : vector<96x144xbf16> to vector<8x144xbf16>
    %c10 = arith.constant 10 : index
    %c0_169 = arith.constant 0 : index
    %c0_170 = arith.constant 0 : index
    %196 = vector.load %arg7[%c10, %c0_169, %c0_170] : memref<12x144x128xbf16, #tpu.memory_space<vmem>>, vector<1x144x128xbf16>
    %197 = vector.shape_cast %196 : vector<1x144x128xbf16> to vector<144x128xbf16>
    %cst_171 = arith.constant dense<0.000000e+00> : vector<8x128xf32>
    %198 = tpu.matmul %195, %197, %cst_171 {dimension_numbers = #tpu.dot_dimension_numbers<[1], [0], [0], [1], [0, 0, 1, 1], [], []>} : vector<8x144xbf16>, vector<144x128xbf16>, vector<8x128xf32> -> vector<8x128xf32>
    %199 = arith.addf %194, %198 : vector<8x128xf32>
    %200 = vector.extract_strided_slice %145 {offsets = [88, 0], sizes = [8, 144], strides = [1, 1]} : vector<96x144xbf16> to vector<8x144xbf16>
    %c11 = arith.constant 11 : index
    %c0_172 = arith.constant 0 : index
    %c0_173 = arith.constant 0 : index
    %201 = vector.load %arg7[%c11, %c0_172, %c0_173] : memref<12x144x128xbf16, #tpu.memory_space<vmem>>, vector<1x144x128xbf16>
    %202 = vector.shape_cast %201 : vector<1x144x128xbf16> to vector<144x128xbf16>
    %cst_174 = arith.constant dense<0.000000e+00> : vector<8x128xf32>
    %203 = tpu.matmul %200, %202, %cst_174 {dimension_numbers = #tpu.dot_dimension_numbers<[1], [0], [0], [1], [0, 0, 1, 1], [], []>} : vector<8x144xbf16>, vector<144x128xbf16>, vector<8x128xf32> -> vector<8x128xf32>
    %204 = arith.addf %199, %203 : vector<8x128xf32>
    %c0_175 = arith.constant 0 : index
    %c0_176 = arith.constant 0 : index
    %205 = vector.load %arg8[%c0_175, %c0_176] : memref<1x128xf32, #tpu.memory_space<vmem>>, vector<1x128xf32>
    %206 = vector.broadcast %205 : vector<1x128xf32> to vector<8x128xf32>
    %207 = arith.addf %204, %206 : vector<8x128xf32>
    %cst_177 = arith.constant 0.000000e+00 : f32
    %208 = vector.broadcast %cst_177 : f32 to vector<8x128xf32>
    %209 = arith.maximumf %207, %208 : vector<8x128xf32>
    %c0_178 = arith.constant 0 : index
    %c0_179 = arith.constant 0 : index
    %210 = vector.load %arg9[%c0_178, %c0_179] : memref<128x10xf32, #tpu.memory_space<vmem>>, vector<128x10xf32>
    %cst_180 = arith.constant dense<0.000000e+00> : vector<8x10xf32>
    %211 = tpu.matmul %209, %210, %cst_180 {dimension_numbers = #tpu.dot_dimension_numbers<[1], [0], [0], [1], [0, 0, 1, 1], [], []>} : vector<8x128xf32>, vector<128x10xf32>, vector<8x10xf32> -> vector<8x10xf32>
    %c0_181 = arith.constant 0 : index
    %c0_182 = arith.constant 0 : index
    %212 = vector.load %arg10[%c0_181, %c0_182] : memref<1x10xf32, #tpu.memory_space<vmem>>, vector<1x10xf32>
    %213 = vector.broadcast %212 : vector<1x10xf32> to vector<8x10xf32>
    %214 = arith.addf %211, %213 : vector<8x10xf32>
    %cst_183 = arith.constant dense<0xFF800000> : vector<8xf32>
    %215 = vector.multi_reduction <maximumf>, %214, %cst_183 [1] : vector<8x10xf32> to vector<8xf32>
    %216 = vector.shape_cast %215 : vector<8xf32> to vector<8x1xf32>
    %217 = vector.broadcast %216 : vector<8x1xf32> to vector<8x10xf32>
    %218 = arith.subf %214, %217 : vector<8x10xf32>
    %219 = math.exp %218 : vector<8x10xf32>
    %cst_184 = arith.constant dense<0.000000e+00> : vector<8xf32>
    %220 = vector.multi_reduction <add>, %219, %cst_184 [1] : vector<8x10xf32> to vector<8xf32>
    %221 = vector.shape_cast %220 : vector<8xf32> to vector<8x1xf32>
    %222 = math.log %221 : vector<8x1xf32>
    %223 = vector.broadcast %222 : vector<8x1xf32> to vector<8x10xf32>
    %224 = arith.subf %218, %223 : vector<8x10xf32>
    %c0_185 = arith.constant 0 : index
    %c0_186 = arith.constant 0 : index
    %225 = vector.load %arg11[%c0_185, %c0_186] : memref<8x10xf32, #tpu.memory_space<vmem>>, vector<8x10xf32>
    tpu.vector_store %arg11[%c0_185, %c0_186], %224 {strides = array<i32>} : memref<8x10xf32, #tpu.memory_space<vmem>>, vector<8x10xf32>,
    return
  }
  func.func @transform_0(%arg0: i32) -> (i32, i32, i32) {
    %c0_i32 = arith.constant 0 : i32
    %c0_i32_0 = arith.constant 0 : i32
    %c0_i32_1 = arith.constant 0 : i32
    return %c0_i32, %arg0, %c0_i32_0 : i32, i32, i32
  }
  func.func @transform_1(%arg0: i32) -> (i32, i32, i32) {
    %c0_i32 = arith.constant 0 : i32
    %c0_i32_0 = arith.constant 0 : i32
    %c0_i32_1 = arith.constant 0 : i32
    %c0_i32_2 = arith.constant 0 : i32
    return %c0_i32, %c0_i32_0, %c0_i32_1 : i32, i32, i32
  }
  func.func @transform_2(%arg0: i32) -> (i32, i32) {
    %c0_i32 = arith.constant 0 : i32
    %c0_i32_0 = arith.constant 0 : i32
    %c0_i32_1 = arith.constant 0 : i32
    return %c0_i32, %c0_i32_0 : i32, i32
  }
  func.func @transform_3(%arg0: i32) -> (i32, i32, i32) {
    %c0_i32 = arith.constant 0 : i32
    %c0_i32_0 = arith.constant 0 : i32
    %c0_i32_1 = arith.constant 0 : i32
    %c0_i32_2 = arith.constant 0 : i32
    return %c0_i32, %c0_i32_0, %c0_i32_1 : i32, i32, i32
  }
  func.func @transform_4(%arg0: i32) -> (i32, i32, i32) {
    %c0_i32 = arith.constant 0 : i32
    %c0_i32_0 = arith.constant 0 : i32
    %c0_i32_1 = arith.constant 0 : i32
    %c0_i32_2 = arith.constant 0 : i32
    return %c0_i32, %c0_i32_0, %c0_i32_1 : i32, i32, i32
  }
  func.func @transform_5(%arg0: i32) -> (i32, i32) {
    %c0_i32 = arith.constant 0 : i32
    %c0_i32_0 = arith.constant 0 : i32
    %c0_i32_1 = arith.constant 0 : i32
    return %c0_i32, %c0_i32_0 : i32, i32
  }
  func.func @transform_6(%arg0: i32) -> (i32, i32, i32) {
    %c0_i32 = arith.constant 0 : i32
    %c0_i32_0 = arith.constant 0 : i32
    %c0_i32_1 = arith.constant 0 : i32
    %c0_i32_2 = arith.constant 0 : i32
    return %c0_i32, %c0_i32_0, %c0_i32_1 : i32, i32, i32
  }
  func.func @transform_7(%arg0: i32) -> (i32, i32) {
    %c0_i32 = arith.constant 0 : i32
    %c0_i32_0 = arith.constant 0 : i32
    %c0_i32_1 = arith.constant 0 : i32
    return %c0_i32, %c0_i32_0 : i32, i32
  }
  func.func @transform_8(%arg0: i32) -> (i32, i32) {
    %c0_i32 = arith.constant 0 : i32
    %c0_i32_0 = arith.constant 0 : i32
    %c0_i32_1 = arith.constant 0 : i32
    return %c0_i32, %c0_i32_0 : i32, i32
  }
  func.func @transform_9(%arg0: i32) -> (i32, i32) {
    %c0_i32 = arith.constant 0 : i32
    %c0_i32_0 = arith.constant 0 : i32
    %c0_i32_1 = arith.constant 0 : i32
    return %c0_i32, %c0_i32_0 : i32, i32
  }
  func.func @transform_10(%arg0: i32) -> (i32, i32) {
    %c0_i32 = arith.constant 0 : i32
    %c0_i32_0 = arith.constant 0 : i32
    return %arg0, %c0_i32 : i32, i32
  }
}

</mosaic_0001>

<bundles_post_ra>
// kernel: net_forward.1
= control target key start
LH: loop header
LB: loop body
LE: loop exit
PB: predicated region body
PF: predicated region fallthrough
CT: control target
= control target key end

     0   :  { %s8553_s13 = smov 0   ;;  %s8555_s14 = smov 0   ;;  %s11393_s0 = inlined_call_operand.vmem [shape: bf16[6,192,28], index: 0, kind: input, shape index: {}]   ;;  %s11394_s1 = inlined_call_operand.vmem [shape: bf16[3,28,208], index: 1, kind: input, shape index: {}]   ;;  %s11395_s2 = inlined_call_operand.vmem [shape: f32[1,208], index: 2, kind: input, shape index: {}]   ;;  %s11396_s3 = inlined_call_operand.vmem [shape: bf16[3,208,144], index: 3, kind: input, shape index: {}]   ;;  %s11397_s4 = inlined_call_operand.vmem [shape: bf16[3,208,144], index: 4, kind: input, shape index: {}]   ;;  %s11398_s5 = inlined_call_operand.vmem [shape: f32[1,144], index: 5, kind: input, shape index: {}]   ;;  %s11399_s6 = inlined_call_operand.vmem [shape: bf16[12,144,128], index: 6, kind: input, shape index: {}]   ;;  %s11400_s7 = inlined_call_operand.vmem [shape: f32[1,128], index: 7, kind: input, shape index: {}]   ;;  %s11401_s8 = inlined_call_operand.vmem [shape: f32[128,10], index: 8, kind: input, shape index: {}]   ;;  %s11402_s9 = inlined_call_operand.vmem [shape: f32[1,10], index: 9, kind: input, shape index: {}]   ;;  %s11403_s10 = inlined_call_operand.vmem [shape: f32[16,10], index: 10, kind: output, shape index: {}]  }
   0x1   :  { %s8557_s15 = smov 0  }
   0x2 LB: > { %s6627_s16 = sadd.s32 4294967295, %s8492_s15   ;;  %s8570_s17 = sadd.s32 1, %s8492_s15   ;;  %s8492_s15 = sphi %s8557_s15, %s11657_s15   ;;  %s8488_s14 = sphi %s8555_s14, %s11656_s14   ;;  %s8484_s13 = sphi %s8553_s13, %s11655_s13  }
   0x3   : > { %s24_s18 = ssub.s32 %s8492_s15, %s8570_s17  ;;  %s27_s19 = sadd.s32 1, %s8488_s14 }
   0x4   : > { %p25_p0 = scmp.eq.s32.totalorder %s24_s18, 0  ;;  %p34_p1 = scmp.ne.s32.totalorder %s8488_s14, %s8484_s13 }
   0x5   : > { %p35_p2 = scmp.eq.s32.totalorder %s8492_s15, 0  ;;  %p6630_p4 = scmp.ge.s32.totalorder %s8492_s15, 2 }
   0x6   : > { %s8579_s20 = scalar_select %p25_p0, %s8488_s14, %s27_s19  }
   0x7   : > { %p36_p3 = por %p35_p2, %p34_p1  ;;  %302 = sbr.rel (%p6630_p4) target bundleno = 37 (0x25), region = 52 }
   0xe   : > { %305 = sbr.rel (!%p36_p3) target bundleno = 37 (0x25), region = 56  ;;  %s307_s21 = sand.u32 (%p36_p3), 1, %s8488_s14  }
   0xf   : > { %s7488_s22 = smul.u32 (%p36_p3), 48, %s8492_s15 }
  0x10   : > { %s7953_s23 = smul.u32 (%p36_p3), 288, %s307_s21 }
  0x11   : > { %s8587_s26 = scalar_lea.vmem (%p36_p3), %s11393_s0, %s7488_s22 }
  0x12   : > { %v328_v0 = vld [vmem:[%s8587_s26] sm:$0xff] (%p36_p3)   ;;  %v332_v1 = vld [vmem:[%s8587_s26 + $0x8] sm:$0xff] (%p36_p3)   ;;  %v336_v2 = vld [vmem:[%s8587_s26 + $0x10] sm:$0xff] (%p36_p3)   ;;  %s8592_s27 = scalar_lea.vmem (%p36_p3), [#allocation2], %s7953_s23 }
  0x13   : > { %329 = vst [vmem:[%s8592_s27] sm:$0xff] (%p36_p3), %v328_v0   ;;  %333 = vst [vmem:[%s8592_s27 + $0x8] sm:$0xff] (%p36_p3), %v332_v1   ;;  %v340_v3 = vld [vmem:[%s8587_s26 + $0x18] sm:$0xff] (%p36_p3)   ;;  %v344_v4 = vld [vmem:[%s8587_s26 + $0x20] sm:$0xff] (%p36_p3)  }
  0x14   : > { %337 = vst [vmem:[%s8592_s27 + $0x10] sm:$0xff] (%p36_p3), %v336_v2   ;;  %v348_v5 = vld [vmem:[%s8587_s26 + $0x28] sm:$0xff] (%p36_p3)   ;;  %341 = vst [vmem:[%s8592_s27 + $0x18] sm:$0xff] (%p36_p3), %v340_v3   ;;  %v352_v6 = vld [vmem:[%s8587_s26 + $0x60] sm:$0xff] (%p36_p3)  }
  0x15   : > { %345 = vst [vmem:[%s8592_s27 + $0x20] sm:$0xff] %v344_v4   ;;  %349 = vst [vmem:[%s8592_s27 + $0x28] sm:$0xff] %v348_v5   ;;  %v356_v7 = vld [vmem:[%s8587_s26 + $0x68] sm:$0xff]   ;;  %v360_v8 = vld [vmem:[%s8587_s26 + $0x70] sm:$0xff]  }
  0x16   : > { %353 = vst [vmem:[%s8592_s27 + $0x30] sm:$0xff] %v352_v6   ;;  %357 = vst [vmem:[%s8592_s27 + $0x38] sm:$0xff] %v356_v7   ;;  %v364_v9 = vld [vmem:[%s8587_s26 + $0x78] sm:$0xff]   ;;  %v368_v10 = vld [vmem:[%s8587_s26 + $0x80] sm:$0xff]  }
  0x17   : > { %361 = vst [vmem:[%s8592_s27 + $0x40] sm:$0xff] %v360_v8   ;;  %v372_v11 = vld [vmem:[%s8587_s26 + $0x88] sm:$0xff]   ;;  %365 = vst [vmem:[%s8592_s27 + $0x48] sm:$0xff] %v364_v9   ;;  %v376_v12 = vld [vmem:[%s8587_s26 + $0xc0] sm:$0xff]  }
  0x18   : > { %369 = vst [vmem:[%s8592_s27 + $0x50] sm:$0xff] %v368_v10   ;;  %373 = vst [vmem:[%s8592_s27 + $0x58] sm:$0xff] %v372_v11   ;;  %v380_v13 = vld [vmem:[%s8587_s26 + $0xc8] sm:$0xff]   ;;  %v384_v14 = vld [vmem:[%s8587_s26 + $0xd0] sm:$0xff]  }
  0x19   : > { %377 = vst [vmem:[%s8592_s27 + $0x60] sm:$0xff] %v376_v12   ;;  %381 = vst [vmem:[%s8592_s27 + $0x68] sm:$0xff] %v380_v13   ;;  %v388_v15 = vld [vmem:[%s8587_s26 + $0xd8] sm:$0xff]   ;;  %v392_v16 = vld [vmem:[%s8587_s26 + $0xe0] sm:$0xff]  }
  0x1a   : > { %385 = vst [vmem:[%s8592_s27 + $0x70] sm:$0xff] %v384_v14   ;;  %v396_v17 = vld [vmem:[%s8587_s26 + $0xe8] sm:$0xff]   ;;  %389 = vst [vmem:[%s8592_s27 + $0x78] sm:$0xff] %v388_v15   ;;  %v400_v18 = vld [vmem:[%s8587_s26 + $0x120] sm:$0xff]  }
  0x1b   : > { %393 = vst [vmem:[%s8592_s27 + $0x80] sm:$0xff] %v392_v16   ;;  %397 = vst [vmem:[%s8592_s27 + $0x88] sm:$0xff] %v396_v17   ;;  %v404_v19 = vld [vmem:[%s8587_s26 + $0x128] sm:$0xff]   ;;  %v408_v20 = vld [vmem:[%s8587_s26 + $0x130] sm:$0xff]  }
  0x1c   : > { %401 = vst [vmem:[%s8592_s27 + $0x90] sm:$0xff] %v400_v18   ;;  %405 = vst [vmem:[%s8592_s27 + $0x98] sm:$0xff] %v404_v19   ;;  %v412_v21 = vld [vmem:[%s8587_s26 + $0x138] sm:$0xff]   ;;  %v416_v22 = vld [vmem:[%s8587_s26 + $0x140] sm:$0xff]  }
  0x1d   : > { %409 = vst [vmem:[%s8592_s27 + $0xa0] sm:$0xff] %v408_v20   ;;  %v420_v23 = vld [vmem:[%s8587_s26 + $0x148] sm:$0xff]   ;;  %413 = vst [vmem:[%s8592_s27 + $0xa8] sm:$0xff] %v412_v21   ;;  %v424_v24 = vld [vmem:[%s8587_s26 + $0x180] sm:$0xff]  }
  0x1e   : > { %417 = vst [vmem:[%s8592_s27 + $0xb0] sm:$0xff] %v416_v22   ;;  %421 = vst [vmem:[%s8592_s27 + $0xb8] sm:$0xff] %v420_v23   ;;  %v428_v25 = vld [vmem:[%s8587_s26 + $0x188] sm:$0xff]   ;;  %v432_v26 = vld [vmem:[%s8587_s26 + $0x190] sm:$0xff]  }
  0x1f   : > { %425 = vst [vmem:[%s8592_s27 + $0xc0] sm:$0xff] %v424_v24   ;;  %429 = vst [vmem:[%s8592_s27 + $0xc8] sm:$0xff] %v428_v25   ;;  %v436_v27 = vld [vmem:[%s8587_s26 + $0x198] sm:$0xff]   ;;  %v440_v28 = vld [vmem:[%s8587_s26 + $0x1a0] sm:$0xff]  }
  0x20   : > { %433 = vst [vmem:[%s8592_s27 + $0xd0] sm:$0xff] %v432_v26   ;;  %v444_v29 = vld [vmem:[%s8587_s26 + $0x1a8] sm:$0xff]   ;;  %437 = vst [vmem:[%s8592_s27 + $0xd8] sm:$0xff] %v436_v27   ;;  %v448_v30 = vld [vmem:[%s8587_s26 + $0x1e0] sm:$0xff]  }
  0x21   : > { %441 = vst [vmem:[%s8592_s27 + $0xe0] sm:$0xff] %v440_v28   ;;  %445 = vst [vmem:[%s8592_s27 + $0xe8] sm:$0xff] %v444_v29   ;;  %v452_v31 = vld [vmem:[%s8587_s26 + $0x1e8] sm:$0xff]   ;;  %v456_v32 = vld [vmem:[%s8587_s26 + $0x1f0] sm:$0xff]  }
  0x22   : > { %449 = vst [vmem:[%s8592_s27 + $0xf0] sm:$0xff] %v448_v30   ;;  %453 = vst [vmem:[%s8592_s27 + $0xf8] sm:$0xff] %v452_v31   ;;  %v460_v33 = vld [vmem:[%s8587_s26 + $0x1f8] sm:$0xff]   ;;  %v464_v34 = vld [vmem:[%s8587_s26 + $0x200] sm:$0xff]  }
  0x23   : > { %457 = vst [vmem:[%s8592_s27 + $0x100] sm:$0xff] %v456_v32   ;;  %v468_v35 = vld [vmem:[%s8587_s26 + $0x208] sm:$0xff]   ;;  %461 = vst [vmem:[%s8592_s27 + $0x108] sm:$0xff] %v460_v33  }
  0x24   : > { %465 = vst [vmem:[%s8592_s27 + $0x110] sm:$0xff] %v464_v34   ;;  %469 = vst [vmem:[%s8592_s27 + $0x118] sm:$0xff] %v468_v35  }
  0x25 PF: > { %p6632_p5 = scmp.ge.s32.totalorder %s8492_s15, 1  ;;  %p637_p6 = scmp.lt.s32.totalorder %s8492_s15, 3 }
  0x27   : > { %p638_p7 = pnand %p6632_p5, %p637_p6 }
  0x29   : > { %641 = sbr.rel (%p638_p7) target bundleno = 1828 (0x724), region = 97 }
  0x30   : > { %v8668_v36 = vld [vmem:[%s11394_s1 + $0x24] ss:$8 sps:$4 sm:$0xff]   ;;  %vm789_vm0 = vcmask 1045504   ;;  %v8673_v37 = vld [vmem:[%s11394_s1 + $0x20] ss:$8 sps:$4 sm:$0xff]   ;;  %v11406_v38 = vmov 0  }
  0x31   : > { %828 = vmatprep.mubr.bf16.mxu0 %v11406_v38  ;;  %878 = vmatprep.mubr.bf16.mxu1 %v11406_v38  ;;  %s644_s12 = sand.u32 1, %s8484_s13   ;;  %v8683_v39 = vld [vmem:[%s11394_s1 + $0x34] ss:$8 sps:$4 sm:$0x3f]   ;;  %v8700_v42 = vld [vmem:[%s11394_s1 + $0x4] ss:$8 sps:$4 sm:$0xff]  }
  0x32   : > { %796 = vmatprep.subr.bf16.mxu0 %v8668_v36  ;;  %7565 = vmatprep.subr.bf16.mxu1 %v8668_v36  ;;  %v7988_v40 = vld [vmem:[%s11394_s1 + $0x30] ss:$8 sps:$4 sm:$0x3f]   ;;  %s7954_s23 = smul.u32 288, %s644_s12  ;;  %v7993_v43 = vld [vmem:[%s11394_s1] ss:$8 sps:$4 sm:$0xff]  }
  0x33   : > { %797 = vmatpush1.bf16.msra.mxu0 %v8673_v37  ;;  %7567 = vmatpush1.bf16.msra.mxu1 %v8673_v37  ;;  %v8695_v41 = vsel %vm789_vm0, %v7988_v40, 0  ;;  %vm770_vm1 = vcmask 228352   ;;  %v7998_v46 = vld [vmem:[%s11394_s1 + $0x14] ss:$8 sps:$4 sm:$0x3f]   ;;  %vm2787_vm2 = vcmask 654336  }
  0x34   : > { %6660 = vmatprep.subr.msk.bf16.mxu0 %vm789_vm0, %v8683_v39  ;;  %7566 = vmatprep.subr.msk.bf16.mxu1 %vm789_vm0, %v8683_v39  ;;  %s8705_s27 = scalar_lea.vmem [#allocation2], %s7954_s23  ;;  %v8000_v48 = vld [vmem:[%s11394_s1 + $0x10] ss:$8 sps:$4 sm:$0x3f]   ;;  %v8748_v51 = vld [vmem:[%s11394_s1 + $0x44] ss:$8 sps:$4 sm:$0xff]  }
  0x35   : > { %v8708_v44 = vld [vmem:[%s8705_s27 + $0x30] sm:$0xff]   ;;  %v8713_v45 = vld [vmem:[%s8705_s27 + $0x58] sm:$0xff]   ;;  %v8737_v49 = vld [vmem:[%s8705_s27 + $0x60] sm:$0xff]   ;;  %v8740_v50 = vsel %vm789_vm0, %v8000_v48, 0  ;;  %vm5116_vm3 = vcmask 130048   ;;  %vm8496_vm4 = vmmov 0  }
  0x36   : > { %v8729_v47 = vld [vmem:[%s8705_s27 + $0x38] sm:$0xff]   ;;  %v7996_v52 = vld [vmem:[%s8705_s27 + $0x40] sm:$0xff]   ;;  %v8760_v53 = vld [vmem:[%s8705_s27 + $0x68] sm:$0xff]   ;;  %vm6554_vm5 = vcmask 80896   ;;  %p681_p8 = scmp.lt.s32.totalorder %s6627_s16, 1 }
  0x37   : > { %799 = vmatpush1.bf16.msra.mxu0 %v8695_v41  ;;  %7568 = vmatpush1.bf16.msra.mxu1 %v8695_v41  ;;  %v8001_v54 = vld [vmem:[%s8705_s27 + $0x48] sm:$0xff]   ;;  %v8771_v55 = vld [vmem:[%s8705_s27 + $0x70] sm:$0xff]   ;;  %v8780_v57 = vld [vmem:[%s8705_s27 + $0x78] sm:$0xff]  }
  0x38   : > { %961 = vmatprep.subr.bf16.mxu0 %v8700_v42  ;;  %1332 = vmatprep.subr.bf16.mxu1 %v8668_v36  ;;  %v8003_v56 = vld [vmem:[%s8705_s27 + $0x50] sm:$0xff]   ;;  %v8005_v58 = vld [vmem:[%s8705_s27] sm:$0xff]   ;;  %v8010_v63 = vld [vmem:[%s8705_s27 + $0x8] sm:$0xff]   ;;  %s11659_s16 = smov (!%p681_p8, %s6627_s16), 1 }
  0x39   : > { %v8789_v59 = vld [vmem:[%s8705_s27 + $0x80] sm:$0xff]   ;;  %v8799_v61 = vld [vmem:[%s11394_s1 + $0x54] ss:$8 sps:$4 sm:$0x3f]   ;;  %v8812_v0 = vld [vmem:[%s8705_s27 + $0x88] sm:$0xff]   ;;  %s6633_s30 = sshll.u32 %s11659_s16, 3 }
  0x3a   : > { %6661 = vmatmul.mubr.msk.bf16.vlgmr.msra.gmra.mrb[0].mxu0 %vm770_vm1, %v8708_v44  ;;  %6666 = vmatmul.mubr.msk.bf16.vlgmr.msra.gmra.mrb[0].mxu1 %vm770_vm1, %v8713_v45  ;;  %v8794_v60 = vld [vmem:[%s11394_s1 + $0x40] ss:$8 sps:$4 sm:$0xff]   ;;  %v8016_v62 = vld [vmem:[%s11394_s1 + $0x50] ss:$8 sps:$4 sm:$0x3f]   ;;  %s684_s18 = scalar_lea.vmem %s11403_s10, %s6633_s30 }
  0x3b   : > { %962 = vmatpush1.bf16.msra.mxu0 %v7993_v43  ;;  %1333 = vmatpush1.bf16.msra.mxu1 %v8673_v37  ;;  %v8817_v1 = vsel %vm789_vm0, %v8016_v62, 0  ;;  %v8012_v2 = vld [vmem:[%s8705_s27 + $0x10] sm:$0xff]   ;;  %v8013_v3 = vld [vmem:[%s8705_s27 + $0x18] sm:$0xff]   ;;  %v8017_v4 = vld [vmem:[%s8705_s27 + $0x20] sm:$0xff]  }
  0x3c   : > { %6717 = vmatprep.subr.msk.bf16.mxu1 %vm789_vm0, %v8683_v39  ;;  %838 = vmatprep.mubr.bf16.mxu0 %v11406_v38  ;;  %v8018_v5 = vld [vmem:[%s8705_s27 + $0x28] sm:$0xff]   ;;  %v8870_v6 = vld [vmem:[%s8705_s27 + $0x90] sm:$0xff]   ;;  %v8879_v7 = vld [vmem:[%s8705_s27 + $0x98] sm:$0xff]  }
  0x3d   : > { %1364 = vmatprep.mubr.bf16.mxu1 %v11406_v38  ;;  %6677 = vmatprep.subr.msk.bf16.mxu0 %vm789_vm0, %v7998_v46  ;;  %v8893_v8 = vld [vmem:[%s8705_s27 + $0xa0] sm:$0xff]   ;;  %v8902_v9 = vld [vmem:[%s8705_s27 + $0xa8] sm:$0xff]   ;;  %v8911_v10 = vld [vmem:[%s8705_s27 + $0xb0] sm:$0xff]  }
  0x3e   : > { %v8383_v11 = vld [vmem:[%s11394_s1] ss:$8 sps:$4 sm:$0xff]   ;;  %v8923_v12 = vld [vmem:[%s8705_s27 + $0xb8] sm:$0xff]   ;;  %v8385_v16 = vld [vmem:[%s11394_s1 + $0x44] ss:$8 sps:$4 sm:$0xff]  }
  0x3f   : > { %1335 = vmatpush1.bf16.msra.mxu1 %v8695_v41  ;;  %964 = vmatpush1.bf16.msra.mxu0 %v8740_v50  ;;  %v8384_v13 = vld [vmem:[%s11394_s1 + $0x14] ss:$8 sps:$4 sm:$0x3f]   ;;  %v8938_v14 = vld [vmem:[%s8705_s27 + $0xc0] sm:$0xff]   ;;  %v8947_v15 = vld [vmem:[%s8705_s27 + $0xc8] sm:$0xff]  }
  0x40   : > { %1425 = vmatprep.subr.bf16.mxu1 %v8700_v42  ;;  %1144 = vmatprep.subr.bf16.mxu0 %v8748_v51  ;;  %v8961_v17 = vld [vmem:[%s8705_s27 + $0xd0] sm:$0xff]   ;;  %v8970_v18 = vld [vmem:[%s8705_s27 + $0xd8] sm:$0xff]   ;;  %v8979_v19 = vld [vmem:[%s8705_s27 + $0xe0] sm:$0xff]  }
  0x41   : > { %v8386_v20 = vld [vmem:[%s8705_s27 + $0x60] sm:$0xff]   ;;  %v8037_v21 = vld [vmem:[%s11396_s3 + $0xd4] ss:$8 sps:$4 sm:$0xff]   ;;  %v8994_v22 = vld [vmem:[%s8705_s27 + $0xe8] sm:$0xff]  }
  0x42   : > { %6662 = vmatmul.mubr.msk.bf16.gmra.mrb[4].mxu0 %vm770_vm1, %v8729_v47  ;;  %6718 = vmatmul.mubr.msk.bf16.vlgmr.msra.gmra.mrb[4].mxu1 %vm770_vm1, %v8737_v49  ;;  %v8387_v23 = vld [vmem:[%s8705_s27 + $0x68] sm:$0xff]   ;;  %v8388_v24 = vld [vmem:[%s8705_s27 + $0x70] sm:$0xff]   ;;  %v8389_v26 = vld [vmem:[%s8705_s27 + $0x78] sm:$0xff]  }
  0x43   : > { %848 = vmatprep.mubr.bf16.mxu0 %v11406_v38  ;;  %1374 = vmatprep.mubr.bf16.mxu1 %v11406_v38  ;;  %v8040_v25 = vld [vmem:[%s11397_s4 + $0xd4] ss:$8 sps:$4 sm:$0xff]   ;;  %v8390_v31 = vld [vmem:[%s8705_s27 + $0x80] sm:$0xff]   ;;  %v8035_v32 = vld [vmem:[%s11396_s3 + $0xd0] ss:$8 sps:$4 sm:$0xff]  }
  0x44   : > { %1426 = vmatpush1.bf16.msra.mxu1 %v7993_v43  ;;  %v8043_v33 = vld [vmem:[%s11396_s3 + $0xe4] ss:$8 sps:$4 sm:$0xff]   ;;  %v8041_v34 = vld [vmem:[%s11396_s3 + $0xe0] ss:$8 sps:$4 sm:$0xff]   ;;  %v8050_v35 = vld [vmem:[%s11396_s3 + $0xf4] ss:$8 sps:$4 sm:$0xff]  }
  0x45   : > { %6724 = vmatprep.subr.msk.bf16.mxu1 %vm789_vm0, %v7998_v46  ;;  %v8063_v40 = vld [vmem:[%s11396_s3 + $0x114] ss:$8 sps:$4 sm:$0xff]   ;;  %v8061_v43 = vld [vmem:[%s11396_s3 + $0x110] ss:$8 sps:$4 sm:$0xff]   ;;  %v8044_v46 = vld [vmem:[%s11397_s4 + $0xe0] ss:$8 sps:$4 sm:$0xff]  }
  0x46   : > { %v8053_v48 = vld [vmem:[%s11397_s4 + $0xf4] ss:$8 sps:$4 sm:$0xff]   ;;  %v8072_v62 = vld [vmem:[%s11397_s4 + $0x124] ss:$8 sps:$4 sm:$0xff]  }
  0x48   : > { %1428 = vmatpush1.bf16.msra.mxu1 %v8740_v50 }
  0x49   : > { %1579 = vmatprep.subr.bf16.mxu1 %v8748_v51 }
  0x4a   : > { %6663 = vmatmul.mubr.msk.bf16.gmra.mrb[8].mxu0 %vm770_vm1, %v7996_v52  ;;  %6719 = vmatmul.mubr.msk.bf16.gmra.mrb[8].mxu1 %vm770_vm1, %v8760_v53 }
  0x4b   : > { %858 = vmatprep.mubr.bf16.mxu0 %v11406_v38  ;;  %1384 = vmatprep.mubr.bf16.mxu1 %v11406_v38 }
  0x52   : > { %6664 = vmatmul.mubr.msk.bf16.gmra.mrb[12].mxu0 %vm770_vm1, %v8001_v54  ;;  %6720 = vmatmul.mubr.msk.bf16.gmra.mrb[12].mxu1 %vm770_vm1, %v8771_v55 }
  0x53   : > { %868 = vmatprep.mubr.bf16.mxu0 %v11406_v38  ;;  %1394 = vmatprep.mubr.bf16.mxu1 %v11406_v38 }
  0x5a   : > { %6665 = vmatmul.mubr.msk.bf16.gmra.mrb[16].mxu0 %vm770_vm1, %v8003_v56  ;;  %6721 = vmatmul.mubr.msk.bf16.gmra.mrb[16].mxu1 %vm770_vm1, %v8780_v57 }
  0x5b   : > { %993 = vmatprep.mubr.bf16.mxu0 %v11406_v38  ;;  %1404 = vmatprep.mubr.bf16.mxu1 %v11406_v38 }
  0x62   : > { %6678 = vmatmul.mubr.msk.bf16.vlgmr.msra.gmra.mrb[0].mxu0 %vm770_vm1, %v8005_v58  ;;  %6722 = vmatmul.mubr.msk.bf16.gmra.mrb[20].mxu1 %vm770_vm1, %v8789_v59  ;;  %v8087_v58 = vld [vmem:[%s11396_s3 + $0x154] ss:$8 sps:$4 sm:$0xff]  }
  0x63   : > { %1145 = vmatpush1.bf16.msra.mxu0 %v8794_v60  ;;  %1003 = vmatprep.mubr.bf16.mxu0 %v11406_v38 }
  0x64   : > { %1414 = vmatprep.mubr.bf16.mxu1 %v11406_v38  ;;  %6710 = vmatprep.subr.msk.bf16.mxu0 %vm789_vm0, %v8799_v61 }
  0x67   : > { %1147 = vmatpush1.bf16.msra.mxu0 %v8817_v1 }
  0x68   : > { %1756 = vmatprep.subr.bf16.mxu0 %v8668_v36 }
  0x6a   : > { %6679 = vmatmul.mubr.msk.bf16.gmra.mrb[4].mxu0 %vm770_vm1, %v8010_v63  ;;  %6723 = vmatmul.mubr.msk.bf16.gmra.mrb[24].mxu1 %vm770_vm1, %v8812_v0  ;;  %v8093_v63 = vld [vmem:[%s11396_s3 + $0x164] ss:$8 sps:$4 sm:$0xff]  }
  0x6b   : > { %1013 = vmatprep.mubr.bf16.mxu0 %v11406_v38  ;;  %1457 = vmatprep.mubr.bf16.mxu1 %v11406_v38 }
  0x72   : > { %6680 = vmatmul.mubr.msk.bf16.gmra.mrb[8].mxu0 %vm770_vm1, %v8012_v2  ;;  %6725 = vmatmul.mubr.msk.bf16.vlgmr.msra.gmra.mrb[4].mxu1 %vm770_vm1, %v8708_v44  ;;  %v8046_v44 = vld [vmem:[%s11397_s4 + $0xe4] ss:$8 sps:$4 sm:$0xff]   ;;  %v8078_v2 = vld [vmem:[%s11397_s4 + $0x134] ss:$8 sps:$4 sm:$0xff]  }
  0x73   : > { %1023 = vmatprep.mubr.bf16.mxu0 %v11406_v38  ;;  %1467 = vmatprep.mubr.bf16.mxu1 %v11406_v38 }
  0x74   : > { %1580 = vmatpush1.bf16.msra.mxu1 %v8794_v60 }
  0x75   : > { %6749 = vmatprep.subr.msk.bf16.mxu1 %vm789_vm0, %v8799_v61 }
  0x78   : > { %1582 = vmatpush1.bf16.msra.mxu1 %v8817_v1 }
  0x79   : > { %2180 = vmatprep.subr.bf16.mxu1 %v8668_v36  ;;  %v8048_v36 = vld [vmem:[%s11396_s3 + $0xf0] ss:$8 sps:$4 sm:$0xff]  }
  0x7a   : > { %6681 = vmatmul.mubr.msk.bf16.gmra.mrb[12].mxu0 %vm770_vm1, %v8013_v3  ;;  %6726 = vmatmul.mubr.msk.bf16.gmra.mrb[8].mxu1 %vm770_vm1, %v8729_v47  ;;  %v8067_v47 = vld [vmem:[%s11396_s3 + $0x120] ss:$8 sps:$4 sm:$0xff]   ;;  %v8099_v3 = vld [vmem:[%s11396_s3 + $0x174] ss:$8 sps:$4 sm:$0xff]  }
  0x7b   : > { %1033 = vmatprep.mubr.bf16.mxu0 %v11406_v38  ;;  %1477 = vmatprep.mubr.bf16.mxu1 %v11406_v38 }
  0x82   : > { %6682 = vmatmul.mubr.msk.bf16.gmra.mrb[16].mxu0 %vm770_vm1, %v8017_v4  ;;  %6727 = vmatmul.mubr.msk.bf16.gmra.mrb[12].mxu1 %vm770_vm1, %v7996_v52  ;;  %v8073_v52 = vld [vmem:[%s11396_s3 + $0x130] ss:$8 sps:$4 sm:$0xff]   ;;  %v8034_v4 = vld [vmem:[%s8705_s27 + $0x108] sm:$0xff]  }
  0x83   : > { %1043 = vmatprep.mubr.bf16.mxu0 %v11406_v38  ;;  %1487 = vmatprep.mubr.bf16.mxu1 %v11406_v38 }
  0x8a   : > { %6683 = vmatmul.mubr.msk.bf16.gmra.mrb[20].mxu0 %vm770_vm1, %v8018_v5  ;;  %6728 = vmatmul.mubr.msk.bf16.gmra.mrb[16].mxu1 %vm770_vm1, %v8001_v54  ;;  %v8081_v54 = vld [vmem:[%s11396_s3 + $0x144] ss:$8 sps:$4 sm:$0xff]   ;;  %v8076_v5 = vld [vmem:[%s11397_s4 + $0x130] ss:$8 sps:$4 sm:$0xff]  }
  0x8b   : > { %1176 = vmatprep.mubr.bf16.mxu0 %v11406_v38  ;;  %1497 = vmatprep.mubr.bf16.mxu1 %v11406_v38 }
  0x92   : > { %6711 = vmatmul.mubr.msk.bf16.vlgmr.msra.gmra.mrb[0].mxu0 %vm770_vm1, %v8737_v49  ;;  %6729 = vmatmul.mubr.msk.bf16.gmra.mrb[20].mxu1 %vm770_vm1, %v8003_v56  ;;  %v8075_v49 = vld [vmem:[%s11396_s3 + $0x134] ss:$8 sps:$4 sm:$0xff]   ;;  %v8079_v56 = vld [vmem:[%s11396_s3 + $0x140] ss:$8 sps:$4 sm:$0xff]  }
  0x93   : > { %1757 = vmatpush1.bf16.msra.mxu0 %v8673_v37  ;;  %1186 = vmatprep.mubr.bf16.mxu0 %v11406_v38 }
  0x94   : > { %1507 = vmatprep.mubr.bf16.mxu1 %v11406_v38  ;;  %6756 = vmatprep.subr.msk.bf16.mxu0 %vm789_vm0, %v8683_v39 }
  0x97   : > { %1759 = vmatpush1.bf16.msra.mxu0 %v8695_v41 }
  0x98   : > { %1849 = vmatprep.subr.bf16.mxu0 %v8700_v42 }
  0x9a   : > { %6712 = vmatmul.mubr.msk.bf16.gmra.mrb[4].mxu0 %vm770_vm1, %v8760_v53  ;;  %6730 = vmatmul.mubr.msk.bf16.gmra.mrb[24].mxu1 %vm770_vm1, %v8713_v45  ;;  %v8069_v45 = vld [vmem:[%s11396_s3 + $0x124] ss:$8 sps:$4 sm:$0xff]  }
  0x9b   : > { %1196 = vmatprep.mubr.bf16.mxu0 %v11406_v38  ;;  %1611 = vmatprep.mubr.bf16.mxu1 %v11406_v38  ;;  %v8059_v53 = vld [vmem:[%s11397_s4 + $0x104] ss:$8 sps:$4 sm:$0xff]  }
  0xa2   : > { %6713 = vmatmul.mubr.msk.bf16.gmra.mrb[8].mxu0 %vm770_vm1, %v8771_v55  ;;  %6750 = vmatmul.mubr.msk.bf16.vlgmr.msra.gmra.mrb[4].mxu1 %vm770_vm1, %v8870_v6  ;;  %v8057_v55 = vld [vmem:[%s11397_s4 + $0x100] ss:$8 sps:$4 sm:$0xff]  }
  0xa3   : > { %1206 = vmatprep.mubr.bf16.mxu0 %v11406_v38  ;;  %1621 = vmatprep.mubr.bf16.mxu1 %v11406_v38 }
  0xa4   : > { %2181 = vmatpush1.bf16.msra.mxu1 %v8673_v37  ;;  %v8056_v37 = vld [vmem:[%s11396_s3 + $0x104] ss:$8 sps:$4 sm:$0xff]  }
  0xa5   : > { %6795 = vmatprep.subr.msk.bf16.mxu1 %vm789_vm0, %v8683_v39  ;;  %v8054_v39 = vld [vmem:[%s11396_s3 + $0x100] ss:$8 sps:$4 sm:$0xff]  }
  0xa8   : > { %2183 = vmatpush1.bf16.msra.mxu1 %v8695_v41  ;;  %v8031_v41 = vld [vmem:[%s8705_s27 + $0xf0] sm:$0xff]  }
  0xa9   : > { %2273 = vmatprep.subr.bf16.mxu1 %v8700_v42  ;;  %v8038_v42 = vld [vmem:[%s11397_s4 + $0xd0] ss:$8 sps:$4 sm:$0xff]  }
  0xaa   : > { %6714 = vmatmul.mubr.msk.bf16.gmra.mrb[12].mxu0 %vm770_vm1, %v8780_v57  ;;  %6751 = vmatmul.mubr.msk.bf16.gmra.mrb[8].mxu1 %vm770_vm1, %v8879_v7  ;;  %v8066_v57 = vld [vmem:[%s11397_s4 + $0x114] ss:$8 sps:$4 sm:$0xff]  }
  0xab   : > { %1216 = vmatprep.mubr.bf16.mxu0 %v11406_v38  ;;  %1631 = vmatprep.mubr.bf16.mxu1 %v11406_v38 }
  0xb2   : > { %6715 = vmatmul.mubr.msk.bf16.gmra.mrb[16].mxu0 %vm770_vm1, %v8789_v59  ;;  %6752 = vmatmul.mubr.msk.bf16.gmra.mrb[12].mxu1 %vm770_vm1, %v8893_v8  ;;  %v8033_v59 = vld [vmem:[%s8705_s27 + $0x100] sm:$0xff]  }
  0xb3   : > { %1226 = vmatprep.mubr.bf16.mxu0 %v11406_v38  ;;  %1641 = vmatprep.mubr.bf16.mxu1 %v11406_v38 }
  0xba   : > { %6716 = vmatmul.mubr.msk.bf16.gmra.mrb[20].mxu0 %vm770_vm1, %v8812_v0  ;;  %6753 = vmatmul.mubr.msk.bf16.gmra.mrb[16].mxu1 %vm770_vm1, %v8902_v9 }
  0xbb   : > { %1651 = vmatprep.mubr.bf16.mxu1 %v11406_v38  ;;  %1788 = vmatprep.mubr.bf16.mxu0 %v11406_v38 }
  0xc2   : > { %6754 = vmatmul.mubr.msk.bf16.gmra.mrb[20].mxu1 %vm770_vm1, %v8911_v10  ;;  %6757 = vmatmul.mubr.msk.bf16.vlgmr.msra.gmra.mrb[24].mxu0 %vm770_vm1, %v8870_v6 }
  0xc3   : > { %1850 = vmatpush1.bf16.msra.mxu0 %v8383_v11  ;;  %1661 = vmatprep.mubr.bf16.mxu1 %v11406_v38 }
  0xc4   : > { %1798 = vmatprep.mubr.bf16.mxu0 %v11406_v38  ;;  %6763 = vmatprep.subr.msk.bf16.mxu0 %vm789_vm0, %v8384_v13 }
  0xc7   : > { %1852 = vmatpush1.bf16.msra.mxu0 %v8740_v50 }
  0xc8   : > { %2003 = vmatprep.subr.bf16.mxu0 %v8748_v51  ;;  %v8051_v51 = vld [vmem:[%s11397_s4 + $0xf0] ss:$8 sps:$4 sm:$0xff]  }
  0xca   : > { %6755 = vmatmul.mubr.msk.bf16.gmra.mrb[24].mxu1 %vm770_vm1, %v8923_v12  ;;  %6758 = vmatmul.mubr.msk.bf16.gmra.mrb[28].mxu0 %vm770_vm1, %v8879_v7 }
  0xcb   : > { %1808 = vmatprep.mubr.bf16.mxu0 %v11406_v38  ;;  %2212 = vmatprep.mubr.bf16.mxu1 %v11406_v38 }
  0xd2   : > { %6759 = vmatmul.mubr.msk.bf16.gmra.mrb[32].mxu0 %vm770_vm1, %v8893_v8  ;;  %6796 = vmatmul.mubr.msk.bf16.vlgmr.msra.gmra.mrb[28].mxu1 %vm770_vm1, %v8938_v14 }
  0xd3   : > { %1818 = vmatprep.mubr.bf16.mxu0 %v11406_v38  ;;  %2222 = vmatprep.mubr.bf16.mxu1 %v11406_v38 }
  0xd4   : > { %2274 = vmatpush1.bf16.msra.mxu1 %v8383_v11  ;;  %v8090_v11 = vld [vmem:[%s11397_s4 + $0x154] ss:$8 sps:$4 sm:$0xff]  }
  0xd5   : > { %6802 = vmatprep.subr.msk.bf16.mxu1 %vm789_vm0, %v8384_v13  ;;  %v8047_v13 = vld [vmem:[%s8705_s27 + $0x110] sm:$0xff]  }
  0xd8   : > { %2276 = vmatpush1.bf16.msra.mxu1 %v8740_v50  ;;  %v8032_v50 = vld [vmem:[%s8705_s27 + $0xf8] sm:$0xff]  }
  0xd9   : > { %2427 = vmatprep.subr.bf16.mxu1 %v8385_v16  ;;  %v8096_v16 = vld [vmem:[%s11397_s4 + $0x164] ss:$8 sps:$4 sm:$0xff]  }
  0xda   : > { %6760 = vmatmul.mubr.msk.bf16.gmra.mrb[36].mxu0 %vm770_vm1, %v8902_v9  ;;  %6797 = vmatmul.mubr.msk.bf16.gmra.mrb[32].mxu1 %vm770_vm1, %v8947_v15 }
  0xdb   : > { %1828 = vmatprep.mubr.bf16.mxu0 %v11406_v38  ;;  %2232 = vmatprep.mubr.bf16.mxu1 %v11406_v38 }
  0xe2   : > { %6761 = vmatmul.mubr.msk.bf16.gmra.mrb[40].mxu0 %vm770_vm1, %v8911_v10  ;;  %6798 = vmatmul.mubr.msk.bf16.gmra.mrb[36].mxu1 %vm770_vm1, %v8961_v17 }
  0xe3   : > { %1838 = vmatprep.mubr.bf16.mxu0 %v11406_v38  ;;  %2242 = vmatprep.mubr.bf16.mxu1 %v11406_v38 }
  0xea   : > { %6762 = vmatmul.mubr.msk.bf16.gmra.mrb[44].mxu0 %vm770_vm1, %v8923_v12  ;;  %6799 = vmatmul.mubr.msk.bf16.gmra.mrb[40].mxu1 %vm770_vm1, %v8970_v18 }
  0xeb   : > { %1881 = vmatprep.mubr.bf16.mxu0 %v11406_v38  ;;  %2252 = vmatprep.mubr.bf16.mxu1 %v11406_v38 }
  0xf2   : > { %6764 = vmatmul.mubr.msk.bf16.vlgmr.msra.gmra.mrb[24].mxu0 %vm770_vm1, %v8386_v20  ;;  %6800 = vmatmul.mubr.msk.bf16.gmra.mrb[44].mxu1 %vm770_vm1, %v8979_v19  ;;  %v8060_v20 = vld [vmem:[%s8705_s27 + $0x118] sm:$0xff]  }
  0xf3   : > { %2004 = vmatpush1.bf16.msra.mxu0 %v8794_v60  ;;  %1891 = vmatprep.mubr.bf16.mxu0 %v11406_v38 }
  0xf4   : > { %2262 = vmatprep.mubr.bf16.mxu1 %v11406_v38  ;;  %6788 = vmatprep.subr.msk.bf16.mxu0 %vm789_vm0, %v8799_v61 }
  0xf7   : > { %2006 = vmatpush1.bf16.msra.mxu0 %v8817_v1 }
  0xf8   : > { %2806 = vmatprep.subr.bf16.mxu0 %v8037_v21  ;;  %v1262_v21 = vlaneseq }
  0xfa   : > { %6765 = vmatmul.mubr.msk.bf16.gmra.mrb[28].mxu0 %vm770_vm1, %v8387_v23  ;;  %6801 = vmatmul.mubr.msk.bf16.gmra.mrb[48].mxu1 %vm770_vm1, %v8994_v22  ;;  %v8108_v23 = vld [vmem:[%s11397_s4 + $0x184] ss:$8 sps:$4 sm:$0xff]  }
  0xfb   : > { %1901 = vmatprep.mubr.bf16.mxu0 %v11406_v38  ;;  %2305 = vmatprep.mubr.bf16.mxu1 %v11406_v38 }
 0x102   : > { %6766 = vmatmul.mubr.msk.bf16.gmra.mrb[32].mxu0 %vm770_vm1, %v8388_v24  ;;  %6803 = vmatmul.mubr.msk.bf16.vlgmr.msra.gmra.mrb[28].mxu1 %vm770_vm1, %v8870_v6  ;;  %v8097_v6 = vld [vmem:[%s11396_s3 + $0x170] ss:$8 sps:$4 sm:$0xff]   ;;  %v9226_v24 = vshrl.u32 %v1262_v21, 7 }
 0x103   : > { %1911 = vmatprep.mubr.bf16.mxu0 %v11406_v38  ;;  %2315 = vmatprep.mubr.bf16.mxu1 %v11406_v38 }
 0x104   : > { %2428 = vmatpush1.bf16.msra.mxu1 %v8794_v60  ;;  %v8064_v60 = vld [vmem:[%s11397_s4 + $0x110] ss:$8 sps:$4 sm:$0xff]   ;;  %11488 = vst [vmem:[#allocation3_spill] sm:$0xff] %v9226_v24 }
 0x105   : > { %6827 = vmatprep.subr.msk.bf16.mxu1 %vm789_vm0, %v8799_v61  ;;  %v8085_v61 = vld [vmem:[%s11396_s3 + $0x150] ss:$8 sps:$4 sm:$0xff]  }
 0x108   : > { %2430 = vmatpush1.bf16.msra.mxu1 %v8817_v1  ;;  %v8091_v1 = vld [vmem:[%s11396_s3 + $0x160] ss:$8 sps:$4 sm:$0xff]  }
 0x109   : > { %3650 = vmatprep.subr.bf16.mxu1 %v8040_v25  ;;  %v8106_v25 = vld [vmem:[%s11397_s4 + $0x180] ss:$8 sps:$4 sm:$0xff]  }
 0x10a   : > { %6767 = vmatmul.mubr.msk.bf16.gmra.mrb[36].mxu0 %vm770_vm1, %v8389_v26  ;;  %6804 = vmatmul.mubr.msk.bf16.gmra.mrb[32].mxu1 %vm770_vm1, %v8879_v7  ;;  %v8084_v7 = vld [vmem:[%s11397_s4 + $0x144] ss:$8 sps:$4 sm:$0xff]   ;;  %v8114_v26 = vld [vmem:[%s11397_s4 + $0x194] ss:$8 sps:$4 sm:$0xff]  }
 0x10b   : > { %1921 = vmatprep.mubr.bf16.mxu0 %v11406_v38  ;;  %2325 = vmatprep.mubr.bf16.mxu1 %v11406_v38 }
 0x10d   : > { %v9022_v27 = vpop.f32.mrb[0].mxu1 }
 0x10e   : > { %v9024_v28 = vpop.f32.mrb[1].mxu1 }
 0x10f   : > { %v9026_v29 = vpop.f32.mrb[2].mxu1 }
 0x110   : > { %v9028_v30 = vpop.f32.mrb[3].mxu1 }
 0x112   : > { %6768 = vmatmul.mubr.msk.bf16.gmra.mrb[40].mxu0 %vm770_vm1, %v8390_v31  ;;  %6805 = vmatmul.mubr.msk.bf16.gmra.mrb[36].mxu1 %vm770_vm1, %v8893_v8  ;;  %v8105_v8 = vld [vmem:[%s11396_s3 + $0x184] ss:$8 sps:$4 sm:$0xff]   ;;  %v11405_v31 = vsub.s32 0, %v9226_v24 }
 0x113   : > { %1931 = vmatprep.mubr.bf16.mxu0 %v11406_v38  ;;  %2335 = vmatprep.mubr.bf16.mxu1 %v11406_v38 }
 0x11a   : > { %6769 = vmatmul.mubr.msk.bf16.gmra.mrb[44].mxu0 %vm770_vm1, %v8812_v0  ;;  %6806 = vmatmul.mubr.msk.bf16.gmra.mrb[40].mxu1 %vm770_vm1, %v8902_v9  ;;  %v8070_v0 = vld [vmem:[%s11397_s4 + $0x120] ss:$8 sps:$4 sm:$0xff]  }
 0x11b   : > { %2035 = vmatprep.mubr.bf16.mxu0 %v11406_v38  ;;  %2345 = vmatprep.mubr.bf16.mxu1 %v11406_v38  ;;  %v8082_v9 = vld [vmem:[%s11397_s4 + $0x140] ss:$8 sps:$4 sm:$0xff]  }
 0x122   : > { %6789 = vmatmul.mubr.msk.bf16.vlgmr.msra.gmra.mrb[24].mxu0 %vm770_vm1, %v8938_v14  ;;  %6807 = vmatmul.mubr.msk.bf16.gmra.mrb[44].mxu1 %vm770_vm1, %v8911_v10  ;;  %v8103_v10 = vld [vmem:[%s11396_s3 + $0x180] ss:$8 sps:$4 sm:$0xff]   ;;  %v8088_v14 = vld [vmem:[%s11397_s4 + $0x150] ss:$8 sps:$4 sm:$0xff]  }
 0x123   : > { %2045 = vmatprep.mubr.bf16.mxu0 %v11406_v38  ;;  %2355 = vmatprep.mubr.bf16.mxu1 %v11406_v38 }
 0x124   : > { %2807 = vmatpush1.bf16.msra.mxu0 %v8035_v32  ;;  %v686_v32 = vld [vmem:[%s11395_s2] sm:$0x3] }
 0x125   : > { %2808 = vmatprep.subr.bf16.mxu0 %v8043_v33  ;;  %v11404_v33 = vsub.s32 1, %v9226_v24  ;;  %v9720_v24 = vld [vmem:[%s11397_s4 + $0x1d0] ss:$8 sps:$4 sm:$0xff]  }
 0x126   : > { %11509 = vst [vmem:[#allocation24_spill] sm:$0xff] %v9720_v24 }
 0x128   : > { %2809 = vmatpush1.bf16.msra.mxu0 %v8041_v34  ;;  %v8112_v34 = vld [vmem:[%s11397_s4 + $0x190] ss:$8 sps:$4 sm:$0xff]  }
 0x129   : > { %2810 = vmatprep.subr.bf16.mxu0 %v8050_v35  ;;  %v8120_v35 = vld [vmem:[%s11397_s4 + $0x4] ss:$8 sps:$4 sm:$0xff]  }
 0x12a   : > { %6790 = vmatmul.mubr.msk.bf16.gmra.mrb[28].mxu0 %vm770_vm1, %v8947_v15  ;;  %6808 = vmatmul.mubr.msk.bf16.gmra.mrb[48].mxu1 %vm770_vm1, %v8923_v12  ;;  %v8111_v12 = vld [vmem:[%s11396_s3 + $0x194] ss:$8 sps:$4 sm:$0xff]   ;;  %v8109_v15 = vld [vmem:[%s11396_s3 + $0x190] ss:$8 sps:$4 sm:$0xff]  }
 0x12b   : > { %2055 = vmatprep.mubr.bf16.mxu0 %v11406_v38  ;;  %2459 = vmatprep.mubr.bf16.mxu1 %v11406_v38 }
 0x12c   : > { %2811 = vmatpush1.bf16.msra.mxu0 %v8048_v36  ;;  %v9247_v36 = vrot.slane %v686_v32, %v11405_v31  ;;  %v9702_v31 = vld [vmem:[%s11397_s4 + $0x1d4] ss:$8 sps:$4 sm:$0xff]  }
 0x12d   : > { %2812 = vmatprep.subr.bf16.mxu0 %v8056_v37  ;;  %v9251_v37 = vrot.slane %v686_v32, %v11404_v33  ;;  %v9697_v33 = vld [vmem:[%s11396_s3 + $0x1d4] ss:$8 sps:$4 sm:$0xff]   ;;  %11507 = vst [vmem:[#allocation22_spill] sm:$0xff] %v9702_v31 }
 0x12e   : > { %11506 = vst [vmem:[#allocation21_spill] sm:$0xff] %v9697_v33 }
 0x130   : > { %2813 = vmatpush1.bf16.msra.mxu0 %v8054_v39 }
 0x131   : > { %2814 = vmatprep.subr.bf16.mxu0 %v8063_v40 }
 0x132   : > { %6791 = vmatmul.mubr.msk.bf16.gmra.mrb[32].mxu0 %vm770_vm1, %v8961_v17  ;;  %6828 = vmatmul.mubr.msk.bf16.vlgmr.msra.gmra.mrb[28].mxu1 %vm770_vm1, %v8031_v41  ;;  %v8117_v17 = vld [vmem:[%s11396_s3 + $0x4] ss:$8 sps:$4 sm:$0xff]  }
 0x133   : > { %2065 = vmatprep.mubr.bf16.mxu0 %v11406_v38  ;;  %2469 = vmatprep.mubr.bf16.mxu1 %v11406_v38 }
 0x134   : > { %3651 = vmatpush1.bf16.msra.mxu1 %v8038_v42  ;;  %2815 = vmatpush1.bf16.msra.mxu0 %v8061_v43 }
 0x135   : > { %3652 = vmatprep.subr.bf16.mxu1 %v8046_v44  ;;  %2816 = vmatprep.subr.bf16.mxu0 %v8069_v45 }
 0x138   : > { %3653 = vmatpush1.bf16.msra.mxu1 %v8044_v46  ;;  %2817 = vmatpush1.bf16.msra.mxu0 %v8067_v47 }
 0x139   : > { %3654 = vmatprep.subr.bf16.mxu1 %v8053_v48  ;;  %2818 = vmatprep.subr.bf16.mxu0 %v8075_v49 }
 0x13a   : > { %6792 = vmatmul.mubr.msk.bf16.gmra.mrb[36].mxu0 %vm770_vm1, %v8970_v18  ;;  %6829 = vmatmul.mubr.msk.bf16.gmra.mrb[32].mxu1 %vm770_vm1, %v8032_v50  ;;  %v8094_v18 = vld [vmem:[%s11397_s4 + $0x160] ss:$8 sps:$4 sm:$0xff]  }
 0x13b   : > { %2075 = vmatprep.mubr.bf16.mxu0 %v11406_v38  ;;  %2479 = vmatprep.mubr.bf16.mxu1 %v11406_v38 }
 0x13c   : > { %3655 = vmatpush1.bf16.msra.mxu1 %v8051_v51  ;;  %2819 = vmatpush1.bf16.msra.mxu0 %v8073_v52 }
 0x13d   : > { %3656 = vmatprep.subr.bf16.mxu1 %v8059_v53  ;;  %2820 = vmatprep.subr.bf16.mxu0 %v8081_v54 }
 0x140   : > { %3657 = vmatpush1.bf16.msra.mxu1 %v8057_v55  ;;  %2821 = vmatpush1.bf16.msra.mxu0 %v8079_v56 }
 0x141   : > { %3658 = vmatprep.subr.bf16.mxu1 %v8066_v57  ;;  %2822 = vmatprep.subr.bf16.mxu0 %v8087_v58 }
 0x142   : > { %6793 = vmatmul.mubr.msk.bf16.gmra.mrb[40].mxu0 %vm770_vm1, %v8979_v19  ;;  %6830 = vmatmul.mubr.msk.bf16.gmra.mrb[36].mxu1 %vm770_vm1, %v8033_v59  ;;  %v8102_v19 = vld [vmem:[%s11397_s4 + $0x174] ss:$8 sps:$4 sm:$0xff]  }
 0x143   : > { %2085 = vmatprep.mubr.bf16.mxu0 %v11406_v38  ;;  %2489 = vmatprep.mubr.bf16.mxu1 %v11406_v38 }
 0x144   : > { %3659 = vmatpush1.bf16.msra.mxu1 %v8064_v60  ;;  %2823 = vmatpush1.bf16.msra.mxu0 %v8085_v61 }
 0x145   : > { %3660 = vmatprep.subr.bf16.mxu1 %v8072_v62  ;;  %2824 = vmatprep.subr.bf16.mxu0 %v8093_v63 }
 0x148   : > { %3661 = vmatpush1.bf16.msra.mxu1 %v8070_v0  ;;  %2825 = vmatpush1.bf16.msra.mxu0 %v8091_v1 }
 0x149   : > { %3662 = vmatprep.subr.bf16.mxu1 %v8078_v2  ;;  %2826 = vmatprep.subr.bf16.mxu0 %v8099_v3 }
 0x14a   : > { %6794 = vmatmul.mubr.msk.bf16.gmra.mrb[44].mxu0 %vm770_vm1, %v8994_v22  ;;  %6831 = vmatmul.mubr.msk.bf16.gmra.mrb[40].mxu1 %vm770_vm1, %v8034_v4  ;;  %v8100_v22 = vld [vmem:[%s11397_s4 + $0x170] ss:$8 sps:$4 sm:$0xff]  }
 0x14b   : > { %2499 = vmatprep.mubr.bf16.mxu1 %v11406_v38 }
 0x14c   : > { %3663 = vmatpush1.bf16.msra.mxu1 %v8076_v5  ;;  %2827 = vmatpush1.bf16.msra.mxu0 %v8097_v6 }
 0x14d   : > { %3664 = vmatprep.subr.bf16.mxu1 %v8084_v7  ;;  %2828 = vmatprep.subr.bf16.mxu0 %v8105_v8 }
 0x150   : > { %3665 = vmatpush1.bf16.msra.mxu1 %v8082_v9  ;;  %2829 = vmatpush1.bf16.msra.mxu0 %v8103_v10 }
 0x151   : > { %3666 = vmatprep.subr.bf16.mxu1 %v8090_v11  ;;  %2830 = vmatprep.subr.bf16.mxu0 %v8111_v12 }
 0x152   : > { %6832 = vmatmul.mubr.msk.bf16.gmra.mrb[44].mxu1 %vm770_vm1, %v8047_v13 }
 0x153   : > { %2509 = vmatprep.mubr.bf16.mxu1 %v11406_v38  ;;  %v9715_v38 = vld [vmem:[%s11396_s3 + $0x1d0] ss:$8 sps:$4 sm:$0xff]  }
 0x154   : > { %3667 = vmatpush1.bf16.msra.mxu1 %v8088_v14  ;;  %2831 = vmatpush1.bf16.msra.mxu0 %v8109_v15  ;;  %11508 = vst [vmem:[#allocation23_spill] sm:$0xff] %v9715_v38 }
 0x155   : > { %3668 = vmatprep.subr.bf16.mxu1 %v8096_v16  ;;  %3047 = vmatprep.subr.bf16.mxu0 %v8117_v17 }
 0x158   : > { %3669 = vmatpush1.bf16.msra.mxu1 %v8094_v18 }
 0x159   : > { %3670 = vmatprep.subr.bf16.mxu1 %v8102_v19 }
 0x15a   : > { %6833 = vmatmul.mubr.msk.bf16.gmra.mrb[48].mxu1 %vm770_vm1, %v8060_v20 }
 0x15c   : > { %3671 = vmatpush1.bf16.msra.mxu1 %v8100_v22 }
 0x15d   : > { %3672 = vmatprep.subr.bf16.mxu1 %v8108_v23 }
 0x160   : > { %3673 = vmatpush1.bf16.msra.mxu1 %v8106_v25 }
 0x161   : > { %3674 = vmatprep.subr.bf16.mxu1 %v8114_v26 }
 0x164   : > { %3675 = vmatpush1.bf16.msra.mxu1 %v8112_v34 }
 0x165   : > { %v1178_v39 = vpop.f32.mrb[0].mxu0  ;;  %3873 = vmatprep.subr.bf16.mxu1 %v8120_v35 }
 0x166   : > { %v1272_v40 = vadd.f32 %v9247_v36, %v1178_v39  ;;  %v1180_v41 = vpop.f32.mrb[1].mxu0 }
 0x167   : > { %v1273_v42 = vadd.f32 %v9251_v37, %v1180_v41  ;;  %v1182_v43 = vpop.f32.mrb[2].mxu0 }
 0x168   : > { %v1274_v44 = vadd.f32 %v9247_v36, %v1182_v43  ;;  %v1184_v45 = vpop.f32.mrb[3].mxu0  ;;  %v1296_v47 = vmax.f32 %v1272_v40, 0.0  ;;  %v8115_v43 = vld [vmem:[%s11396_s3] ss:$8 sps:$4 sm:$0xff]  }
 0x169   : > { %v1275_v46 = vadd.f32 %v9251_v37, %v1184_v45  ;;  %v1297_v49 = vmax.f32 %v1273_v42, 0.0 }
 0x16a   : > { %v1298_v48 = vmax.f32 %v1274_v44, 0.0  ;;  %v8118_v44 = vld [vmem:[%s11397_s4] ss:$8 sps:$4 sm:$0xff]  }
 0x16b   : > { %v1299_v50 = vmax.f32 %v1275_v46, 0.0 }
 0x16c   : > { %v9257_v51 = vpack.c.bf16 %v1298_v48, %v1296_v47 }
 0x16d   : > { %v9259_v52 = vpack.c.bf16 %v1299_v50, %v1297_v49  ;;  %v1188_v53 = vpop.f32.mrb[4].mxu0  ;;  %v8123_v49 = vld [vmem:[%s11396_s3 + $0x14] ss:$8 sps:$4 sm:$0xff]  }
 0x16e   : > { %v1276_v54 = vadd.f32 %v9247_v36, %v1188_v53  ;;  %v1190_v55 = vpop.f32.mrb[5].mxu0  ;;  %v8126_v50 = vld [vmem:[%s11397_s4 + $0x14] ss:$8 sps:$4 sm:$0xff]  }
 0x16f   : > { %v1277_v56 = vadd.f32 %v9251_v37, %v1190_v55  ;;  %v1192_v57 = vpop.f32.mrb[6].mxu0 }
 0x170   : > { %v1278_v58 = vadd.f32 %v9247_v36, %v1192_v57  ;;  %v1194_v59 = vpop.f32.mrb[7].mxu0  ;;  %v1300_v61 = vmax.f32 %v1276_v54, 0.0 }
 0x171   : > { %v1279_v60 = vadd.f32 %v9251_v37, %v1194_v59  ;;  %v1301_v63 = vmax.f32 %v1277_v56, 0.0 }
 0x172   : > { %v1302_v62 = vmax.f32 %v1278_v58, 0.0 }
 0x173   : > { %v1303_v0 = vmax.f32 %v1279_v60, 0.0 }
 0x174   : > { %v9265_v1 = vpack.c.bf16 %v1302_v62, %v1300_v61 }
 0x175   : > { %v9267_v2 = vpack.c.bf16 %v1303_v0, %v1301_v63  ;;  %v1198_v3 = vpop.f32.mrb[8].mxu0  ;;  %v1613_v4 = vpop.f32.mrb[4].mxu1  ;;  %v8121_v63 = vld [vmem:[%s11396_s3 + $0x10] ss:$8 sps:$4 sm:$0xff]  }
 0x176   : > { %v1280_v5 = vadd.f32 %v9247_v36, %v1198_v3  ;;  %v1696_v6 = vadd.f32 %v1613_v4, %v9247_v36  ;;  %v1200_v7 = vpop.f32.mrb[9].mxu0  ;;  %v1615_v8 = vpop.f32.mrb[5].mxu1  ;;  %v8124_v0 = vld [vmem:[%s11397_s4 + $0x10] ss:$8 sps:$4 sm:$0xff]   ;;  %v8129_v3 = vld [vmem:[%s11396_s3 + $0x24] ss:$8 sps:$4 sm:$0xff]  }
 0x177   : > { %v1281_v9 = vadd.f32 %v9251_v37, %v1200_v7  ;;  %v1697_v10 = vadd.f32 %v1615_v8, %v9251_v37  ;;  %v1202_v11 = vpop.f32.mrb[10].mxu0  ;;  %v1617_v12 = vpop.f32.mrb[6].mxu1  ;;  %v8132_v8 = vld [vmem:[%s11397_s4 + $0x24] ss:$8 sps:$4 sm:$0xff]  }
 0x178   : > { %v1282_v13 = vadd.f32 %v9247_v36, %v1202_v11  ;;  %v1698_v14 = vadd.f32 %v1617_v12, %v9247_v36  ;;  %v1204_v15 = vpop.f32.mrb[11].mxu0  ;;  %v1619_v16 = vpop.f32.mrb[7].mxu1  ;;  %v1304_v19 = vmax.f32 %v1280_v5, 0.0  ;;  %v1720_v20 = vmax.f32 %v1696_v6, 0.0 }
 0x179   : > { %v1283_v17 = vadd.f32 %v9251_v37, %v1204_v15  ;;  %v1699_v18 = vadd.f32 %v1619_v16, %v9251_v37  ;;  %v1305_v23 = vmax.f32 %v1281_v9, 0.0  ;;  %v1721_v25 = vmax.f32 %v1697_v10, 0.0 }
 0x17a   : > { %v1306_v21 = vmax.f32 %v1282_v13, 0.0  ;;  %v1722_v22 = vmax.f32 %v1698_v14, 0.0 }
 0x17b   : > { %v1307_v26 = vmax.f32 %v1283_v17, 0.0  ;;  %v1723_v32 = vmax.f32 %v1699_v18, 0.0 }
 0x17c   : > { %v9277_v34 = vpack.c.bf16 %v1306_v21, %v1304_v19  ;;  %v9279_v35 = vpack.c.bf16 %v1722_v22, %v1720_v20  ;;  %v8127_v19 = vld [vmem:[%s11396_s3 + $0x20] ss:$8 sps:$4 sm:$0xff]  }
 0x17d   : > { %v9281_v39 = vpack.c.bf16 %v1307_v26, %v1305_v23  ;;  %v9283_v40 = vpack.c.bf16 %v1723_v32, %v1721_v25  ;;  %v1208_v41 = vpop.f32.mrb[12].mxu0  ;;  %v1623_v42 = vpop.f32.mrb[8].mxu1  ;;  %v8130_v20 = vld [vmem:[%s11397_s4 + $0x20] ss:$8 sps:$4 sm:$0xff]   ;;  %v8135_v26 = vld [vmem:[%s11396_s3 + $0x34] ss:$8 sps:$4 sm:$0xff]  }
 0x17e   : > { %v1284_v45 = vadd.f32 %v9247_v36, %v1208_v41  ;;  %v1700_v46 = vadd.f32 %v1623_v42, %v9247_v36  ;;  %v1210_v47 = vpop.f32.mrb[13].mxu0  ;;  %v1625_v48 = vpop.f32.mrb[9].mxu1  ;;  %v8138_v32 = vld [vmem:[%s11397_s4 + $0x34] ss:$8 sps:$4 sm:$0xff]  }
 0x17f   : > { %v1285_v53 = vadd.f32 %v9251_v37, %v1210_v47  ;;  %v1701_v54 = vadd.f32 %v1625_v48, %v9251_v37  ;;  %v1212_v55 = vpop.f32.mrb[14].mxu0  ;;  %v1627_v56 = vpop.f32.mrb[10].mxu1  ;;  %6886 = vmatprep.mubr.msk.bf16.mxu0 %vm2787_vm2, %v9283_v40  ;;  %7034 = vmatprep.mubr.msk.bf16.mxu1 %vm2787_vm2, %v9283_v40 }
 0x180   : > { %v1286_v57 = vadd.f32 %v9247_v36, %v1212_v55  ;;  %v1702_v58 = vadd.f32 %v1627_v56, %v9247_v36  ;;  %v1214_v59 = vpop.f32.mrb[15].mxu0  ;;  %v1629_v60 = vpop.f32.mrb[11].mxu1  ;;  %2839 = vmatmul.mubr.bf16.vlgmr.msra.gmra.mrb[48].mxu0 %v9279_v35  ;;  %3683 = vmatmul.mubr.bf16.vlgmr.msra.gmra.mrb[52].mxu1 %v9279_v35  ;;  %v1308_v4 = vmax.f32 %v1284_v45, 0.0  ;;  %v1724_v5 = vmax.f32 %v1700_v46, 0.0  ;;  %v8141_v55 = vld [vmem:[%s11396_s3 + $0x44] ss:$8 sps:$4 sm:$0xff]  }
 0x181   : > { %v1287_v61 = vadd.f32 %v9251_v37, %v1214_v59  ;;  %v1703_v62 = vadd.f32 %v1629_v60, %v9251_v37  ;;  %3048 = vmatpush1.bf16.msra.mxu0 %v8115_v43  ;;  %3874 = vmatpush1.bf16.msra.mxu1 %v8118_v44  ;;  %v1309_v9 = vmax.f32 %v1285_v53, 0.0  ;;  %v1725_v10 = vmax.f32 %v1701_v54, 0.0  ;;  %v8133_v53 = vld [vmem:[%s11396_s3 + $0x30] ss:$8 sps:$4 sm:$0xff]   ;;  %v8144_v60 = vld [vmem:[%s11397_s4 + $0x44] ss:$8 sps:$4 sm:$0xff]  }
 0x182   : > { %v1310_v6 = vmax.f32 %v1286_v57, 0.0  ;;  %v1726_v7 = vmax.f32 %v1702_v58, 0.0  ;;  %3049 = vmatprep.subr.bf16.mxu0 %v8123_v49  ;;  %3875 = vmatprep.subr.bf16.mxu1 %v8126_v50  ;;  %v8136_v54 = vld [vmem:[%s11397_s4 + $0x30] ss:$8 sps:$4 sm:$0xff]  }
 0x183   : > { %v1311_v11 = vmax.f32 %v1287_v61, 0.0  ;;  %v1727_v12 = vmax.f32 %v1703_v62, 0.0 }
 0x184   : > { %v9323_v13 = vpack.c.bf16 %v1310_v6, %v1308_v4  ;;  %v9325_v14 = vpack.c.bf16 %v1726_v7, %v1724_v5 }
 0x185   : > { %v9327_v15 = vpack.c.bf16 %v1311_v11, %v1309_v9  ;;  %v9329_v16 = vpack.c.bf16 %v1727_v12, %v1725_v10  ;;  %3050 = vmatpush1.bf16.msra.mxu0 %v8121_v63  ;;  %3876 = vmatpush1.bf16.msra.mxu1 %v8124_v0  ;;  %v1218_v17 = vpop.f32.mrb[16].mxu0  ;;  %v1633_v18 = vpop.f32.mrb[12].mxu1  ;;  %v8139_v9 = vld [vmem:[%s11396_s3 + $0x40] ss:$8 sps:$4 sm:$0xff]  }
 0x186   : > { %11489 = vst [vmem:[#allocation4_spill] sm:$0xff] %v9325_v14  ;;  %v1288_v21 = vadd.f32 %v9247_v36, %v1218_v17  ;;  %v1704_v22 = vadd.f32 %v1633_v18, %v9247_v36  ;;  %v1220_v23 = vpop.f32.mrb[17].mxu0  ;;  %v1635_v25 = vpop.f32.mrb[13].mxu1  ;;  %3051 = vmatprep.subr.bf16.mxu0 %v8129_v3  ;;  %3877 = vmatprep.subr.bf16.mxu1 %v8132_v8  ;;  %v8142_v10 = vld [vmem:[%s11397_s4 + $0x40] ss:$8 sps:$4 sm:$0xff]  }
 0x187   : > { %v1289_v41 = vadd.f32 %v9251_v37, %v1220_v23  ;;  %v1705_v42 = vadd.f32 %v1635_v25, %v9251_v37  ;;  %v1222_v43 = vpop.f32.mrb[18].mxu0  ;;  %v1637_v44 = vpop.f32.mrb[14].mxu1  ;;  %6887 = vmatprep.mubr.msk.bf16.mxu0 %vm2787_vm2, %v9329_v16  ;;  %7035 = vmatprep.mubr.msk.bf16.mxu1 %vm2787_vm2, %v9329_v16 }
 0x188   : > { %v1290_v45 = vadd.f32 %v9247_v36, %v1222_v43  ;;  %v1706_v46 = vadd.f32 %v1637_v44, %v9247_v36  ;;  %v1224_v47 = vpop.f32.mrb[19].mxu0  ;;  %v1639_v48 = vpop.f32.mrb[15].mxu1  ;;  %2849 = vmatmul.mubr.bf16.gmra.mrb[52].mxu0 %v9325_v14  ;;  %3693 = vmatmul.mubr.bf16.gmra.mrb[56].mxu1 %v9325_v14  ;;  %v1312_v56 = vmax.f32 %v1288_v21, 0.0  ;;  %v1728_v57 = vmax.f32 %v1704_v22, 0.0 }
 0x189   : > { %v1291_v49 = vadd.f32 %v9251_v37, %v1224_v47  ;;  %v1707_v50 = vadd.f32 %v1639_v48, %v9251_v37  ;;  %3052 = vmatpush1.bf16.msra.mxu0 %v8127_v19  ;;  %3878 = vmatpush1.bf16.msra.mxu1 %v8130_v20  ;;  %v1313_v61 = vmax.f32 %v1289_v41, 0.0  ;;  %v1729_v62 = vmax.f32 %v1705_v42, 0.0  ;;  %v8147_v19 = vld [vmem:[%s11396_s3 + $0x54] ss:$8 sps:$4 sm:$0xff]  }
 0x18a   : > { %v1314_v58 = vmax.f32 %v1290_v45, 0.0  ;;  %v1730_v59 = vmax.f32 %v1706_v46, 0.0  ;;  %3053 = vmatprep.subr.bf16.mxu0 %v8135_v26  ;;  %3879 = vmatprep.subr.bf16.mxu1 %v8138_v32  ;;  %v8150_v20 = vld [vmem:[%s11397_s4 + $0x54] ss:$8 sps:$4 sm:$0xff]   ;;  %v8148_v45 = vld [vmem:[%s11397_s4 + $0x50] ss:$8 sps:$4 sm:$0xff]  }
 0x18b   : > { %v1315_v63 = vmax.f32 %v1291_v49, 0.0  ;;  %v1731_v0 = vmax.f32 %v1707_v50, 0.0  ;;  %v8156_v49 = vld [vmem:[%s11397_s4 + $0x64] ss:$8 sps:$4 sm:$0xff]  }
 0x18c   : > { %v9369_v3 = vpack.c.bf16 %v1314_v58, %v1312_v56  ;;  %v9371_v4 = vpack.c.bf16 %v1730_v59, %v1728_v57  ;;  %v8151_v58 = vld [vmem:[%s11396_s3 + $0x60] ss:$8 sps:$4 sm:$0xff]  }
 0x18d   : > { %v9373_v5 = vpack.c.bf16 %v1315_v63, %v1313_v61  ;;  %v9375_v6 = vpack.c.bf16 %v1731_v0, %v1729_v62  ;;  %3054 = vmatpush1.bf16.msra.mxu0 %v8133_v53  ;;  %3880 = vmatpush1.bf16.msra.mxu1 %v8136_v54  ;;  %v1228_v7 = vpop.f32.mrb[20].mxu0  ;;  %v1643_v8 = vpop.f32.mrb[16].mxu1  ;;  %v9429_v63 = vld [vmem:[%s11397_s4 + $0x60] ss:$8 sps:$4 sm:$0xff]  }
 0x18e   : > { %11490 = vst [vmem:[#allocation5_spill] sm:$0xff] %v9371_v4  ;;  %v7569_v11 = vadd.f32 %v1228_v7, %v9022_v27  ;;  %v1708_v12 = vadd.f32 %v1643_v8, %v9247_v36  ;;  %v1230_v17 = vpop.f32.mrb[21].mxu0  ;;  %v1645_v18 = vpop.f32.mrb[17].mxu1  ;;  %3055 = vmatprep.subr.bf16.mxu0 %v8141_v55  ;;  %3881 = vmatprep.subr.bf16.mxu1 %v8144_v60  ;;  %v9435_v8 = vld [vmem:[%s11396_s3 + $0x74] ss:$8 sps:$4 sm:$0xff]  }
 0x18f   : > { %11491 = vst [vmem:[#allocation6_spill] sm:$0xff] %v9375_v6  ;;  %v7570_v21 = vadd.f32 %v1230_v17, %v9024_v28  ;;  %v1709_v22 = vadd.f32 %v1645_v18, %v9251_v37  ;;  %v1232_v23 = vpop.f32.mrb[22].mxu0  ;;  %v1647_v27 = vpop.f32.mrb[18].mxu1  ;;  %6888 = vmatprep.mubr.msk.bf16.mxu0 %vm2787_vm2, %v9375_v6  ;;  %7036 = vmatprep.mubr.msk.bf16.mxu1 %vm2787_vm2, %v9375_v6 }
 0x190   : > { %v1292_v25 = vadd.f32 %v7569_v11, %v9247_v36  ;;  %v7571_v26 = vadd.f32 %v1232_v23, %v9026_v29  ;;  %v1710_v32 = vadd.f32 %v1647_v27, %v9247_v36  ;;  %v1234_v41 = vpop.f32.mrb[23].mxu0  ;;  %v1649_v42 = vpop.f32.mrb[19].mxu1  ;;  %2859 = vmatmul.mubr.bf16.gmra.mrb[56].mxu0 %v9371_v4  ;;  %3703 = vmatmul.mubr.bf16.gmra.mrb[60].mxu1 %v9371_v4  ;;  %v8145_v29 = vld [vmem:[%s11396_s3 + $0x50] ss:$8 sps:$4 sm:$0xff]   ;;  %v1732_v46 = vmax.f32 %v1708_v12, 0.0 }
 0x191   : > { %v1293_v28 = vadd.f32 %v7570_v21, %v9251_v37  ;;  %v7572_v43 = vadd.f32 %v1234_v41, %v9028_v30  ;;  %v1711_v44 = vadd.f32 %v1649_v42, %v9251_v37  ;;  %3056 = vmatpush1.bf16.msra.mxu0 %v8139_v9  ;;  %3882 = vmatpush1.bf16.msra.mxu1 %v8142_v10  ;;  %v8153_v30 = vld [vmem:[%s11396_s3 + $0x64] ss:$8 sps:$4 sm:$0xff]   ;;  %v1733_v50 = vmax.f32 %v1709_v22, 0.0  ;;  %v9440_v9 = vld [vmem:[%s11397_s4 + $0x74] ss:$8 sps:$4 sm:$0xff]  }
 0x192   : > { %v1294_v47 = vadd.f32 %v7571_v26, %v9247_v36  ;;  %v1734_v48 = vmax.f32 %v1710_v32, 0.0  ;;  %3057 = vmatprep.subr.bf16.mxu0 %v8147_v19  ;;  %3883 = vmatprep.subr.bf16.mxu1 %v8150_v20  ;;  %v1316_v55 = vmax.f32 %v1292_v25, 0.0  ;;  %v9459_v21 = vld [vmem:[%s11396_s3 + $0x70] ss:$8 sps:$4 sm:$0xff]   ;;  %v9471_v25 = vld [vmem:[%s11396_s3 + $0x84] ss:$8 sps:$4 sm:$0xff]  }
 0x193   : > { %v1295_v53 = vadd.f32 %v7572_v43, %v9251_v37  ;;  %v1735_v54 = vmax.f32 %v1711_v44, 0.0  ;;  %v1317_v59 = vmax.f32 %v1293_v28, 0.0  ;;  %v9464_v22 = vld [vmem:[%s11397_s4 + $0x70] ss:$8 sps:$4 sm:$0xff]   ;;  %v9476_v26 = vld [vmem:[%s11397_s4 + $0x84] ss:$8 sps:$4 sm:$0xff]  }
 0x194   : > { %v1318_v56 = vmax.f32 %v1294_v47, 0.0  ;;  %v9419_v57 = vpack.c.bf16 %v1734_v48, %v1732_v46  ;;  %v9487_v44 = vld [vmem:[%s11396_s3 + $0x80] ss:$8 sps:$4 sm:$0xff]   ;;  %v9500_v47 = vld [vmem:[%s11396_s3 + $0x94] ss:$8 sps:$4 sm:$0xff]  }
 0x195   : > { %v1319_v60 = vmax.f32 %v1295_v53, 0.0  ;;  %v9424_v61 = vpack.c.bf16 %v1735_v54, %v1733_v50  ;;  %3058 = vmatpush1.bf16.msra.mxu0 %v8145_v29  ;;  %3884 = vmatpush1.bf16.msra.mxu1 %v8148_v45  ;;  %v1653_v62 = vpop.f32.mrb[20].mxu1  ;;  %v9492_v29 = vld [vmem:[%s11397_s4 + $0x80] ss:$8 sps:$4 sm:$0xff]   ;;  %v9505_v48 = vld [vmem:[%s11397_s4 + $0x94] ss:$8 sps:$4 sm:$0xff]  }
 0x196   : > { %11492 = vst [vmem:[#allocation7_spill] sm:$0xff] %v9419_v57  ;;  %v1712_v0 = vadd.f32 %v1653_v62, %v9247_v36  ;;  %v1655_v7 = vpop.f32.mrb[21].mxu1  ;;  %3059 = vmatprep.subr.bf16.mxu0 %v8153_v30  ;;  %3885 = vmatprep.subr.bf16.mxu1 %v8156_v49  ;;  %v9442_v10 = vpack.c.bf16 %v1318_v56, %v1316_v55  ;;  %v9521_v55 = vld [vmem:[%s11396_s3 + $0x90] ss:$8 sps:$4 sm:$0xff]   ;;  %v9538_v62 = vld [vmem:[%s11397_s4 + $0xa4] ss:$8 sps:$4 sm:$0xff]  }
 0x197   : > { %11493 = vst [vmem:[#allocation8_spill] sm:$0xff] %v9424_v61  ;;  %v9444_v11 = vpack.c.bf16 %v1319_v60, %v1317_v59  ;;  %v1713_v12 = vadd.f32 %v1655_v7, %v9251_v37  ;;  %v1657_v17 = vpop.f32.mrb[22].mxu1  ;;  %6889 = vmatprep.mubr.msk.bf16.mxu0 %vm2787_vm2, %v9424_v61  ;;  %7037 = vmatprep.mubr.msk.bf16.mxu1 %vm2787_vm2, %v9424_v61  ;;  %v9526_v56 = vld [vmem:[%s11397_s4 + $0x90] ss:$8 sps:$4 sm:$0xff]   ;;  %v9533_v60 = vld [vmem:[%s11396_s3 + $0xa4] ss:$8 sps:$4 sm:$0xff]  }
 0x198   : > { %v1714_v18 = vadd.f32 %v1657_v17, %v9247_v36  ;;  %v1659_v19 = vpop.f32.mrb[23].mxu1  ;;  %2869 = vmatmul.mubr.bf16.gmra.mrb[60].mxu0 %v9419_v57  ;;  %3713 = vmatmul.mubr.bf16.gmra.mrb[64].mxu1 %v9419_v57  ;;  %v1736_v23 = vmax.f32 %v1712_v0, 0.0  ;;  %v9769_v57 = vld [vmem:[%s11396_s3 + $0x1f0] ss:$8 sps:$4 sm:$0xff]  }
 0x199   : > { %v1715_v20 = vadd.f32 %v1659_v19, %v9251_v37  ;;  %3060 = vmatpush1.bf16.msra.mxu0 %v8151_v58  ;;  %3886 = vmatpush1.bf16.msra.mxu1 %v9429_v63  ;;  %v1737_v32 = vmax.f32 %v1713_v12, 0.0  ;;  %v9554_v19 = vld [vmem:[%s11397_s4 + $0xa0] ss:$8 sps:$4 sm:$0xff]   ;;  %11516 = vst [vmem:[#allocation31_spill] sm:$0xff] %v9769_v57  ;;  %v9774_v61 = vld [vmem:[%s11397_s4 + $0x1f0] ss:$8 sps:$4 sm:$0xff]  }
 0x19a   : > { %v1738_v27 = vmax.f32 %v1714_v18, 0.0  ;;  %3061 = vmatprep.subr.bf16.mxu0 %v9435_v8  ;;  %3887 = vmatprep.subr.bf16.mxu1 %v9440_v9  ;;  %v9549_v18 = vld [vmem:[%s11396_s3 + $0xa0] ss:$8 sps:$4 sm:$0xff]   ;;  %11517 = vst [vmem:[#allocation32_spill] sm:$0xff] %v9774_v61 }
 0x19b   : > { %v1739_v41 = vmax.f32 %v1715_v20, 0.0  ;;  %v9565_v20 = vld [vmem:[%s11396_s3 + $0xb4] ss:$8 sps:$4 sm:$0xff]  }
 0x19c   : > { %v9478_v42 = vpack.c.bf16 %v1738_v27, %v1736_v23  ;;  %v9570_v23 = vld [vmem:[%s11397_s4 + $0xb4] ss:$8 sps:$4 sm:$0xff]   ;;  %v9579_v27 = vld [vmem:[%s11396_s3 + $0xb0] ss:$8 sps:$4 sm:$0xff]  }
 0x19d   : > { %v9480_v28 = vpack.c.bf16 %v1739_v41, %v1737_v32  ;;  %3062 = vmatpush1.bf16.msra.mxu0 %v9459_v21  ;;  %3888 = vmatpush1.bf16.msra.mxu1 %v9464_v22  ;;  %v1663_v43 = vpop.f32.mrb[24].mxu1  ;;  %v9584_v32 = vld [vmem:[%s11397_s4 + $0xb0] ss:$8 sps:$4 sm:$0xff]   ;;  %v9593_v41 = vld [vmem:[%s11396_s3 + $0xc4] ss:$8 sps:$4 sm:$0xff]  }
 0x19e   : > { %11494 = vst [vmem:[#allocation9_spill] sm:$0xff] %v9478_v42  ;;  %v1716_v45 = vadd.f32 %v1663_v43, %v9247_v36  ;;  %v1665_v46 = vpop.f32.mrb[25].mxu1  ;;  %3063 = vmatprep.subr.bf16.mxu0 %v9471_v25  ;;  %3889 = vmatprep.subr.bf16.mxu1 %v9476_v26  ;;  %v9598_v43 = vld [vmem:[%s11397_s4 + $0xc4] ss:$8 sps:$4 sm:$0xff]  }
 0x19f   : > { %11495 = vst [vmem:[#allocation10_spill] sm:$0xff] %v9480_v28  ;;  %v1717_v30 = vadd.f32 %v1665_v46, %v9251_v37  ;;  %v1667_v49 = vpop.f32.mrb[26].mxu1  ;;  %6890 = vmatprep.mubr.msk.bf16.mxu0 %vm2787_vm2, %v9480_v28  ;;  %7038 = vmatprep.mubr.msk.bf16.mxu1 %vm2787_vm2, %v9480_v28  ;;  %v9619_v46 = vld [vmem:[%s11396_s3 + $0x1a4] ss:$8 sps:$4 sm:$0xff]   ;;  %v9756_v28 = vld [vmem:[%s11397_s4 + $0x1f4] ss:$8 sps:$4 sm:$0xff]  }
 0x1a0   : > { %v1718_v50 = vadd.f32 %v1667_v49, %v9247_v36  ;;  %v1669_v53 = vpop.f32.mrb[27].mxu1  ;;  %2879 = vmatmul.mubr.bf16.gmra.mrb[64].mxu0 %v9478_v42  ;;  %3723 = vmatmul.mubr.bf16.gmra.mrb[68].mxu1 %v9478_v42  ;;  %v1740_v58 = vmax.f32 %v1716_v45, 0.0  ;;  %v9612_v45 = vld [vmem:[%s11397_s4 + $0xc0] ss:$8 sps:$4 sm:$0xff]   ;;  %v9751_v42 = vld [vmem:[%s11396_s3 + $0x1f4] ss:$8 sps:$4 sm:$0xff]  }
 0x1a1   : > { %v1719_v54 = vadd.f32 %v1669_v53, %v9251_v37  ;;  %3064 = vmatpush1.bf16.msra.mxu0 %v9487_v44  ;;  %3890 = vmatpush1.bf16.msra.mxu1 %v9492_v29  ;;  %v1741_v0 = vmax.f32 %v1717_v30, 0.0  ;;  %v9624_v30 = vld [vmem:[%s11397_s4 + $0x1a4] ss:$8 sps:$4 sm:$0xff]   ;;  %v9631_v49 = vld [vmem:[%s11396_s3 + $0x1a0] ss:$8 sps:$4 sm:$0xff]   ;;  %11514 = vst [vmem:[#allocation29_spill] sm:$0xff] %v9751_v42 }
 0x1a2   : > { %v1742_v59 = vmax.f32 %v1718_v50, 0.0  ;;  %3065 = vmatprep.subr.bf16.mxu0 %v9500_v47  ;;  %3891 = vmatprep.subr.bf16.mxu1 %v9505_v48  ;;  %v9637_v50 = vld [vmem:[%s11397_s4 + $0x1a0] ss:$8 sps:$4 sm:$0xff]   ;;  %v9643_v53 = vld [vmem:[%s11396_s3 + $0x1b4] ss:$8 sps:$4 sm:$0xff]   ;;  %11515 = vst [vmem:[#allocation30_spill] sm:$0xff] %v9756_v28 }
 0x1a3   : > { %v1743_v7 = vmax.f32 %v1719_v54, 0.0  ;;  %11498 = vst [vmem:[#allocation13_spill] sm:$0xff] %v9643_v53  ;;  %v9648_v54 = vld [vmem:[%s11397_s4 + $0x1b4] ss:$8 sps:$4 sm:$0xff]  }
 0x1a4   : > { %v9540_v12 = vpack.c.bf16 %v1742_v59, %v1740_v58  ;;  %11499 = vst [vmem:[#allocation14_spill] sm:$0xff] %v9648_v54  ;;  %v9661_v58 = vld [vmem:[%s11396_s3 + $0x1b0] ss:$8 sps:$4 sm:$0xff]  }
 0x1a5   : > { %v9542_v17 = vpack.c.bf16 %v1743_v7, %v1741_v0  ;;  %3066 = vmatpush1.bf16.msra.mxu0 %v9521_v55  ;;  %3892 = vmatpush1.bf16.msra.mxu1 %v9526_v56  ;;  %11500 = vst [vmem:[#allocation15_spill] sm:$0xff] %v9661_v58  ;;  %v9666_v59 = vld [vmem:[%s11397_s4 + $0x1b0] ss:$8 sps:$4 sm:$0xff]   ;;  %v9685_v0 = vld [vmem:[%s11396_s3 + $0x1c0] ss:$8 sps:$4 sm:$0xff]  }
 0x1a6   : > { %11496 = vst [vmem:[#allocation11_spill] sm:$0xff] %v9540_v12  ;;  %3067 = vmatprep.subr.bf16.mxu0 %v9533_v60  ;;  %3893 = vmatprep.subr.bf16.mxu1 %v9538_v62  ;;  %11501 = vst [vmem:[#allocation16_spill] sm:$0xff] %v9666_v59  ;;  %v9690_v7 = vld [vmem:[%s11397_s4 + $0x1c0] ss:$8 sps:$4 sm:$0xff]  }
 0x1a7   : > { %11497 = vst [vmem:[#allocation12_spill] sm:$0xff] %v9542_v17  ;;  %6891 = vmatprep.mubr.msk.bf16.mxu0 %vm2787_vm2, %v9542_v17  ;;  %7039 = vmatprep.mubr.msk.bf16.mxu1 %vm2787_vm2, %v9542_v17  ;;  %11504 = vst [vmem:[#allocation19_spill] sm:$0xff] %v9685_v0  ;;  %v9744_v17 = vld [vmem:[%s11397_s4 + $0x1e0] ss:$8 sps:$4 sm:$0xff]  }
 0x1a8   : > { %2889 = vmatmul.mubr.bf16.gmra.mrb[68].mxu0 %v9540_v12  ;;  %3733 = vmatmul.mubr.bf16.gmra.mrb[72].mxu1 %v9540_v12  ;;  %11505 = vst [vmem:[#allocation20_spill] sm:$0xff] %v9690_v7  ;;  %v9739_v12 = vld [vmem:[%s11396_s3 + $0x1e0] ss:$8 sps:$4 sm:$0xff]   ;;  %11513 = vst [vmem:[#allocation28_spill] sm:$0xff] %v9744_v17 }
 0x1a9   : > { %3068 = vmatpush1.bf16.msra.mxu0 %v9549_v18  ;;  %3894 = vmatpush1.bf16.msra.mxu1 %v9554_v19  ;;  %11512 = vst [vmem:[#allocation27_spill] sm:$0xff] %v9739_v12 }
 0x1aa   : > { %6918 = vmatprep.mubr.msk.bf16.mxu0 %vm2787_vm2, %v9259_v52  ;;  %7066 = vmatprep.mubr.msk.bf16.mxu1 %vm2787_vm2, %v9259_v52  ;;  %v9607_v52 = vld [vmem:[%s11396_s3 + $0xc0] ss:$8 sps:$4 sm:$0xff]  }
 0x1ab   : > { %3069 = vmatprep.subr.bf16.mxu0 %v9565_v20  ;;  %3895 = vmatprep.subr.bf16.mxu1 %v9570_v23 }
 0x1ad   : > { %3070 = vmatpush1.bf16.msra.mxu0 %v9579_v27  ;;  %3896 = vmatpush1.bf16.msra.mxu1 %v9584_v32 }
 0x1ae   : > { %3071 = vmatprep.subr.bf16.mxu0 %v9593_v41  ;;  %3897 = vmatprep.subr.bf16.mxu1 %v9598_v43 }
 0x1b1   : > { %3072 = vmatpush1.bf16.msra.mxu0 %v9607_v52  ;;  %3898 = vmatpush1.bf16.msra.mxu1 %v9612_v45 }
 0x1b2   : > { %3315 = vmatprep.subr.bf16.mxu0 %v9619_v46  ;;  %4123 = vmatprep.subr.bf16.mxu1 %v9624_v30 }
 0x1b4   : > { %3080 = vmatmul.mubr.bf16.vlgmr.msra.gmra.mrb[48].mxu0 %v9257_v51  ;;  %3906 = vmatmul.mubr.bf16.vlgmr.msra.gmra.mrb[52].mxu1 %v9257_v51  ;;  %v9673_v51 = vld [vmem:[%s11396_s3 + $0x1c4] ss:$8 sps:$4 sm:$0xff]  }
 0x1b5   : > { %6919 = vmatprep.mubr.msk.bf16.mxu0 %vm2787_vm2, %v9267_v2  ;;  %7067 = vmatprep.mubr.msk.bf16.mxu1 %vm2787_vm2, %v9267_v2  ;;  %11502 = vst [vmem:[#allocation17_spill] sm:$0xff] %v9673_v51  ;;  %v9678_v2 = vld [vmem:[%s11397_s4 + $0x1c4] ss:$8 sps:$4 sm:$0xff]  }
 0x1b6   : > { %3316 = vmatpush1.bf16.msra.mxu0 %v9631_v49  ;;  %4124 = vmatpush1.bf16.msra.mxu1 %v9637_v50  ;;  %11503 = vst [vmem:[#allocation18_spill] sm:$0xff] %v9678_v2 }
 0x1b7   : > { %3317 = vmatprep.subr.bf16.mxu0 %v9643_v53  ;;  %4125 = vmatprep.subr.bf16.mxu1 %v9648_v54 }
 0x1ba   : > { %3318 = vmatpush1.bf16.msra.mxu0 %v9661_v58  ;;  %4126 = vmatpush1.bf16.msra.mxu1 %v9666_v59 }
 0x1bb   : > { %3319 = vmatprep.subr.bf16.mxu0 %v9673_v51  ;;  %4127 = vmatprep.subr.bf16.mxu1 %v9678_v2 }
 0x1bc   : > { %3090 = vmatmul.mubr.bf16.gmra.mrb[52].mxu0 %v9265_v1  ;;  %3916 = vmatmul.mubr.bf16.gmra.mrb[56].mxu1 %v9265_v1  ;;  %v9727_v1 = vld [vmem:[%s11396_s3 + $0x1e4] ss:$8 sps:$4 sm:$0xff]  }
 0x1bd   : > { %6920 = vmatprep.mubr.msk.bf16.mxu0 %vm2787_vm2, %v9281_v39  ;;  %7068 = vmatprep.mubr.msk.bf16.mxu1 %vm2787_vm2, %v9281_v39  ;;  %11510 = vst [vmem:[#allocation25_spill] sm:$0xff] %v9727_v1  ;;  %v9732_v39 = vld [vmem:[%s11397_s4 + $0x1e4] ss:$8 sps:$4 sm:$0xff]  }
 0x1be   : > { %3320 = vmatpush1.bf16.msra.mxu0 %v9685_v0  ;;  %4128 = vmatpush1.bf16.msra.mxu1 %v9690_v7  ;;  %11511 = vst [vmem:[#allocation26_spill] sm:$0xff] %v9732_v39 }
 0x1bf   : > { %3321 = vmatprep.subr.bf16.mxu0 %v9697_v33  ;;  %4129 = vmatprep.subr.bf16.mxu1 %v9702_v31 }
 0x1c2   : > { %3322 = vmatpush1.bf16.msra.mxu0 %v9715_v38  ;;  %4130 = vmatpush1.bf16.msra.mxu1 %v9720_v24 }
 0x1c3   : > { %3323 = vmatprep.subr.bf16.mxu0 %v9727_v1  ;;  %4131 = vmatprep.subr.bf16.mxu1 %v9732_v39 }
 0x1c4   : > { %3100 = vmatmul.mubr.bf16.gmra.mrb[56].mxu0 %v9277_v34  ;;  %3926 = vmatmul.mubr.bf16.gmra.mrb[60].mxu1 %v9277_v34  ;;  %v9781_v34 = vld [vmem:[%s11396_s3 + $0x204] ss:$8 sps:$4 sm:$0xff]  }
 0x1c5   : > { %6921 = vmatprep.mubr.msk.bf16.mxu0 %vm2787_vm2, %v9327_v15  ;;  %7069 = vmatprep.mubr.msk.bf16.mxu1 %vm2787_vm2, %v9327_v15  ;;  %11518 = vst [vmem:[#allocation33_spill] sm:$0xff] %v9781_v34  ;;  %v9786_v15 = vld [vmem:[%s11397_s4 + $0x204] ss:$8 sps:$4 sm:$0xff]  }
 0x1c6   : > { %3324 = vmatpush1.bf16.msra.mxu0 %v9739_v12  ;;  %4132 = vmatpush1.bf16.msra.mxu1 %v9744_v17  ;;  %11519 = vst [vmem:[#allocation34_spill] sm:$0xff] %v9786_v15 }
 0x1c7   : > { %3325 = vmatprep.subr.bf16.mxu0 %v9751_v42  ;;  %4133 = vmatprep.subr.bf16.mxu1 %v9756_v28  ;;  %v9793_v42 = vld [vmem:[%s11396_s3 + $0x200] ss:$8 sps:$4 sm:$0xff]  }
 0x1c8   : > { %11520 = vst [vmem:[#allocation35_spill] sm:$0xff] %v9793_v42  ;;  %v9798_v28 = vld [vmem:[%s11397_s4 + $0x200] ss:$8 sps:$4 sm:$0xff]  }
 0x1c9   : > { %11521 = vst [vmem:[#allocation36_spill] sm:$0xff] %v9798_v28 }
 0x1ca   : > { %3326 = vmatpush1.bf16.msra.mxu0 %v9769_v57  ;;  %4134 = vmatpush1.bf16.msra.mxu1 %v9774_v61  ;;  %v9805_v57 = vld [vmem:[%s11396_s3 + $0x214] ss:$8 sps:$4 sm:$0xff]  }
 0x1cb   : > { %3327 = vmatprep.subr.bf16.mxu0 %v9781_v34  ;;  %4135 = vmatprep.subr.bf16.mxu1 %v9786_v15  ;;  %11522 = vst [vmem:[#allocation37_spill] sm:$0xff] %v9805_v57  ;;  %v9810_v61 = vld [vmem:[%s11397_s4 + $0x214] ss:$8 sps:$4 sm:$0xff]   ;;  %v9823_v15 = vld [vmem:[%s11396_s3 + $0x210] ss:$8 sps:$4 sm:$0xff]  }
 0x1cc   : > { %11523 = vst [vmem:[#allocation38_spill] sm:$0xff] %v9810_v61  ;;  %3110 = vmatmul.mubr.bf16.gmra.mrb[60].mxu0 %v9323_v13  ;;  %3936 = vmatmul.mubr.bf16.gmra.mrb[64].mxu1 %v9323_v13  ;;  %11524 = vst [vmem:[#allocation39_spill] sm:$0xff] %v9823_v15  ;;  %v9828_v34 = vld [vmem:[%s11397_s4 + $0x210] ss:$8 sps:$4 sm:$0xff]   ;;  %v9835_v13 = vld [vmem:[%s11396_s3 + $0x224] ss:$8 sps:$4 sm:$0xff]  }
 0x1cd   : > { %6922 = vmatprep.mubr.msk.bf16.mxu0 %vm2787_vm2, %v9373_v5  ;;  %7070 = vmatprep.mubr.msk.bf16.mxu1 %vm2787_vm2, %v9373_v5  ;;  %11525 = vst [vmem:[#allocation40_spill] sm:$0xff] %v9828_v34  ;;  %11526 = vst [vmem:[#allocation41_spill] sm:$0xff] %v9835_v13  ;;  %v9840_v5 = vld [vmem:[%s11397_s4 + $0x224] ss:$8 sps:$4 sm:$0xff]  }
 0x1ce   : > { %3328 = vmatpush1.bf16.msra.mxu0 %v9793_v42  ;;  %4136 = vmatpush1.bf16.msra.mxu1 %v9798_v28  ;;  %11527 = vst [vmem:[#allocation42_spill] sm:$0xff] %v9840_v5 }
 0x1cf   : > { %3329 = vmatprep.subr.bf16.mxu0 %v9805_v57  ;;  %4137 = vmatprep.subr.bf16.mxu1 %v9810_v61  ;;  %v9847_v57 = vld [vmem:[%s11396_s3 + $0x220] ss:$8 sps:$4 sm:$0xff]  }
 0x1d0   : > { %11528 = vst [vmem:[#allocation43_spill] sm:$0xff] %v9847_v57  ;;  %v9852_v61 = vld [vmem:[%s11397_s4 + $0x220] ss:$8 sps:$4 sm:$0xff]  }
 0x1d1   : > { %11529 = vst [vmem:[#allocation44_spill] sm:$0xff] %v9852_v61 }
 0x1d2   : > { %3330 = vmatpush1.bf16.msra.mxu0 %v9823_v15  ;;  %4138 = vmatpush1.bf16.msra.mxu1 %v9828_v34  ;;  %v9859_v15 = vld [vmem:[%s11396_s3 + $0x234] ss:$8 sps:$4 sm:$0xff]  }
 0x1d3   : > { %3331 = vmatprep.subr.bf16.mxu0 %v9835_v13  ;;  %4139 = vmatprep.subr.bf16.mxu1 %v9840_v5  ;;  %11530 = vst [vmem:[#allocation45_spill] sm:$0xff] %v9859_v15  ;;  %v9864_v34 = vld [vmem:[%s11397_s4 + $0x234] ss:$8 sps:$4 sm:$0xff]   ;;  %v9877_v5 = vld [vmem:[%s11396_s3 + $0x230] ss:$8 sps:$4 sm:$0xff]  }
 0x1d4   : > { %11531 = vst [vmem:[#allocation46_spill] sm:$0xff] %v9864_v34  ;;  %3120 = vmatmul.mubr.bf16.gmra.mrb[64].mxu0 %v9369_v3  ;;  %3946 = vmatmul.mubr.bf16.gmra.mrb[68].mxu1 %v9369_v3  ;;  %11532 = vst [vmem:[#allocation47_spill] sm:$0xff] %v9877_v5  ;;  %v9882_v13 = vld [vmem:[%s11397_s4 + $0x230] ss:$8 sps:$4 sm:$0xff]   ;;  %v9889_v3 = vld [vmem:[%s11396_s3 + $0x244] ss:$8 sps:$4 sm:$0xff]  }
 0x1d5   : > { %6923 = vmatprep.mubr.msk.bf16.mxu0 %vm2787_vm2, %v9444_v11  ;;  %7071 = vmatprep.mubr.msk.bf16.mxu1 %vm2787_vm2, %v9444_v11  ;;  %11533 = vst [vmem:[#allocation48_spill] sm:$0xff] %v9882_v13  ;;  %11534 = vst [vmem:[#allocation49_spill] sm:$0xff] %v9889_v3  ;;  %v9894_v11 = vld [vmem:[%s11397_s4 + $0x244] ss:$8 sps:$4 sm:$0xff]  }
 0x1d6   : > { %3332 = vmatpush1.bf16.msra.mxu0 %v9847_v57  ;;  %4140 = vmatpush1.bf16.msra.mxu1 %v9852_v61  ;;  %11535 = vst [vmem:[#allocation50_spill] sm:$0xff] %v9894_v11 }
 0x1d7   : > { %3333 = vmatprep.subr.bf16.mxu0 %v9859_v15  ;;  %4141 = vmatprep.subr.bf16.mxu1 %v9864_v34  ;;  %v9901_v15 = vld [vmem:[%s11396_s3 + $0x240] ss:$8 sps:$4 sm:$0xff]  }
 0x1d8   : > { %11536 = vst [vmem:[#allocation51_spill] sm:$0xff] %v9901_v15  ;;  %v9906_v34 = vld [vmem:[%s11397_s4 + $0x240] ss:$8 sps:$4 sm:$0xff]  }
 0x1d9   : > { %11537 = vst [vmem:[#allocation52_spill] sm:$0xff] %v9906_v34 }
 0x1da   : > { %3334 = vmatpush1.bf16.msra.mxu0 %v9877_v5  ;;  %4142 = vmatpush1.bf16.msra.mxu1 %v9882_v13  ;;  %v9913_v5 = vld [vmem:[%s11396_s3 + $0x254] ss:$8 sps:$4 sm:$0xff]  }
 0x1db   : > { %3335 = vmatprep.subr.bf16.mxu0 %v9889_v3  ;;  %4143 = vmatprep.subr.bf16.mxu1 %v9894_v11  ;;  %11538 = vst [vmem:[#allocation53_spill] sm:$0xff] %v9913_v5  ;;  %v9918_v13 = vld [vmem:[%s11397_s4 + $0x254] ss:$8 sps:$4 sm:$0xff]   ;;  %v9927_v11 = vld [vmem:[%s11396_s3 + $0x250] ss:$8 sps:$4 sm:$0xff]  }
 0x1dc   : > { %11539 = vst [vmem:[#allocation54_spill] sm:$0xff] %v9918_v13  ;;  %3130 = vmatmul.mubr.bf16.gmra.mrb[68].mxu0 %v9442_v10  ;;  %3956 = vmatmul.mubr.bf16.gmra.mrb[72].mxu1 %v9442_v10  ;;  %11540 = vst [vmem:[#allocation55_spill] sm:$0xff] %v9927_v11  ;;  %v9932_v3 = vld [vmem:[%s11397_s4 + $0x250] ss:$8 sps:$4 sm:$0xff]   ;;  %v9939_v10 = vld [vmem:[%s11396_s3 + $0x264] ss:$8 sps:$4 sm:$0xff]  }
 0x1dd   : > { %11541 = vst [vmem:[#allocation56_spill] sm:$0xff] %v9932_v3  ;;  %11542 = vst [vmem:[#allocation57_spill] sm:$0xff] %v9939_v10 }
 0x1de   : > { %3336 = vmatpush1.bf16.msra.mxu0 %v9901_v15  ;;  %4144 = vmatpush1.bf16.msra.mxu1 %v9906_v34  ;;  %v9944_v34 = vld [vmem:[%s11397_s4 + $0x264] ss:$8 sps:$4 sm:$0xff]  }
 0x1df   : > { %3337 = vmatprep.subr.bf16.mxu0 %v9913_v5  ;;  %4145 = vmatprep.subr.bf16.mxu1 %v9918_v13  ;;  %11543 = vst [vmem:[#allocation58_spill] sm:$0xff] %v9944_v34  ;;  %v9951_v5 = vld [vmem:[%s11396_s3 + $0x260] ss:$8 sps:$4 sm:$0xff]  }
 0x1e0   : > { %11544 = vst [vmem:[#allocation59_spill] sm:$0xff] %v9951_v5  ;;  %v9956_v13 = vld [vmem:[%s11397_s4 + $0x260] ss:$8 sps:$4 sm:$0xff]  }
 0x1e1   : > { %11545 = vst [vmem:[#allocation60_spill] sm:$0xff] %v9956_v13 }
 0x1e2   : > { %3338 = vmatpush1.bf16.msra.mxu0 %v9927_v11  ;;  %4146 = vmatpush1.bf16.msra.mxu1 %v9932_v3  ;;  %v8391_v3 = vld [vmem:[%s11396_s3 + $0xd4] ss:$8 sps:$4 sm:$0xff]  }
 0x1e3   : > { %3339 = vmatprep.subr.bf16.mxu0 %v9939_v10  ;;  %4147 = vmatprep.subr.bf16.mxu1 %v9944_v34  ;;  %v8392_v11 = vld [vmem:[%s11397_s4 + $0xd4] ss:$8 sps:$4 sm:$0xff]  }
 0x1e6   : > { %3340 = vmatpush1.bf16.msra.mxu0 %v9951_v5  ;;  %4148 = vmatpush1.bf16.msra.mxu1 %v9956_v13 }
 0x1e7   : > { %4264 = vmatprep.subr.bf16.mxu0 %v8391_v3  ;;  %4609 = vmatprep.subr.bf16.mxu1 %v8392_v11 }
 0x1f5   : > { %v2037_v15 = vpop.f32.mrb[24].mxu0 }
 0x1f6   : > { %v2120_v61 = vadd.f32 %v2037_v15, %v9247_v36  ;;  %v2039_v10 = vpop.f32.mrb[25].mxu0 }
 0x1f7   : > { %v2121_v34 = vadd.f32 %v2039_v10, %v9251_v37  ;;  %v2041_v57 = vpop.f32.mrb[26].mxu0 }
 0x1f8   : > { %v2122_v5 = vadd.f32 %v2041_v57, %v9247_v36  ;;  %v2043_v13 = vpop.f32.mrb[27].mxu0  ;;  %v2144_v42 = vmax.f32 %v2120_v61, 0.0 }
 0x1f9   : > { %v2123_v28 = vadd.f32 %v2043_v13, %v9251_v37  ;;  %v2145_v3 = vmax.f32 %v2121_v34, 0.0  ;;  %v8396_v34 = vld [vmem:[%s11397_s4 + $0xe4] ss:$8 sps:$4 sm:$0xff]  }
 0x1fa   : > { %v2146_v17 = vmax.f32 %v2122_v5, 0.0 }
 0x1fb   : > { %v2147_v12 = vmax.f32 %v2123_v28, 0.0  ;;  %v8393_v28 = vld [vmem:[%s11396_s3 + $0xd0] ss:$8 sps:$4 sm:$0xff]  }
 0x1fc   : > { %v9972_v39 = vpack.c.bf16 %v2146_v17, %v2144_v42 }
 0x1fd   : > { %v9974_v4 = vpack.c.bf16 %v2147_v12, %v2145_v3  ;;  %v2047_v11 = vpop.f32.mrb[28].mxu0  ;;  %v8394_v12 = vld [vmem:[%s11397_s4 + $0xd0] ss:$8 sps:$4 sm:$0xff]  }
 0x1fe   : > { %v2124_v15 = vadd.f32 %v2047_v11, %v9247_v36  ;;  %v2049_v1 = vpop.f32.mrb[29].mxu0 }
 0x1ff   : > { %v2125_v10 = vadd.f32 %v2049_v1, %v9251_v37  ;;  %v2051_v24 = vpop.f32.mrb[30].mxu0  ;;  %6976 = vmatprep.mubr.msk.bf16.mxu0 %vm2787_vm2, %v9974_v4  ;;  %7124 = vmatprep.mubr.msk.bf16.mxu1 %vm2787_vm2, %v9974_v4 }
 0x200   : > { %v2126_v57 = vadd.f32 %v2051_v24, %v9247_v36  ;;  %v2053_v61 = vpop.f32.mrb[31].mxu0  ;;  %3348 = vmatmul.mubr.bf16.vlgmr.msra.gmra.mrb[48].mxu0 %v9972_v39  ;;  %4156 = vmatmul.mubr.bf16.vlgmr.msra.gmra.mrb[52].mxu1 %v9972_v39  ;;  %v2148_v17 = vmax.f32 %v2124_v15, 0.0  ;;  %v8395_v24 = vld [vmem:[%s11396_s3 + $0xe4] ss:$8 sps:$4 sm:$0xff]   ;;  %v8397_v15 = vld [vmem:[%s11396_s3 + $0xe0] ss:$8 sps:$4 sm:$0xff]  }
 0x201   : > { %v2127_v42 = vadd.f32 %v2053_v61, %v9251_v37  ;;  %4265 = vmatpush1.bf16.msra.mxu0 %v8393_v28  ;;  %4610 = vmatpush1.bf16.msra.mxu1 %v8394_v12  ;;  %v2149_v13 = vmax.f32 %v2125_v10, 0.0 }
 0x202   : > { %v2150_v1 = vmax.f32 %v2126_v57, 0.0  ;;  %4266 = vmatprep.subr.bf16.mxu0 %v8395_v24  ;;  %4611 = vmatprep.subr.bf16.mxu1 %v8396_v34  ;;  %v8398_v57 = vld [vmem:[%s11397_s4 + $0xe0] ss:$8 sps:$4 sm:$0xff]   ;;  %v8400_v24 = vld [vmem:[%s11397_s4 + $0xf4] ss:$8 sps:$4 sm:$0xff]  }
 0x203   : > { %v2151_v5 = vmax.f32 %v2127_v42, 0.0 }
 0x204   : > { %v9998_v3 = vpack.c.bf16 %v2150_v1, %v2148_v17  ;;  %v8399_v1 = vld [vmem:[%s11396_s3 + $0xf4] ss:$8 sps:$4 sm:$0xff]  }
 0x205   : > { %v10000_v11 = vpack.c.bf16 %v2151_v5, %v2149_v13  ;;  %4267 = vmatpush1.bf16.msra.mxu0 %v8397_v15  ;;  %4612 = vmatpush1.bf16.msra.mxu1 %v8398_v57  ;;  %v2057_v61 = vpop.f32.mrb[32].mxu0  ;;  %v2461_v28 = vpop.f32.mrb[28].mxu1 }
 0x206   : > { %v2128_v12 = vadd.f32 %v2057_v61, %v9247_v36  ;;  %v2544_v10 = vadd.f32 %v2461_v28, %v9247_v36  ;;  %v2059_v42 = vpop.f32.mrb[33].mxu0  ;;  %v2463_v17 = vpop.f32.mrb[29].mxu1  ;;  %4268 = vmatprep.subr.bf16.mxu0 %v8399_v1  ;;  %4613 = vmatprep.subr.bf16.mxu1 %v8400_v24  ;;  %v8401_v24 = vld [vmem:[%s11396_s3 + $0xf0] ss:$8 sps:$4 sm:$0xff]  }
 0x207   : > { %v2129_v34 = vadd.f32 %v2059_v42, %v9251_v37  ;;  %v2545_v13 = vadd.f32 %v2463_v17, %v9251_v37  ;;  %v2061_v5 = vpop.f32.mrb[34].mxu0  ;;  %v2465_v15 = vpop.f32.mrb[30].mxu1  ;;  %6977 = vmatprep.mubr.msk.bf16.mxu0 %vm2787_vm2, %v10000_v11  ;;  %7125 = vmatprep.mubr.msk.bf16.mxu1 %vm2787_vm2, %v10000_v11 }
 0x208   : > { %v2130_v57 = vadd.f32 %v2061_v5, %v9247_v36  ;;  %v2546_v61 = vadd.f32 %v2465_v15, %v9247_v36  ;;  %v2063_v28 = vpop.f32.mrb[35].mxu0  ;;  %v2467_v1 = vpop.f32.mrb[31].mxu1  ;;  %3358 = vmatmul.mubr.bf16.gmra.mrb[52].mxu0 %v9998_v3  ;;  %4166 = vmatmul.mubr.bf16.gmra.mrb[56].mxu1 %v9998_v3  ;;  %v8402_v5 = vld [vmem:[%s11397_s4 + $0xf0] ss:$8 sps:$4 sm:$0xff]   ;;  %v2152_v15 = vmax.f32 %v2128_v12, 0.0  ;;  %v2568_v38 = vmax.f32 %v2544_v10, 0.0 }
 0x209   : > { %v2131_v42 = vadd.f32 %v2063_v28, %v9251_v37  ;;  %v2547_v17 = vadd.f32 %v2467_v1, %v9251_v37  ;;  %4269 = vmatpush1.bf16.msra.mxu0 %v8401_v24  ;;  %4614 = vmatpush1.bf16.msra.mxu1 %v8402_v5  ;;  %v8403_v28 = vld [vmem:[%s11396_s3 + $0x104] ss:$8 sps:$4 sm:$0xff]   ;;  %v2153_v24 = vmax.f32 %v2129_v34, 0.0  ;;  %v2569_v7 = vmax.f32 %v2545_v13, 0.0  ;;  %v8406_v34 = vld [vmem:[%s11397_s4 + $0x100] ss:$8 sps:$4 sm:$0xff]  }
 0x20a   : > { %v2154_v31 = vmax.f32 %v2130_v57, 0.0  ;;  %v2570_v33 = vmax.f32 %v2546_v61, 0.0  ;;  %4270 = vmatprep.subr.bf16.mxu0 %v8403_v28  ;;  %v8404_v1 = vld [vmem:[%s11397_s4 + $0x104] ss:$8 sps:$4 sm:$0xff]   ;;  %v8405_v61 = vld [vmem:[%s11396_s3 + $0x100] ss:$8 sps:$4 sm:$0xff]  }
 0x20b   : > { %4615 = vmatprep.subr.bf16.mxu1 %v8404_v1  ;;  %v2155_v0 = vmax.f32 %v2131_v42, 0.0  ;;  %v2571_v6 = vmax.f32 %v2547_v17, 0.0 }
 0x20c   : > { %v10040_v2 = vpack.c.bf16 %v2154_v31, %v2152_v15  ;;  %v10042_v12 = vpack.c.bf16 %v2570_v33, %v2568_v38 }
 0x20d   : > { %v10044_v10 = vpack.c.bf16 %v2155_v0, %v2153_v24  ;;  %v10046_v57 = vpack.c.bf16 %v2571_v6, %v2569_v7  ;;  %4271 = vmatpush1.bf16.msra.mxu0 %v8405_v61  ;;  %4616 = vmatpush1.bf16.msra.mxu1 %v8406_v34  ;;  %v2067_v13 = vpop.f32.mrb[36].mxu0  ;;  %v2471_v42 = vpop.f32.mrb[32].mxu1  ;;  %v8407_v6 = vld [vmem:[%s11396_s3 + $0x114] ss:$8 sps:$4 sm:$0xff]  }
 0x20e   : > { %11546 = vst [vmem:[#allocation61_spill] sm:$0xff] %v10042_v12  ;;  %v2132_v31 = vadd.f32 %v2067_v13, %v9247_v36  ;;  %v2548_v38 = vadd.f32 %v2471_v42, %v9247_v36  ;;  %v2069_v33 = vpop.f32.mrb[37].mxu0  ;;  %v2473_v0 = vpop.f32.mrb[33].mxu1  ;;  %4272 = vmatprep.subr.bf16.mxu0 %v8407_v6  ;;  %v8408_v7 = vld [vmem:[%s11397_s4 + $0x114] ss:$8 sps:$4 sm:$0xff]  }
 0x20f   : > { %11547 = vst [vmem:[#allocation62_spill] sm:$0xff] %v10046_v57  ;;  %4617 = vmatprep.subr.bf16.mxu1 %v8408_v7  ;;  %v2133_v17 = vadd.f32 %v2069_v33, %v9251_v37  ;;  %v2549_v5 = vadd.f32 %v2473_v0, %v9251_v37  ;;  %v2071_v15 = vpop.f32.mrb[38].mxu0  ;;  %v2475_v28 = vpop.f32.mrb[34].mxu1  ;;  %6978 = vmatprep.mubr.msk.bf16.mxu0 %vm2787_vm2, %v10044_v10  ;;  %v8409_v33 = vld [vmem:[%s11396_s3 + $0x110] ss:$8 sps:$4 sm:$0xff]  }
 0x210   : > { %7126 = vmatprep.mubr.msk.bf16.mxu1 %vm2787_vm2, %v10044_v10  ;;  %v2134_v1 = vadd.f32 %v2071_v15, %v9247_v36  ;;  %v2550_v24 = vadd.f32 %v2475_v28, %v9247_v36  ;;  %v2073_v61 = vpop.f32.mrb[39].mxu0  ;;  %v2477_v34 = vpop.f32.mrb[35].mxu1  ;;  %3368 = vmatmul.mubr.bf16.gmra.mrb[56].mxu0 %v10040_v2  ;;  %v8410_v0 = vld [vmem:[%s11397_s4 + $0x110] ss:$8 sps:$4 sm:$0xff]   ;;  %v2156_v6 = vmax.f32 %v2132_v31, 0.0  ;;  %v2572_v7 = vmax.f32 %v2548_v38, 0.0 }
 0x211   : > { %4176 = vmatmul.mubr.bf16.gmra.mrb[60].mxu1 %v10040_v2  ;;  %v2135_v13 = vadd.f32 %v2073_v61, %v9251_v37  ;;  %v2551_v42 = vadd.f32 %v2477_v34, %v9251_v37  ;;  %4273 = vmatpush1.bf16.msra.mxu0 %v8409_v33  ;;  %v8411_v61 = vld [vmem:[%s11396_s3 + $0x124] ss:$8 sps:$4 sm:$0xff]   ;;  %v2157_v33 = vmax.f32 %v2133_v17, 0.0  ;;  %v2573_v12 = vmax.f32 %v2549_v5, 0.0  ;;  %v8414_v17 = vld [vmem:[%s11397_s4 + $0x120] ss:$8 sps:$4 sm:$0xff]  }
 0x212   : > { %4618 = vmatpush1.bf16.msra.mxu1 %v8410_v0  ;;  %v2158_v15 = vmax.f32 %v2134_v1, 0.0  ;;  %v2574_v28 = vmax.f32 %v2550_v24, 0.0  ;;  %4274 = vmatprep.subr.bf16.mxu0 %v8411_v61  ;;  %v8412_v34 = vld [vmem:[%s11397_s4 + $0x124] ss:$8 sps:$4 sm:$0xff]   ;;  %v8413_v24 = vld [vmem:[%s11396_s3 + $0x120] ss:$8 sps:$4 sm:$0xff]  }
 0x213   : > { %4619 = vmatprep.subr.bf16.mxu1 %v8412_v34  ;;  %v2159_v57 = vmax.f32 %v2135_v13, 0.0  ;;  %v2575_v14 = vmax.f32 %v2551_v42, 0.0 }
 0x214   : > { %v10086_v51 = vpack.c.bf16 %v2158_v15, %v2156_v6  ;;  %v10088_v31 = vpack.c.bf16 %v2574_v28, %v2572_v7 }
 0x215   : > { %v10090_v38 = vpack.c.bf16 %v2159_v57, %v2157_v33  ;;  %v10092_v1 = vpack.c.bf16 %v2575_v14, %v2573_v12  ;;  %4275 = vmatpush1.bf16.msra.mxu0 %v8413_v24  ;;  %v2077_v5 = vpop.f32.mrb[40].mxu0  ;;  %v2481_v13 = vpop.f32.mrb[36].mxu1  ;;  %v8415_v14 = vld [vmem:[%s11396_s3 + $0x134] ss:$8 sps:$4 sm:$0xff]  }
 0x216   : > { %11548 = vst [vmem:[#allocation63_spill] sm:$0xff] %v10088_v31  ;;  %4620 = vmatpush1.bf16.msra.mxu1 %v8414_v17  ;;  %v2136_v42 = vadd.f32 %v2077_v5, %v9247_v36  ;;  %v2552_v0 = vadd.f32 %v2481_v13, %v9247_v36  ;;  %v2079_v57 = vpop.f32.mrb[41].mxu0  ;;  %v2483_v6 = vpop.f32.mrb[37].mxu1  ;;  %4276 = vmatprep.subr.bf16.mxu0 %v8415_v14  ;;  %v8416_v12 = vld [vmem:[%s11397_s4 + $0x134] ss:$8 sps:$4 sm:$0xff]  }
 0x217   : > { %11549 = vst [vmem:[#allocation64_spill] sm:$0xff] %v10092_v1  ;;  %4621 = vmatprep.subr.bf16.mxu1 %v8416_v12  ;;  %v2137_v7 = vadd.f32 %v2079_v57, %v9251_v37  ;;  %v2553_v15 = vadd.f32 %v2483_v6, %v9251_v37  ;;  %v2081_v28 = vpop.f32.mrb[42].mxu0  ;;  %v2485_v61 = vpop.f32.mrb[38].mxu1  ;;  %6979 = vmatprep.mubr.msk.bf16.mxu0 %vm2787_vm2, %v10090_v38  ;;  %v8417_v57 = vld [vmem:[%s11396_s3 + $0x130] ss:$8 sps:$4 sm:$0xff]  }
 0x218   : > { %7127 = vmatprep.mubr.msk.bf16.mxu1 %vm2787_vm2, %v10090_v38  ;;  %v2138_v34 = vadd.f32 %v2081_v28, %v9247_v36  ;;  %v2554_v33 = vadd.f32 %v2485_v61, %v9247_v36  ;;  %v2083_v24 = vpop.f32.mrb[43].mxu0  ;;  %v2487_v17 = vpop.f32.mrb[39].mxu1  ;;  %3378 = vmatmul.mubr.bf16.gmra.mrb[60].mxu0 %v10086_v51  ;;  %v8418_v6 = vld [vmem:[%s11397_s4 + $0x130] ss:$8 sps:$4 sm:$0xff]   ;;  %v2160_v14 = vmax.f32 %v2136_v42, 0.0  ;;  %v2576_v12 = vmax.f32 %v2552_v0, 0.0 }
 0x219   : > { %4186 = vmatmul.mubr.bf16.gmra.mrb[64].mxu1 %v10086_v51  ;;  %v2139_v5 = vadd.f32 %v2083_v24, %v9251_v37  ;;  %v2555_v13 = vadd.f32 %v2487_v17, %v9251_v37  ;;  %4277 = vmatpush1.bf16.msra.mxu0 %v8417_v57  ;;  %v8419_v24 = vld [vmem:[%s11396_s3 + $0x144] ss:$8 sps:$4 sm:$0xff]   ;;  %v2161_v57 = vmax.f32 %v2137_v7, 0.0  ;;  %v2577_v31 = vmax.f32 %v2553_v15, 0.0  ;;  %v8422_v7 = vld [vmem:[%s11397_s4 + $0x140] ss:$8 sps:$4 sm:$0xff]  }
 0x21a   : > { %4622 = vmatpush1.bf16.msra.mxu1 %v8418_v6  ;;  %v2162_v28 = vmax.f32 %v2138_v34, 0.0  ;;  %v2578_v61 = vmax.f32 %v2554_v33, 0.0  ;;  %4278 = vmatprep.subr.bf16.mxu0 %v8419_v24  ;;  %v8420_v17 = vld [vmem:[%s11397_s4 + $0x144] ss:$8 sps:$4 sm:$0xff]   ;;  %v8421_v33 = vld [vmem:[%s11396_s3 + $0x140] ss:$8 sps:$4 sm:$0xff]  }
 0x21b   : > { %4623 = vmatprep.subr.bf16.mxu1 %v8420_v17  ;;  %v2163_v1 = vmax.f32 %v2139_v5, 0.0  ;;  %v2579_v59 = vmax.f32 %v2555_v13, 0.0 }
 0x21c   : > { %v10132_v58 = vpack.c.bf16 %v2162_v28, %v2160_v14  ;;  %v10134_v42 = vpack.c.bf16 %v2578_v61, %v2576_v12 }
 0x21d   : > { %v10136_v0 = vpack.c.bf16 %v2163_v1, %v2161_v57  ;;  %v10138_v34 = vpack.c.bf16 %v2579_v59, %v2577_v31  ;;  %4279 = vmatpush1.bf16.msra.mxu0 %v8421_v33  ;;  %v2087_v15 = vpop.f32.mrb[44].mxu0  ;;  %v2491_v5 = vpop.f32.mrb[40].mxu1  ;;  %v8423_v59 = vld [vmem:[%s11396_s3 + $0x154] ss:$8 sps:$4 sm:$0xff]  }
 0x21e   : > { %11550 = vst [vmem:[#allocation65_spill] sm:$0xff] %v10134_v42  ;;  %4624 = vmatpush1.bf16.msra.mxu1 %v8422_v7  ;;  %v2140_v13 = vadd.f32 %v2087_v15, %v9247_v36  ;;  %v2556_v6 = vadd.f32 %v2491_v5, %v9247_v36  ;;  %v2089_v1 = vpop.f32.mrb[45].mxu0  ;;  %v2493_v14 = vpop.f32.mrb[41].mxu1  ;;  %4280 = vmatprep.subr.bf16.mxu0 %v8423_v59  ;;  %v8424_v31 = vld [vmem:[%s11397_s4 + $0x154] ss:$8 sps:$4 sm:$0xff]  }
 0x21f   : > { %11551 = vst [vmem:[#allocation66_spill] sm:$0xff] %v10138_v34  ;;  %4625 = vmatprep.subr.bf16.mxu1 %v8424_v31  ;;  %v2141_v12 = vadd.f32 %v2089_v1, %v9251_v37  ;;  %v2557_v28 = vadd.f32 %v2493_v14, %v9251_v37  ;;  %v2091_v61 = vpop.f32.mrb[46].mxu0  ;;  %v2495_v24 = vpop.f32.mrb[42].mxu1  ;;  %6980 = vmatprep.mubr.msk.bf16.mxu0 %vm2787_vm2, %v10136_v0  ;;  %v8425_v1 = vld [vmem:[%s11396_s3 + $0x150] ss:$8 sps:$4 sm:$0xff]  }
 0x220   : > { %7128 = vmatprep.mubr.msk.bf16.mxu1 %vm2787_vm2, %v10136_v0  ;;  %v2142_v17 = vadd.f32 %v2091_v61, %v9247_v36  ;;  %v2558_v57 = vadd.f32 %v2495_v24, %v9247_v36  ;;  %v2093_v33 = vpop.f32.mrb[47].mxu0  ;;  %v2497_v7 = vpop.f32.mrb[43].mxu1  ;;  %3388 = vmatmul.mubr.bf16.gmra.mrb[64].mxu0 %v10132_v58  ;;  %v8426_v14 = vld [vmem:[%s11397_s4 + $0x150] ss:$8 sps:$4 sm:$0xff]   ;;  %v2164_v59 = vmax.f32 %v2140_v13, 0.0  ;;  %v2580_v31 = vmax.f32 %v2556_v6, 0.0 }
 0x221   : > { %4196 = vmatmul.mubr.bf16.gmra.mrb[68].mxu1 %v10132_v58  ;;  %v2143_v15 = vadd.f32 %v2093_v33, %v9251_v37  ;;  %v2559_v5 = vadd.f32 %v2497_v7, %v9251_v37  ;;  %4281 = vmatpush1.bf16.msra.mxu0 %v8425_v1  ;;  %v8427_v33 = vld [vmem:[%s11396_s3 + $0x164] ss:$8 sps:$4 sm:$0xff]   ;;  %v2165_v1 = vmax.f32 %v2141_v12, 0.0  ;;  %v2581_v42 = vmax.f32 %v2557_v28, 0.0  ;;  %v8430_v12 = vld [vmem:[%s11397_s4 + $0x160] ss:$8 sps:$4 sm:$0xff]  }
 0x222   : > { %4626 = vmatpush1.bf16.msra.mxu1 %v8426_v14  ;;  %v2166_v61 = vmax.f32 %v2142_v17, 0.0  ;;  %v2582_v24 = vmax.f32 %v2558_v57, 0.0  ;;  %4282 = vmatprep.subr.bf16.mxu0 %v8427_v33  ;;  %v8428_v7 = vld [vmem:[%s11397_s4 + $0x164] ss:$8 sps:$4 sm:$0xff]   ;;  %v8429_v57 = vld [vmem:[%s11396_s3 + $0x160] ss:$8 sps:$4 sm:$0xff]  }
 0x223   : > { %4627 = vmatprep.subr.bf16.mxu1 %v8428_v7  ;;  %v2167_v34 = vmax.f32 %v2143_v15, 0.0  ;;  %v2583_v54 = vmax.f32 %v2559_v5, 0.0  ;;  %v8434_v33 = vld [vmem:[%s11397_s4 + $0x170] ss:$8 sps:$4 sm:$0xff]  }
 0x224   : > { %v10178_v53 = vpack.c.bf16 %v2166_v61, %v2164_v59  ;;  %v10180_v13 = vpack.c.bf16 %v2582_v24, %v2580_v31  ;;  %v8433_v24 = vld [vmem:[%s11396_s3 + $0x170] ss:$8 sps:$4 sm:$0xff]  }
 0x225   : > { %v10182_v6 = vpack.c.bf16 %v2167_v34, %v2165_v1  ;;  %v10184_v17 = vpack.c.bf16 %v2583_v54, %v2581_v42  ;;  %4283 = vmatpush1.bf16.msra.mxu0 %v8429_v57  ;;  %v2501_v28 = vpop.f32.mrb[44].mxu1  ;;  %v8431_v34 = vld [vmem:[%s11396_s3 + $0x174] ss:$8 sps:$4 sm:$0xff]  }
 0x226   : > { %4628 = vmatpush1.bf16.msra.mxu1 %v8430_v12  ;;  %v2560_v15 = vadd.f32 %v2501_v28, %v9247_v36  ;;  %v2503_v5 = vpop.f32.mrb[45].mxu1  ;;  %4284 = vmatprep.subr.bf16.mxu0 %v8431_v34  ;;  %v8432_v54 = vld [vmem:[%s11397_s4 + $0x174] ss:$8 sps:$4 sm:$0xff]   ;;  %v8435_v28 = vld [vmem:[%s11396_s3 + $0x184] ss:$8 sps:$4 sm:$0xff]  }
 0x227   : > { %4629 = vmatprep.subr.bf16.mxu1 %v8432_v54  ;;  %v2561_v42 = vadd.f32 %v2503_v5, %v9251_v37  ;;  %v2505_v14 = vpop.f32.mrb[46].mxu1  ;;  %6981 = vmatprep.mubr.msk.bf16.mxu0 %vm2787_vm2, %v10182_v6  ;;  %v8436_v5 = vld [vmem:[%s11397_s4 + $0x184] ss:$8 sps:$4 sm:$0xff]   ;;  %v8438_v54 = vld [vmem:[%s11397_s4 + $0x180] ss:$8 sps:$4 sm:$0xff]  }
 0x228   : > { %7129 = vmatprep.mubr.msk.bf16.mxu1 %vm2787_vm2, %v10182_v6  ;;  %v2562_v59 = vadd.f32 %v2505_v14, %v9247_v36  ;;  %v2507_v31 = vpop.f32.mrb[47].mxu1  ;;  %3398 = vmatmul.mubr.bf16.gmra.mrb[68].mxu0 %v10178_v53  ;;  %v2584_v7 = vmax.f32 %v2560_v15, 0.0 }
 0x229   : > { %4206 = vmatmul.mubr.bf16.gmra.mrb[72].mxu1 %v10178_v53  ;;  %v2563_v61 = vadd.f32 %v2507_v31, %v9251_v37  ;;  %4285 = vmatpush1.bf16.msra.mxu0 %v8433_v24  ;;  %v2585_v57 = vmax.f32 %v2561_v42, 0.0  ;;  %v8439_v31 = vld [vmem:[%s11396_s3 + $0x194] ss:$8 sps:$4 sm:$0xff]  }
 0x22a   : > { %4630 = vmatpush1.bf16.msra.mxu1 %v8434_v33  ;;  %v2586_v1 = vmax.f32 %v2562_v59, 0.0  ;;  %7130 = vmatprep.mubr.msk.bf16.mxu0 %vm2787_vm2, %v9974_v4 }
 0x22b   : > { %7148 = vmatprep.mubr.msk.bf16.mxu1 %vm2787_vm2, %v9974_v4  ;;  %v2587_v12 = vmax.f32 %v2563_v61, 0.0  ;;  %4286 = vmatprep.subr.bf16.mxu0 %v8435_v28  ;;  %v8437_v4 = vld [vmem:[%s11396_s3 + $0x180] ss:$8 sps:$4 sm:$0xff]   ;;  %v8440_v61 = vld [vmem:[%s11397_s4 + $0x194] ss:$8 sps:$4 sm:$0xff]  }
 0x22c   : > { %4631 = vmatprep.subr.bf16.mxu1 %v8436_v5  ;;  %v10224_v15 = vpack.c.bf16 %v2586_v1, %v2584_v7  ;;  %v8442_v28 = vld [vmem:[%s11397_s4 + $0x190] ss:$8 sps:$4 sm:$0xff]  }
 0x22d   : > { %v10226_v34 = vpack.c.bf16 %v2587_v12, %v2585_v57  ;;  %4287 = vmatpush1.bf16.msra.mxu0 %v8437_v4  ;;  %v2511_v42 = vpop.f32.mrb[48].mxu1  ;;  %v8441_v12 = vld [vmem:[%s11396_s3 + $0x190] ss:$8 sps:$4 sm:$0xff]  }
 0x22e   : > { %4632 = vmatpush1.bf16.msra.mxu1 %v8438_v54  ;;  %v2564_v14 = vadd.f32 %v2511_v42, %v9247_v36  ;;  %v2513_v59 = vpop.f32.mrb[49].mxu1  ;;  %4288 = vmatprep.subr.bf16.mxu0 %v8439_v31  ;;  %v8443_v54 = vld [vmem:[%s11396_s3 + $0x4] ss:$8 sps:$4 sm:$0xff]   ;;  %v8445_v31 = vld [vmem:[%s11396_s3] ss:$8 sps:$4 sm:$0xff]  }
 0x22f   : > { %4633 = vmatprep.subr.bf16.mxu1 %v8440_v61  ;;  %v2565_v24 = vadd.f32 %v2513_v59, %v9251_v37  ;;  %v2515_v33 = vpop.f32.mrb[50].mxu1  ;;  %v8446_v61 = vld [vmem:[%s11397_s4] ss:$8 sps:$4 sm:$0xff]  }
 0x230   : > { %v2566_v7 = vadd.f32 %v2515_v33, %v9247_v36  ;;  %v2517_v1 = vpop.f32.mrb[51].mxu1  ;;  %v2588_v5 = vmax.f32 %v2564_v14, 0.0  ;;  %v8444_v36 = vld [vmem:[%s11397_s4 + $0x4] ss:$8 sps:$4 sm:$0xff]   ;;  %v8449_v33 = vld [vmem:[%s11396_s3 + $0x10] ss:$8 sps:$4 sm:$0xff]  }
 0x231   : > { %v2567_v57 = vadd.f32 %v2517_v1, %v9251_v37  ;;  %4289 = vmatpush1.bf16.msra.mxu0 %v8441_v12  ;;  %v2589_v37 = vmax.f32 %v2565_v24, 0.0  ;;  %v8448_v24 = vld [vmem:[%s11397_s4 + $0x14] ss:$8 sps:$4 sm:$0xff]   ;;  %v8452_v1 = vld [vmem:[%s11397_s4 + $0x24] ss:$8 sps:$4 sm:$0xff]  }
 0x232   : > { %4634 = vmatpush1.bf16.msra.mxu1 %v8442_v28  ;;  %v2590_v4 = vmax.f32 %v2566_v7, 0.0  ;;  %4357 = vmatprep.subr.bf16.mxu0 %v8443_v54  ;;  %v8451_v7 = vld [vmem:[%s11396_s3 + $0x24] ss:$8 sps:$4 sm:$0xff]   ;;  %v8454_v12 = vld [vmem:[%s11397_s4 + $0x20] ss:$8 sps:$4 sm:$0xff]  }
 0x233   : > { %4702 = vmatprep.subr.bf16.mxu1 %v8444_v36  ;;  %v2591_v42 = vmax.f32 %v2567_v57, 0.0  ;;  %v8453_v57 = vld [vmem:[%s11396_s3 + $0x20] ss:$8 sps:$4 sm:$0xff]   ;;  %v8456_v28 = vld [vmem:[%s11397_s4 + $0x34] ss:$8 sps:$4 sm:$0xff]  }
 0x234   : > { %v10256_v59 = vpack.c.bf16 %v2590_v4, %v2588_v5  ;;  %4297 = vmatmul.mubr.bf16.vlgmr.msra.gmra.mrb[72].mxu0 %v9972_v39  ;;  %v8457_v5 = vld [vmem:[%s11396_s3 + $0x30] ss:$8 sps:$4 sm:$0xff]   ;;  %v8459_v4 = vld [vmem:[%s11396_s3 + $0x44] ss:$8 sps:$4 sm:$0xff]   ;;  %v8461_v36 = vld [vmem:[%s11396_s3 + $0x40] ss:$8 sps:$4 sm:$0xff]  }
 0x235   : > { %4642 = vmatmul.mubr.bf16.vlgmr.msra.gmra.mrb[76].mxu1 %v9972_v39  ;;  %v10260_v14 = vpack.c.bf16 %v2591_v42, %v2589_v37  ;;  %7131 = vmatprep.mubr.msk.bf16.mxu0 %vm2787_vm2, %v10000_v11  ;;  %v8447_v39 = vld [vmem:[%s11396_s3 + $0x14] ss:$8 sps:$4 sm:$0xff]   ;;  %v8460_v54 = vld [vmem:[%s11397_s4 + $0x44] ss:$8 sps:$4 sm:$0xff]   ;;  %v8462_v37 = vld [vmem:[%s11397_s4 + $0x40] ss:$8 sps:$4 sm:$0xff]  }
 0x236   : > { %4358 = vmatpush1.bf16.msra.mxu0 %v8445_v31  ;;  %7149 = vmatprep.mubr.msk.bf16.mxu1 %vm2787_vm2, %v10000_v11  ;;  %v8450_v11 = vld [vmem:[%s11397_s4 + $0x10] ss:$8 sps:$4 sm:$0xff]   ;;  %v8464_v42 = vld [vmem:[%s11397_s4 + $0x54] ss:$8 sps:$4 sm:$0xff]  }
 0x237   : > { %4703 = vmatpush1.bf16.msra.mxu1 %v8446_v61  ;;  %4359 = vmatprep.subr.bf16.mxu0 %v8447_v39  ;;  %v8465_v31 = vld [vmem:[%s11396_s3 + $0x50] ss:$8 sps:$4 sm:$0xff]   ;;  %v8467_v61 = vld [vmem:[%s11396_s3 + $0x64] ss:$8 sps:$4 sm:$0xff]  }
 0x238   : > { %4704 = vmatprep.subr.bf16.mxu1 %v8448_v24  ;;  %v8468_v39 = vld [vmem:[%s11397_s4 + $0x64] ss:$8 sps:$4 sm:$0xff]   ;;  %v8469_v24 = vld [vmem:[%s11396_s3 + $0x60] ss:$8 sps:$4 sm:$0xff]  }
 0x23a   : > { %4360 = vmatpush1.bf16.msra.mxu0 %v8449_v33  ;;  %v11589_v33 = vld [vmem:[#allocation12_spill] sm:$0xff] }
 0x23b   : > { %4705 = vmatpush1.bf16.msra.mxu1 %v8450_v11  ;;  %4361 = vmatprep.subr.bf16.mxu0 %v8451_v7  ;;  %v11590_v11 = vld [vmem:[#allocation43_spill] sm:$0xff]  ;;  %v11591_v7 = vld [vmem:[#allocation44_spill] sm:$0xff] }
 0x23c   : > { %4706 = vmatprep.subr.bf16.mxu1 %v8452_v1  ;;  %4307 = vmatmul.mubr.bf16.gmra.mrb[76].mxu0 %v9998_v3  ;;  %v11592_v1 = vld [vmem:[#allocation45_spill] sm:$0xff] }
 0x23d   : > { %4652 = vmatmul.mubr.bf16.gmra.mrb[80].mxu1 %v9998_v3  ;;  %7132 = vmatprep.mubr.msk.bf16.mxu0 %vm2787_vm2, %v10044_v10  ;;  %v8455_v3 = vld [vmem:[%s11396_s3 + $0x34] ss:$8 sps:$4 sm:$0xff]  }
 0x23e   : > { %4362 = vmatpush1.bf16.msra.mxu0 %v8453_v57  ;;  %7150 = vmatprep.mubr.msk.bf16.mxu1 %vm2787_vm2, %v10044_v10  ;;  %v8458_v10 = vld [vmem:[%s11397_s4 + $0x30] ss:$8 sps:$4 sm:$0xff]  }
 0x23f   : > { %4707 = vmatpush1.bf16.msra.mxu1 %v8454_v12  ;;  %4363 = vmatprep.subr.bf16.mxu0 %v8455_v3  ;;  %v11593_v57 = vld [vmem:[#allocation46_spill] sm:$0xff]  ;;  %v11594_v12 = vld [vmem:[#allocation47_spill] sm:$0xff]  ;;  %v11595_v3 = vld [vmem:[#allocation48_spill] sm:$0xff] }
 0x240   : > { %4708 = vmatprep.subr.bf16.mxu1 %v8456_v28  ;;  %v11596_v28 = vld [vmem:[#allocation49_spill] sm:$0xff] }
 0x242   : > { %4364 = vmatpush1.bf16.msra.mxu0 %v8457_v5  ;;  %v11597_v5 = vld [vmem:[#allocation11_spill] sm:$0xff] }
 0x243   : > { %4709 = vmatpush1.bf16.msra.mxu1 %v8458_v10  ;;  %4365 = vmatprep.subr.bf16.mxu0 %v8459_v4  ;;  %v11598_v10 = vld [vmem:[#allocation50_spill] sm:$0xff] }
 0x244   : > { %4710 = vmatprep.subr.bf16.mxu1 %v8460_v54  ;;  %4317 = vmatmul.mubr.bf16.gmra.mrb[80].mxu0 %v10040_v2  ;;  %v11599_v4 = vld [vmem:[#allocation62_spill] sm:$0xff]  ;;  %v11600_v54 = vld [vmem:[#allocation51_spill] sm:$0xff] }
 0x245   : > { %4662 = vmatmul.mubr.bf16.gmra.mrb[84].mxu1 %v10040_v2  ;;  %7133 = vmatprep.mubr.msk.bf16.mxu0 %vm2787_vm2, %v10090_v38  ;;  %v8463_v2 = vld [vmem:[%s11396_s3 + $0x54] ss:$8 sps:$4 sm:$0xff]  }
 0x246   : > { %4366 = vmatpush1.bf16.msra.mxu0 %v8461_v36  ;;  %7151 = vmatprep.mubr.msk.bf16.mxu1 %vm2787_vm2, %v10090_v38  ;;  %v8466_v38 = vld [vmem:[%s11397_s4 + $0x50] ss:$8 sps:$4 sm:$0xff]   ;;  %v11601_v36 = vld [vmem:[#allocation52_spill] sm:$0xff] }
 0x247   : > { %4711 = vmatpush1.bf16.msra.mxu1 %v8462_v37  ;;  %4367 = vmatprep.subr.bf16.mxu0 %v8463_v2  ;;  %v11602_v37 = vld [vmem:[#allocation53_spill] sm:$0xff]  ;;  %v11603_v2 = vld [vmem:[#allocation54_spill] sm:$0xff] }
 0x248   : > { %4712 = vmatprep.subr.bf16.mxu1 %v8464_v42  ;;  %v11604_v42 = vld [vmem:[#allocation55_spill] sm:$0xff] }
 0x24a   : > { %4368 = vmatpush1.bf16.msra.mxu0 %v8465_v31  ;;  %v11605_v31 = vld [vmem:[#allocation56_spill] sm:$0xff] }
 0x24b   : > { %4713 = vmatpush1.bf16.msra.mxu1 %v8466_v38  ;;  %4369 = vmatprep.subr.bf16.mxu0 %v8467_v61  ;;  %v11606_v38 = vld [vmem:[#allocation57_spill] sm:$0xff]  ;;  %v11607_v61 = vld [vmem:[#allocation58_spill] sm:$0xff] }
 0x24c   : > { %4714 = vmatprep.subr.bf16.mxu1 %v8468_v39  ;;  %4327 = vmatmul.mubr.bf16.gmra.mrb[84].mxu0 %v10086_v51  ;;  %v11608_v39 = vld [vmem:[#allocation59_spill] sm:$0xff] }
 0x24d   : > { %4672 = vmatmul.mubr.bf16.gmra.mrb[88].mxu1 %v10086_v51  ;;  %7134 = vmatprep.mubr.msk.bf16.mxu0 %vm2787_vm2, %v10136_v0  ;;  %v11586_v51 = vld [vmem:[#allocation41_spill] sm:$0xff] }
 0x24e   : > { %4370 = vmatpush1.bf16.msra.mxu0 %v8469_v24  ;;  %7152 = vmatprep.mubr.msk.bf16.mxu1 %vm2787_vm2, %v10136_v0  ;;  %v11587_v0 = vld [vmem:[#allocation9_spill] sm:$0xff]  ;;  %v11609_v24 = vld [vmem:[#allocation60_spill] sm:$0xff] }
 0x24f   : > { %4715 = vmatpush1.bf16.msra.mxu1 %v9429_v63  ;;  %4371 = vmatprep.subr.bf16.mxu0 %v9435_v8  ;;  %v11553_v63 = vld [vmem:[#allocation14_spill] sm:$0xff]  ;;  %v11554_v8 = vld [vmem:[#allocation15_spill] sm:$0xff] }
 0x250   : > { %4716 = vmatprep.subr.bf16.mxu1 %v9440_v9  ;;  %v11555_v9 = vld [vmem:[#allocation16_spill] sm:$0xff] }
 0x252   : > { %4372 = vmatpush1.bf16.msra.mxu0 %v9459_v21  ;;  %v11556_v21 = vld [vmem:[#allocation17_spill] sm:$0xff] }
 0x253   : > { %4717 = vmatpush1.bf16.msra.mxu1 %v9464_v22  ;;  %4373 = vmatprep.subr.bf16.mxu0 %v9471_v25  ;;  %v11558_v22 = vld [vmem:[#allocation18_spill] sm:$0xff] }
 0x254   : > { %4718 = vmatprep.subr.bf16.mxu1 %v9476_v26  ;;  %4337 = vmatmul.mubr.bf16.gmra.mrb[88].mxu0 %v10132_v58  ;;  %v11559_v25 = vld [vmem:[#allocation6_spill] sm:$0xff]  ;;  %v11561_v26 = vld [vmem:[#allocation20_spill] sm:$0xff] }
 0x255   : > { %4682 = vmatmul.mubr.bf16.gmra.mrb[92].mxu1 %v10132_v58  ;;  %7135 = vmatprep.mubr.msk.bf16.mxu0 %vm2787_vm2, %v10182_v6  ;;  %v11585_v58 = vld [vmem:[#allocation40_spill] sm:$0xff] }
 0x256   : > { %4374 = vmatpush1.bf16.msra.mxu0 %v9487_v44  ;;  %7153 = vmatprep.mubr.msk.bf16.mxu1 %vm2787_vm2, %v10182_v6  ;;  %v11562_v44 = vld [vmem:[#allocation21_spill] sm:$0xff]  ;;  %v11588_v6 = vld [vmem:[#allocation42_spill] sm:$0xff] }
 0x257   : > { %4719 = vmatpush1.bf16.msra.mxu1 %v9492_v29  ;;  %4375 = vmatprep.subr.bf16.mxu0 %v9500_v47  ;;  %v11563_v29 = vld [vmem:[#allocation22_spill] sm:$0xff]  ;;  %v11564_v47 = vld [vmem:[#allocation23_spill] sm:$0xff] }
 0x258   : > { %4720 = vmatprep.subr.bf16.mxu1 %v9505_v48  ;;  %v11565_v48 = vld [vmem:[#allocation24_spill] sm:$0xff] }
 0x25a   : > { %4376 = vmatpush1.bf16.msra.mxu0 %v9521_v55  ;;  %v11566_v55 = vld [vmem:[#allocation25_spill] sm:$0xff] }
 0x25b   : > { %4721 = vmatpush1.bf16.msra.mxu1 %v9526_v56  ;;  %4377 = vmatprep.subr.bf16.mxu0 %v9533_v60  ;;  %v11567_v56 = vld [vmem:[#allocation5_spill] sm:$0xff]  ;;  %v11568_v60 = vld [vmem:[#allocation26_spill] sm:$0xff] }
 0x25c   : > { %4722 = vmatprep.subr.bf16.mxu1 %v9538_v62  ;;  %4347 = vmatmul.mubr.bf16.gmra.mrb[92].mxu0 %v10178_v53  ;;  %v11569_v62 = vld [vmem:[#allocation8_spill] sm:$0xff] }
 0x25d   : > { %4692 = vmatmul.mubr.bf16.gmra.mrb[96].mxu1 %v10178_v53  ;;  %7136 = vmatprep.mubr.msk.bf16.mxu0 %vm2787_vm2, %v9283_v40  ;;  %v11584_v53 = vld [vmem:[#allocation39_spill] sm:$0xff] }
 0x25e   : > { %4378 = vmatpush1.bf16.msra.mxu0 %v9549_v18  ;;  %7154 = vmatprep.mubr.msk.bf16.mxu1 %vm2787_vm2, %v9283_v40  ;;  %v11552_v40 = vld [vmem:[#allocation13_spill] sm:$0xff]  ;;  %v11570_v18 = vld [vmem:[#allocation27_spill] sm:$0xff] }
 0x25f   : > { %4723 = vmatpush1.bf16.msra.mxu1 %v9554_v19  ;;  %4379 = vmatprep.subr.bf16.mxu0 %v9565_v20  ;;  %v11571_v19 = vld [vmem:[#allocation28_spill] sm:$0xff]  ;;  %v11572_v20 = vld [vmem:[#allocation29_spill] sm:$0xff] }
 0x260   : > { %4724 = vmatprep.subr.bf16.mxu1 %v9570_v23  ;;  %v11573_v23 = vld [vmem:[#allocation30_spill] sm:$0xff] }
 0x262   : > { %4380 = vmatpush1.bf16.msra.mxu0 %v9579_v27  ;;  %v11574_v27 = vld [vmem:[#allocation31_spill] sm:$0xff] }
 0x263   : > { %4725 = vmatpush1.bf16.msra.mxu1 %v9584_v32  ;;  %4381 = vmatprep.subr.bf16.mxu0 %v9593_v41  ;;  %v11575_v32 = vld [vmem:[#allocation32_spill] sm:$0xff]  ;;  %v11576_v41 = vld [vmem:[#allocation33_spill] sm:$0xff] }
 0x264   : > { %4726 = vmatprep.subr.bf16.mxu1 %v9598_v43  ;;  %v11577_v43 = vld [vmem:[#allocation7_spill] sm:$0xff] }
 0x266   : > { %4382 = vmatpush1.bf16.msra.mxu0 %v9607_v52  ;;  %v11578_v52 = vld [vmem:[#allocation34_spill] sm:$0xff] }
 0x267   : > { %4727 = vmatpush1.bf16.msra.mxu1 %v9612_v45  ;;  %4468 = vmatprep.subr.bf16.mxu0 %v9619_v46  ;;  %v11579_v45 = vld [vmem:[#allocation10_spill] sm:$0xff]  ;;  %v11580_v46 = vld [vmem:[#allocation35_spill] sm:$0xff] }
 0x268   : > { %4795 = vmatprep.subr.bf16.mxu1 %v9624_v30  ;;  %v11581_v30 = vld [vmem:[#allocation36_spill] sm:$0xff] }
 0x269   : > { %4390 = vmatmul.mubr.bf16.vlgmr.msra.gmra.mrb[72].mxu0 %v9279_v35 }
 0x26a   : > { %4735 = vmatmul.mubr.bf16.vlgmr.msra.gmra.mrb[76].mxu1 %v9279_v35  ;;  %7137 = vmatprep.mubr.msk.bf16.mxu0 %vm2787_vm2, %v9329_v16  ;;  %v11557_v35 = vld [vmem:[#allocation4_spill] sm:$0xff] }
 0x26b   : > { %4469 = vmatpush1.bf16.msra.mxu0 %v9631_v49  ;;  %7155 = vmatprep.mubr.msk.bf16.mxu1 %vm2787_vm2, %v9329_v16  ;;  %v11560_v16 = vld [vmem:[#allocation19_spill] sm:$0xff]  ;;  %v11582_v49 = vld [vmem:[#allocation37_spill] sm:$0xff] }
 0x26c   : > { %4796 = vmatpush1.bf16.msra.mxu1 %v9637_v50  ;;  %4470 = vmatprep.subr.bf16.mxu0 %v11552_v40  ;;  %v11583_v50 = vld [vmem:[#allocation38_spill] sm:$0xff]  ;;  %v11610_v40 = vmov 0  }
 0x26d   : > { %4797 = vmatprep.subr.bf16.mxu1 %v11553_v63  ;;  %v8271_v63 = vld [vmem:[%s11399_s6 + $0x48] sm:$0xff]  }
 0x26f   : > { %4471 = vmatpush1.bf16.msra.mxu0 %v11554_v8  ;;  %v8272_v8 = vld [vmem:[%s11399_s6] sm:$0xff]  }
 0x270   : > { %4798 = vmatpush1.bf16.msra.mxu1 %v11555_v9  ;;  %4472 = vmatprep.subr.bf16.mxu0 %v11556_v21  ;;  %v11611_v9 = vld [vmem:[#allocation61_spill] sm:$0xff]  ;;  %v11612_v21 = vld [vmem:[#allocation64_spill] sm:$0xff] }
 0x271   : > { %4400 = vmatmul.mubr.bf16.gmra.mrb[76].mxu0 %v11557_v35  ;;  %4799 = vmatprep.subr.bf16.mxu1 %v11558_v22  ;;  %v8274_v22 = vld [vmem:[%s11399_s6 + $0x8] sm:$0xff]  }
 0x272   : > { %4745 = vmatmul.mubr.bf16.gmra.mrb[80].mxu1 %v11557_v35  ;;  %7138 = vmatprep.mubr.msk.bf16.mxu0 %vm2787_vm2, %v11559_v25  ;;  %v8273_v35 = vld [vmem:[%s11399_s6 + $0x50] sm:$0xff]  }
 0x273   : > { %4473 = vmatpush1.bf16.msra.mxu0 %v11560_v16  ;;  %7156 = vmatprep.mubr.msk.bf16.mxu1 %vm2787_vm2, %v11559_v25  ;;  %v8275_v25 = vld [vmem:[%s11399_s6 + $0x58] sm:$0xff]   ;;  %v8276_v16 = vld [vmem:[%s11399_s6 + $0x10] sm:$0xff]  }
 0x274   : > { %4800 = vmatpush1.bf16.msra.mxu1 %v11561_v26  ;;  %4474 = vmatprep.subr.bf16.mxu0 %v11562_v44  ;;  %v11613_v26 = vld [vmem:[#allocation63_spill] sm:$0xff]  ;;  %v11614_v44 = vld [vmem:[#allocation66_spill] sm:$0xff] }
 0x275   : > { %4801 = vmatprep.subr.bf16.mxu1 %v11563_v29  ;;  %v8277_v29 = vld [vmem:[%s11399_s6 + $0x60] sm:$0xff]  }
 0x277   : > { %4475 = vmatpush1.bf16.msra.mxu0 %v11564_v47  ;;  %v8278_v47 = vld [vmem:[%s11399_s6 + $0x18] sm:$0xff]  }
 0x278   : > { %4802 = vmatpush1.bf16.msra.mxu1 %v11565_v48  ;;  %4476 = vmatprep.subr.bf16.mxu0 %v11566_v55  ;;  %v8279_v48 = vld [vmem:[%s11399_s6 + $0x68] sm:$0xff]   ;;  %v8280_v55 = vld [vmem:[%s11399_s6 + $0x20] sm:$0xff]  }
 0x279   : > { %4410 = vmatmul.mubr.bf16.gmra.mrb[80].mxu0 %v11567_v56  ;;  %4803 = vmatprep.subr.bf16.mxu1 %v11568_v60  ;;  %v8281_v60 = vld [vmem:[%s11399_s6 + $0x70] sm:$0xff]  }
 0x27a   : > { %4755 = vmatmul.mubr.bf16.gmra.mrb[84].mxu1 %v11567_v56  ;;  %7139 = vmatprep.mubr.msk.bf16.mxu0 %vm2787_vm2, %v11569_v62  ;;  %v11615_v56 = vld [vmem:[#allocation65_spill] sm:$0xff] }
 0x27b   : > { %4477 = vmatpush1.bf16.msra.mxu0 %v11570_v18  ;;  %7157 = vmatprep.mubr.msk.bf16.mxu1 %vm2787_vm2, %v11569_v62  ;;  %v8282_v62 = vld [vmem:[%s11399_s6 + $0x28] sm:$0xff]  }
 0x27c   : > { %4804 = vmatpush1.bf16.msra.mxu1 %v11571_v19  ;;  %4478 = vmatprep.subr.bf16.mxu0 %v11572_v20 }
 0x27d   : > { %4805 = vmatprep.subr.bf16.mxu1 %v11573_v23 }
 0x27f   : > { %4479 = vmatpush1.bf16.msra.mxu0 %v11574_v27 }
 0x280   : > { %4806 = vmatpush1.bf16.msra.mxu1 %v11575_v32  ;;  %4480 = vmatprep.subr.bf16.mxu0 %v11576_v41 }
 0x281   : > { %4420 = vmatmul.mubr.bf16.gmra.mrb[84].mxu0 %v11577_v43  ;;  %4807 = vmatprep.subr.bf16.mxu1 %v11578_v52 }
 0x282   : > { %4765 = vmatmul.mubr.bf16.gmra.mrb[88].mxu1 %v11577_v43  ;;  %7140 = vmatprep.mubr.msk.bf16.mxu0 %vm2787_vm2, %v11579_v45 }
 0x283   : > { %4481 = vmatpush1.bf16.msra.mxu0 %v11580_v46  ;;  %7158 = vmatprep.mubr.msk.bf16.mxu1 %vm2787_vm2, %v11579_v45 }
 0x284   : > { %4808 = vmatpush1.bf16.msra.mxu1 %v11581_v30  ;;  %4482 = vmatprep.subr.bf16.mxu0 %v11582_v49 }
 0x285   : > { %4809 = vmatprep.subr.bf16.mxu1 %v11583_v50 }
 0x287   : > { %4483 = vmatpush1.bf16.msra.mxu0 %v11584_v53 }
 0x288   : > { %4810 = vmatpush1.bf16.msra.mxu1 %v11585_v58  ;;  %4484 = vmatprep.subr.bf16.mxu0 %v11586_v51 }
 0x289   : > { %4430 = vmatmul.mubr.bf16.gmra.mrb[88].mxu0 %v11587_v0  ;;  %4811 = vmatprep.subr.bf16.mxu1 %v11588_v6 }
 0x28a   : > { %4775 = vmatmul.mubr.bf16.gmra.mrb[92].mxu1 %v11587_v0  ;;  %7141 = vmatprep.mubr.msk.bf16.mxu0 %vm2787_vm2, %v11589_v33 }
 0x28b   : > { %4485 = vmatpush1.bf16.msra.mxu0 %v11590_v11  ;;  %7159 = vmatprep.mubr.msk.bf16.mxu1 %vm2787_vm2, %v11589_v33 }
 0x28c   : > { %4812 = vmatpush1.bf16.msra.mxu1 %v11591_v7  ;;  %4486 = vmatprep.subr.bf16.mxu0 %v11592_v1 }
 0x28d   : > { %4813 = vmatprep.subr.bf16.mxu1 %v11593_v57 }
 0x28f   : > { %4487 = vmatpush1.bf16.msra.mxu0 %v11594_v12 }
 0x290   : > { %4814 = vmatpush1.bf16.msra.mxu1 %v11595_v3  ;;  %4488 = vmatprep.subr.bf16.mxu0 %v11596_v28 }
 0x291   : > { %4440 = vmatmul.mubr.bf16.gmra.mrb[92].mxu0 %v11597_v5  ;;  %4815 = vmatprep.subr.bf16.mxu1 %v11598_v10 }
 0x292   : > { %4785 = vmatmul.mubr.bf16.gmra.mrb[96].mxu1 %v11597_v5  ;;  %7142 = vmatprep.mubr.msk.bf16.mxu0 %vm2787_vm2, %v11599_v4 }
 0x293   : > { %4489 = vmatpush1.bf16.msra.mxu0 %v11600_v54  ;;  %7160 = vmatprep.mubr.msk.bf16.mxu1 %vm2787_vm2, %v11599_v4 }
 0x294   : > { %4816 = vmatpush1.bf16.msra.mxu1 %v11601_v36  ;;  %4490 = vmatprep.subr.bf16.mxu0 %v11602_v37 }
 0x295   : > { %4817 = vmatprep.subr.bf16.mxu1 %v11603_v2 }
 0x297   : > { %4491 = vmatpush1.bf16.msra.mxu0 %v11604_v42 }
 0x298   : > { %4818 = vmatpush1.bf16.msra.mxu1 %v11605_v31  ;;  %4492 = vmatprep.subr.bf16.mxu0 %v11606_v38 }
 0x299   : > { %4819 = vmatprep.subr.bf16.mxu1 %v11607_v61 }
 0x29b   : > { %4493 = vmatpush1.bf16.msra.mxu0 %v11608_v39 }
 0x29c   : > { %4820 = vmatpush1.bf16.msra.mxu1 %v11609_v24  ;;  %5120 = vmatprep.subr.bf16.mxu0 %v11610_v40 }
 0x29d   : > { %5217 = vmatprep.subr.bf16.mxu1 %v11610_v40 }
 0x29e   : > { %4501 = vmatmul.mubr.bf16.vlgmr.msra.gmra.mrb[72].mxu0 %v11611_v9 }
 0x29f   : > { %4828 = vmatmul.mubr.bf16.vlgmr.msra.gmra.mrb[76].mxu1 %v11611_v9  ;;  %7143 = vmatprep.mubr.msk.bf16.mxu0 %vm2787_vm2, %v11612_v21 }
 0x2a0   : > { %7161 = vmatprep.mubr.msk.bf16.mxu1 %vm2787_vm2, %v11612_v21  ;;  %5121 = vmatpush1.bf16.msra.mxu0 %v8271_v63 }
 0x2a1   : > { %5218 = vmatpush1.bf16.msra.mxu1 %v8272_v8  ;;  %5122 = vmatprep.subr.bf16.mxu0 %v11610_v40 }
 0x2a2   : > { %5219 = vmatprep.subr.bf16.mxu1 %v11610_v40 }
 0x2a4   : > { %5123 = vmatpush1.bf16.msra.mxu0 %v8273_v35 }
 0x2a5   : > { %5220 = vmatpush1.bf16.msra.mxu1 %v8274_v22  ;;  %5124 = vmatprep.subr.bf16.mxu0 %v11610_v40 }
 0x2a6   : > { %4511 = vmatmul.mubr.bf16.gmra.mrb[76].mxu0 %v11613_v26  ;;  %5221 = vmatprep.subr.bf16.mxu1 %v11610_v40 }
 0x2a7   : > { %4838 = vmatmul.mubr.bf16.gmra.mrb[80].mxu1 %v11613_v26  ;;  %7144 = vmatprep.mubr.msk.bf16.mxu0 %vm2787_vm2, %v11614_v44 }
 0x2a8   : > { %7162 = vmatprep.mubr.msk.bf16.mxu1 %vm2787_vm2, %v11614_v44  ;;  %5125 = vmatpush1.bf16.msra.mxu0 %v8275_v25 }
 0x2a9   : > { %5222 = vmatpush1.bf16.msra.mxu1 %v8276_v16  ;;  %5126 = vmatprep.subr.bf16.mxu0 %v11610_v40 }
 0x2aa   : > { %5223 = vmatprep.subr.bf16.mxu1 %v11610_v40 }
 0x2ac   : > { %5127 = vmatpush1.bf16.msra.mxu0 %v8277_v29 }
 0x2ad   : > { %5224 = vmatpush1.bf16.msra.mxu1 %v8278_v47  ;;  %5128 = vmatprep.subr.bf16.mxu0 %v11610_v40 }
 0x2ae   : > { %4521 = vmatmul.mubr.bf16.gmra.mrb[80].mxu0 %v11615_v56  ;;  %5225 = vmatprep.subr.bf16.mxu1 %v11610_v40 }
 0x2af   : > { %4848 = vmatmul.mubr.bf16.gmra.mrb[84].mxu1 %v11615_v56  ;;  %7145 = vmatprep.mubr.msk.bf16.mxu0 %vm2787_vm2, %v10184_v17 }
 0x2b0   : > { %7163 = vmatprep.mubr.msk.bf16.mxu1 %vm2787_vm2, %v10184_v17  ;;  %5129 = vmatpush1.bf16.msra.mxu0 %v8279_v48  ;;  %v11616_v17 = vld [vmem:[#allocation3_spill] sm:$0xff] }
 0x2b1   : > { %5226 = vmatpush1.bf16.msra.mxu1 %v8280_v55  ;;  %5130 = vmatprep.subr.bf16.mxu0 %v11610_v40 }
 0x2b2   : > { %5227 = vmatprep.subr.bf16.mxu1 %v11610_v40 }
 0x2b4   : > { %5131 = vmatpush1.bf16.msra.mxu0 %v8281_v60 }
 0x2b5   : > { %5228 = vmatpush1.bf16.msra.mxu1 %v8282_v62  ;;  %5132 = vmatprep.subr.bf16.mxu0 %v11610_v40 }
 0x2b6   : > { %4531 = vmatmul.mubr.bf16.gmra.mrb[84].mxu0 %v10180_v13  ;;  %5229 = vmatprep.subr.bf16.mxu1 %v11610_v40 }
 0x2b7   : > { %4858 = vmatmul.mubr.bf16.gmra.mrb[88].mxu1 %v10180_v13  ;;  %7146 = vmatprep.mubr.msk.bf16.mxu0 %vm2787_vm2, %v10226_v34  ;;  %v687_v13 = vld [vmem:[%s11398_s5] sm:$0x3] }
 0x2b8   : > { %7164 = vmatprep.mubr.msk.bf16.mxu1 %vm2787_vm2, %v10226_v34  ;;  %v11617_v34 = vsub.s32 0, %v11616_v17 }
 0x2ba   : > { %v10571_v18 = vrot.slane %v687_v13, %v11617_v34 }
 0x2be   : > { %4541 = vmatmul.mubr.bf16.gmra.mrb[88].mxu0 %v10224_v15 }
 0x2bf   : > { %4868 = vmatmul.mubr.bf16.gmra.mrb[92].mxu1 %v10224_v15  ;;  %7147 = vmatprep.mubr.msk.bf16.mxu0 %vm2787_vm2, %v10260_v14  ;;  %v11618_v15 = vsub.s32 1, %v11616_v17 }
 0x2c0   : > { %7165 = vmatprep.mubr.msk.bf16.mxu1 %vm2787_vm2, %v10260_v14 }
 0x2c1   : > { %v10575_v19 = vrot.slane %v687_v13, %v11618_v15 }
 0x2c6   : > { %4551 = vmatmul.mubr.bf16.gmra.mrb[92].mxu0 %v10256_v59 }
 0x2c7   : > { %4878 = vmatmul.mubr.bf16.gmra.mrb[96].mxu1 %v10256_v59 }
 0x2d3   : > { %v3349_v20 = vpop.f32.mrb[48].mxu0  ;;  %v4157_v23 = vpop.f32.mrb[52].mxu1 }
 0x2d4   : > { %v10578_v14 = vadd.f32 %v10571_v18, %v3349_v20  ;;  %v10581_v27 = vadd.f32 %v4157_v23, %v10571_v18  ;;  %v3351_v59 = vpop.f32.mrb[49].mxu0  ;;  %v4159_v32 = vpop.f32.mrb[53].mxu1 }
 0x2d5   : > { %v10584_v41 = vadd.f32 %v10575_v19, %v3351_v59  ;;  %v10587_v43 = vadd.f32 %v4159_v32, %v10575_v19  ;;  %v3353_v52 = vpop.f32.mrb[50].mxu0  ;;  %v4161_v45 = vpop.f32.mrb[54].mxu1 }
 0x2d6   : > { %v10592_v30 = vadd.f32 %v10571_v18, %v3353_v52  ;;  %v10595_v49 = vadd.f32 %v4161_v45, %v10571_v18  ;;  %v3355_v50 = vpop.f32.mrb[51].mxu0  ;;  %v4163_v53 = vpop.f32.mrb[55].mxu1 }
 0x2d7   : > { %v10600_v51 = vadd.f32 %v10575_v19, %v3355_v50  ;;  %v10603_v0 = vadd.f32 %v4163_v53, %v10575_v19 }
 0x2db   : > { %v3359_v11 = vpop.f32.mrb[52].mxu0  ;;  %v4167_v7 = vpop.f32.mrb[56].mxu1 }
 0x2dc   : > { %v10610_v1 = vadd.f32 %v10571_v18, %v3359_v11  ;;  %v10613_v57 = vadd.f32 %v4167_v7, %v10571_v18  ;;  %v3361_v12 = vpop.f32.mrb[53].mxu0  ;;  %v4169_v3 = vpop.f32.mrb[57].mxu1 }
 0x2dd   : > { %v10616_v28 = vadd.f32 %v10575_v19, %v3361_v12  ;;  %v10619_v5 = vadd.f32 %v4169_v3, %v10575_v19  ;;  %v3363_v10 = vpop.f32.mrb[54].mxu0  ;;  %v4171_v4 = vpop.f32.mrb[58].mxu1 }
 0x2de   : > { %v10624_v36 = vadd.f32 %v10571_v18, %v3363_v10  ;;  %v10627_v37 = vadd.f32 %v4171_v4, %v10571_v18  ;;  %v3365_v2 = vpop.f32.mrb[55].mxu0  ;;  %v4173_v42 = vpop.f32.mrb[59].mxu1 }
 0x2df   : > { %v10632_v38 = vadd.f32 %v10575_v19, %v3365_v2  ;;  %v10635_v61 = vadd.f32 %v4173_v42, %v10575_v19 }
 0x2e3   : > { %v3369_v63 = vpop.f32.mrb[56].mxu0 }
 0x2e4   : > { %v4177_v8 = vpop.f32.mrb[60].mxu1  ;;  %v10642_v9 = vadd.f32 %v10571_v18, %v3369_v63  ;;  %v3371_v35 = vpop.f32.mrb[57].mxu0 }
 0x2e5   : > { %v10645_v21 = vadd.f32 %v4177_v8, %v10571_v18  ;;  %v4179_v22 = vpop.f32.mrb[61].mxu1  ;;  %v10648_v25 = vadd.f32 %v10575_v19, %v3371_v35  ;;  %v3373_v26 = vpop.f32.mrb[58].mxu0  ;;  %v8284_v35 = vld [vmem:[%s11399_s6 + $0x30] sm:$0xff]  }
 0x2e6   : > { %v10651_v16 = vadd.f32 %v4179_v22, %v10575_v19  ;;  %v4181_v44 = vpop.f32.mrb[62].mxu1  ;;  %v10656_v47 = vadd.f32 %v10571_v18, %v3373_v26  ;;  %v3375_v55 = vpop.f32.mrb[59].mxu0  ;;  %v8283_v26 = vld [vmem:[%s11399_s6 + $0x78] sm:$0xff]   ;;  %5230 = vmatpush1.bf16.msra.mxu1 %v8284_v35 }
 0x2e7   : > { %v10659_v48 = vadd.f32 %v4181_v44, %v10571_v18  ;;  %v4183_v56 = vpop.f32.mrb[63].mxu1  ;;  %v10664_v62 = vadd.f32 %v10575_v19, %v3375_v55  ;;  %5231 = vmatprep.subr.bf16.mxu1 %v11610_v40  ;;  %5133 = vmatpush1.bf16.msra.mxu0 %v8283_v26 }
 0x2e8   : > { %v10667_v13 = vadd.f32 %v4183_v56, %v10575_v19  ;;  %5134 = vmatprep.subr.bf16.mxu0 %v11610_v40 }
 0x2eb   : > { %v3379_v15 = vpop.f32.mrb[60].mxu0 }
 0x2ec   : > { %v4187_v20 = vpop.f32.mrb[64].mxu1  ;;  %v10674_v23 = vadd.f32 %v10571_v18, %v3379_v15  ;;  %v3381_v32 = vpop.f32.mrb[61].mxu0 }
 0x2ed   : > { %v10677_v59 = vadd.f32 %v4187_v20, %v10571_v18  ;;  %v4189_v52 = vpop.f32.mrb[65].mxu1  ;;  %v10680_v45 = vadd.f32 %v10575_v19, %v3381_v32  ;;  %v3383_v53 = vpop.f32.mrb[62].mxu0 }
 0x2ee   : > { %v10683_v50 = vadd.f32 %v4189_v52, %v10575_v19  ;;  %v4191_v11 = vpop.f32.mrb[66].mxu1  ;;  %v10688_v12 = vadd.f32 %v10571_v18, %v3383_v53  ;;  %v3385_v10 = vpop.f32.mrb[63].mxu0  ;;  %v8285_v52 = vld [vmem:[%s11399_s6 + $0x38] sm:$0xff]  }
 0x2ef   : > { %v10691_v3 = vadd.f32 %v4191_v11, %v10571_v18  ;;  %v4193_v4 = vpop.f32.mrb[67].mxu1  ;;  %v10696_v42 = vadd.f32 %v10575_v19, %v3385_v10  ;;  %5232 = vmatpush1.bf16.msra.mxu1 %v8285_v52  ;;  %v8287_v52 = vld [vmem:[%s11399_s6 + $0x40] sm:$0xff]  }
 0x2f0   : > { %v10699_v63 = vadd.f32 %v4193_v4, %v10575_v19  ;;  %5233 = vmatprep.subr.bf16.mxu1 %v11610_v40 }
 0x2f3   : > { %v3389_v44 = vpop.f32.mrb[64].mxu0  ;;  %5234 = vmatpush1.bf16.msra.mxu1 %v8287_v52 }
 0x2f4   : > { %v4197_v55 = vpop.f32.mrb[68].mxu1  ;;  %v10713_v56 = vadd.f32 %v10571_v18, %v3389_v44  ;;  %v3391_v20 = vpop.f32.mrb[65].mxu0  ;;  %5455 = vmatprep.subr.bf16.mxu1 %v11610_v40 }
 0x2f5   : > { %v10716_v15 = vadd.f32 %v4197_v55, %v10571_v18  ;;  %v4199_v32 = vpop.f32.mrb[69].mxu1  ;;  %v10722_v53 = vadd.f32 %v10575_v19, %v3391_v20  ;;  %v3393_v10 = vpop.f32.mrb[66].mxu0  ;;  %v8286_v20 = vld [vmem:[%s11399_s6 + $0x80] sm:$0xff]  }
 0x2f6   : > { %v10725_v11 = vadd.f32 %v4199_v32, %v10575_v19  ;;  %v4201_v4 = vpop.f32.mrb[70].mxu1  ;;  %v10731_v44 = vadd.f32 %v10571_v18, %v3393_v10  ;;  %v3395_v55 = vpop.f32.mrb[67].mxu0  ;;  %5135 = vmatpush1.bf16.msra.mxu0 %v8286_v20 }
 0x2f7   : > { %v10734_v26 = vadd.f32 %v4201_v4, %v10571_v18  ;;  %v4203_v22 = vpop.f32.mrb[71].mxu1  ;;  %v10742_v8 = vadd.f32 %v10575_v19, %v3395_v55  ;;  %5136 = vmatprep.subr.bf16.mxu0 %v11610_v40 }
 0x2f8   : > { %v10745_v35 = vadd.f32 %v4203_v22, %v10575_v19  ;;  %v8288_v22 = vld [vmem:[%s11399_s6 + $0x88] sm:$0xff]  }
 0x2fa   : > { %5137 = vmatpush1.bf16.msra.mxu0 %v8288_v22 }
 0x2fb   : > { %v3399_v55 = vpop.f32.mrb[68].mxu0  ;;  %5333 = vmatprep.subr.bf16.mxu0 %v11610_v40 }
 0x2fc   : > { %v4207_v32 = vpop.f32.mrb[72].mxu1  ;;  %v10761_v20 = vadd.f32 %v10571_v18, %v3399_v55  ;;  %v3401_v2 = vpop.f32.mrb[69].mxu0 }
 0x2fd   : > { %v10764_v10 = vadd.f32 %v4207_v32, %v10571_v18  ;;  %v4209_v7 = vpop.f32.mrb[73].mxu1  ;;  %v10767_v4 = vadd.f32 %v10575_v19, %v3401_v2  ;;  %v3403_v34 = vpop.f32.mrb[70].mxu0 }
 0x2fe   : > { %v10770_v52 = vadd.f32 %v4209_v7, %v10575_v19  ;;  %v4211_v17 = vpop.f32.mrb[74].mxu1  ;;  %v10776_v60 = vadd.f32 %v10571_v18, %v3403_v34  ;;  %v3405_v22 = vpop.f32.mrb[71].mxu0 }
 0x2ff   : > { %11619 = vst [vmem:[#allocation13_spill] sm:$0xff] %v10767_v4  ;;  %v10779_v32 = vadd.f32 %v4211_v17, %v10571_v18  ;;  %v4213_v29 = vpop.f32.mrb[75].mxu1  ;;  %v10784_v7 = vadd.f32 %v10575_v19, %v3405_v22 }
 0x300   : > { %11620 = vst [vmem:[#allocation14_spill] sm:$0xff] %v10770_v52  ;;  %11621 = vst [vmem:[#allocation15_spill] sm:$0xff] %v10776_v60  ;;  %v10787_v24 = vadd.f32 %v4213_v29, %v10575_v19 }
 0x301   : > { %11622 = vst [vmem:[#allocation16_spill] sm:$0xff] %v10779_v32  ;;  %11623 = vst [vmem:[#allocation17_spill] sm:$0xff] %v10784_v7 }
 0x302   : > { %11624 = vst [vmem:[#allocation4_spill] sm:$0xff] %v10787_v24 }
 0x371   : > { %v4502_v39 = vpop.f32.mrb[72].mxu0 }
 0x372   : > { %v4585_v17 = vadd.f32 %v4502_v39, %v10571_v18  ;;  %v4829_v31 = vpop.f32.mrb[76].mxu1  ;;  %v4504_v54 = vpop.f32.mrb[73].mxu0 }
 0x373   : > { %v4912_v33 = vadd.f32 %v4829_v31, %v10571_v18  ;;  %v4586_v2 = vadd.f32 %v4504_v54, %v10575_v19  ;;  %v4831_v22 = vpop.f32.mrb[77].mxu1  ;;  %v4506_v6 = vpop.f32.mrb[74].mxu0  ;;  %v11625_v54 = vmax.f32 %v10578_v14, %v10581_v27 }
 0x374   : > { %v4913_v29 = vadd.f32 %v4831_v22, %v10575_v19  ;;  %v4587_v58 = vadd.f32 %v4506_v6, %v10571_v18  ;;  %v4833_v46 = vpop.f32.mrb[78].mxu1  ;;  %v4508_v55 = vpop.f32.mrb[75].mxu0  ;;  %v11626_v22 = vmax.f32 %v10584_v41, %v10587_v43 }
 0x375   : > { %v4960_v32 = vmax.f32 %v4585_v17, %v4912_v33  ;;  %v4914_v34 = vadd.f32 %v4833_v46, %v10571_v18  ;;  %v4588_v24 = vadd.f32 %v4508_v55, %v10575_v19  ;;  %v4835_v39 = vpop.f32.mrb[79].mxu1  ;;  %v11627_v33 = vmax.f32 %v10592_v30, %v10595_v49 }
 0x376   : > { %v4961_v7 = vmax.f32 %v4586_v2, %v4913_v29  ;;  %v4915_v60 = vadd.f32 %v4835_v39, %v10575_v19  ;;  %v11628_v55 = vmax.f32 %v10600_v51, %v10603_v0  ;;  %v8289_v0 = vld [vmem:[%s11399_s6 + $0xd8] sm:$0xff]  }
 0x377   : > { %v4984_v31 = vmax.f32 %v11625_v54, %v4960_v32  ;;  %v4962_v52 = vmax.f32 %v4587_v58, %v4914_v34 }
 0x378   : > { %v4985_v6 = vmax.f32 %v11626_v22, %v4961_v7  ;;  %v4963_v4 = vmax.f32 %v4588_v24, %v4915_v60 }
 0x379   : > { %v4986_v46 = vmax.f32 %v11627_v33, %v4962_v52  ;;  %v4512_v17 = vpop.f32.mrb[76].mxu0 }
 0x37a   : > { %v4987_v2 = vmax.f32 %v11628_v55, %v4963_v4  ;;  %v4589_v29 = vadd.f32 %v4512_v17, %v10571_v18  ;;  %v4839_v39 = vpop.f32.mrb[80].mxu1  ;;  %v4514_v14 = vpop.f32.mrb[77].mxu0 }
 0x37b   : > { %v5008_v27 = vpack.c.bf16 %v4986_v46, %v4984_v31  ;;  %v4916_v58 = vadd.f32 %v4839_v39, %v10571_v18  ;;  %v4590_v41 = vadd.f32 %v4514_v14, %v10575_v19  ;;  %v4841_v43 = vpop.f32.mrb[81].mxu1  ;;  %v4516_v24 = vpop.f32.mrb[78].mxu0  ;;  %v11629_v46 = vmax.f32 %v10610_v1, %v10613_v57  ;;  %v8291_v14 = vld [vmem:[%s11399_s6 + $0xe0] sm:$0xff]  }
 0x37c   : > { %v5009_v60 = vpack.c.bf16 %v4987_v2, %v4985_v6  ;;  %v4917_v30 = vadd.f32 %v4841_v43, %v10575_v19  ;;  %v4591_v49 = vadd.f32 %v4516_v24, %v10571_v18  ;;  %v4843_v52 = vpop.f32.mrb[82].mxu1  ;;  %v4518_v51 = vpop.f32.mrb[79].mxu0  ;;  %v8290_v6 = vld [vmem:[%s11399_s6 + $0x90] sm:$0xff]   ;;  %v11630_v2 = vmax.f32 %v10616_v28, %v10619_v5  ;;  %v8292_v24 = vld [vmem:[%s11399_s6 + $0x98] sm:$0xff]  }
 0x37d   : > { %v4964_v4 = vmax.f32 %v4589_v29, %v4916_v58  ;;  %v4918_v32 = vadd.f32 %v4843_v52, %v10571_v18  ;;  %v4592_v7 = vadd.f32 %v4518_v51, %v10575_v19  ;;  %v4845_v34 = vpop.f32.mrb[83].mxu1  ;;  %v5059_v33 = vrot.slane %v5008_v27, 4 }
 0x37e   : > { %v4965_v54 = vmax.f32 %v4590_v41, %v4917_v30  ;;  %v4919_v31 = vadd.f32 %v4845_v34, %v10575_v19  ;;  %7203 = vmatprep.mubr.msk.bf16.mxu1 %vm5116_vm3, %v5009_v60  ;;  %v5060_v22 = vrot.slane %v5009_v60, 4  ;;  %v11631_v58 = vmax.f32 %v10624_v36, %v10627_v37 }
 0x37f   : > { %v4988_v17 = vmax.f32 %v11629_v46, %v4964_v4  ;;  %v4966_v55 = vmax.f32 %v4591_v49, %v4918_v32  ;;  %5250 = vmatmul.mubr.bf16.vlgmr.msra.gmra.mrb[100].mxu1 %v5008_v27  ;;  %v11632_v57 = vmax.f32 %v10632_v38, %v10635_v61  ;;  %v8293_v4 = vld [vmem:[%s11399_s6 + $0xe8] sm:$0xff]   ;;  %v11633_v46 = vmax.f32 %v10642_v9, %v10645_v21 }
 0x380   : > { %v4989_v29 = vmax.f32 %v11630_v2, %v4965_v54  ;;  %v4967_v39 = vmax.f32 %v4592_v7, %v4919_v31  ;;  %5456 = vmatpush1.bf16.msra.mxu1 %v8289_v0  ;;  %7193 = vmatprep.mubr.msk.bf16.mxu0 %vm5116_vm3, %v5060_v22  ;;  %v11634_v2 = vmax.f32 %v10648_v25, %v10651_v16 }
 0x381   : > { %v4990_v41 = vmax.f32 %v11631_v58, %v4966_v55  ;;  %5153 = vmatmul.mubr.bf16.vlgmr.msra.gmra.mrb[96].mxu0 %v5059_v33  ;;  %v4522_v1 = vpop.f32.mrb[80].mxu0  ;;  %5457 = vmatprep.subr.bf16.mxu1 %v11610_v40  ;;  %v8294_v33 = vld [vmem:[%s11399_s6 + $0xa0] sm:$0xff]   ;;  %v11635_v58 = vmax.f32 %v10656_v47, %v10659_v48 }
 0x382   : > { %v4991_v28 = vmax.f32 %v11632_v57, %v4967_v39  ;;  %5334 = vmatpush1.bf16.msra.mxu0 %v8290_v6  ;;  %v4593_v5 = vadd.f32 %v4522_v1, %v10571_v18  ;;  %v4849_v27 = vpop.f32.mrb[84].mxu1  ;;  %v4524_v43 = vpop.f32.mrb[81].mxu0 }
 0x383   : > { %v10849_v60 = vpack.c.bf16 %v4990_v41, %v4988_v17  ;;  %v4920_v36 = vadd.f32 %v4849_v27, %v10571_v18  ;;  %v4594_v37 = vadd.f32 %v4524_v43, %v10575_v19  ;;  %v4851_v30 = vpop.f32.mrb[85].mxu1  ;;  %v4526_v49 = vpop.f32.mrb[82].mxu0  ;;  %5335 = vmatprep.subr.bf16.mxu0 %v11610_v40  ;;  %v11636_v41 = vmax.f32 %v10664_v62, %v10667_v13 }
 0x384   : > { %v5011_v38 = vpack.c.bf16 %v4991_v28, %v4989_v29  ;;  %v4921_v61 = vadd.f32 %v4851_v30, %v10575_v19  ;;  %5458 = vmatpush1.bf16.msra.mxu1 %v8291_v14  ;;  %v4595_v52 = vadd.f32 %v4526_v49, %v10571_v18  ;;  %v4853_v51 = vpop.f32.mrb[86].mxu1  ;;  %v4528_v0 = vpop.f32.mrb[83].mxu0  ;;  %v8295_v14 = vld [vmem:[%s11399_s6 + $0xf0] sm:$0xff]   ;;  %v8296_v28 = vld [vmem:[%s11399_s6 + $0xa8] sm:$0xff]   ;;  %v8297_v30 = vld [vmem:[%s11399_s6 + $0xf8] sm:$0xff]  }
 0x385   : > { %v4968_v32 = vmax.f32 %v4593_v5, %v4920_v36  ;;  %v4922_v7 = vadd.f32 %v4853_v51, %v10571_v18  ;;  %v4596_v34 = vadd.f32 %v4528_v0, %v10575_v19  ;;  %v4855_v54 = vpop.f32.mrb[87].mxu1  ;;  %5459 = vmatprep.subr.bf16.mxu1 %v11610_v40 }
 0x386   : > { %v4969_v31 = vmax.f32 %v4594_v37, %v4921_v61  ;;  %v4923_v22 = vadd.f32 %v4855_v54, %v10575_v19  ;;  %5336 = vmatpush1.bf16.msra.mxu0 %v8292_v24  ;;  %7231 = vmatprep.mubr.msk.bf16.mxu0 %vm5116_vm3, %v5011_v38  ;;  %v5396_v6 = vrot.slane %v5011_v38, 4  ;;  %v11638_v54 = vmax.f32 %v10680_v45, %v10683_v50 }
 0x387   : > { %v4992_v17 = vmax.f32 %v11633_v46, %v4968_v32  ;;  %v4970_v55 = vmax.f32 %v4595_v52, %v4922_v7  ;;  %5337 = vmatprep.subr.bf16.mxu0 %v11610_v40  ;;  %v11637_v32 = vmax.f32 %v10674_v23, %v10677_v59  ;;  %v11640_v23 = vmax.f32 %v10696_v42, %v10699_v63 }
 0x388   : > { %v4993_v29 = vmax.f32 %v11634_v2, %v4969_v31  ;;  %v4971_v39 = vmax.f32 %v4596_v34, %v4923_v22  ;;  %5460 = vmatpush1.bf16.msra.mxu1 %v8293_v4  ;;  %7259 = vmatprep.mubr.msk.bf16.mxu1 %vm5116_vm3, %v5396_v6  ;;  %v8298_v4 = vld [vmem:[%s11399_s6 + $0xb0] sm:$0xff]   ;;  %v8299_v6 = vld [vmem:[%s11399_s6 + $0x100] sm:$0xff]   ;;  %v8300_v2 = vld [vmem:[%s11399_s6 + $0xb8] sm:$0xff]  }
 0x389   : > { %v4994_v9 = vmax.f32 %v11635_v58, %v4970_v55  ;;  %v4532_v21 = vpop.f32.mrb[84].mxu0  ;;  %5461 = vmatprep.subr.bf16.mxu1 %v11610_v40 }
 0x38a   : > { %v4995_v25 = vmax.f32 %v11636_v41, %v4971_v39  ;;  %5338 = vmatpush1.bf16.msra.mxu0 %v8294_v33  ;;  %v4597_v16 = vadd.f32 %v4532_v21, %v10571_v18  ;;  %v4859_v1 = vpop.f32.mrb[88].mxu1  ;;  %v4534_v57 = vpop.f32.mrb[85].mxu0  ;;  %v11639_v33 = vmax.f32 %v10688_v12, %v10691_v3  ;;  %v8301_v41 = vld [vmem:[%s11399_s6 + $0x108] sm:$0xff]  }
 0x38b   : > { %v10889_v5 = vpack.c.bf16 %v4994_v9, %v4992_v17  ;;  %v4924_v47 = vadd.f32 %v4859_v1, %v10571_v18  ;;  %v4598_v48 = vadd.f32 %v4534_v57, %v10575_v19  ;;  %v4861_v27 = vpop.f32.mrb[89].mxu1  ;;  %v4536_v43 = vpop.f32.mrb[86].mxu0  ;;  %5339 = vmatprep.subr.bf16.mxu0 %v11610_v40 }
 0x38c   : > { %v10894_v62 = vpack.c.bf16 %v4995_v25, %v4993_v29  ;;  %v4925_v13 = vadd.f32 %v4861_v27, %v10575_v19  ;;  %5462 = vmatpush1.bf16.msra.mxu1 %v8295_v14  ;;  %v4599_v24 = vadd.f32 %v4536_v43, %v10571_v18  ;;  %v4863_v36 = vpop.f32.mrb[90].mxu1  ;;  %v4538_v37 = vpop.f32.mrb[87].mxu0  ;;  %v11641_v27 = vmax.f32 %v10713_v56, %v10716_v15 }
 0x38d   : > { %v4972_v49 = vmax.f32 %v4597_v16, %v4924_v47  ;;  %v4926_v38 = vadd.f32 %v4863_v36, %v10571_v18  ;;  %v4600_v61 = vadd.f32 %v4538_v37, %v10575_v19  ;;  %v4865_v52 = vpop.f32.mrb[91].mxu1  ;;  %5463 = vmatprep.subr.bf16.mxu1 %v11610_v40  ;;  %v11644_v56 = vmax.f32 %v10742_v8, %v10745_v35 }
 0x38e   : > { %v4973_v51 = vmax.f32 %v4598_v48, %v4925_v13  ;;  %v4927_v0 = vadd.f32 %v4865_v52, %v10575_v19  ;;  %5340 = vmatpush1.bf16.msra.mxu0 %v8296_v28  ;;  %v8302_v48 = vld [vmem:[%s11399_s6 + $0xc0] sm:$0xff]  }
 0x38f   : > { %v4996_v7 = vmax.f32 %v11637_v32, %v4972_v49  ;;  %v4974_v34 = vmax.f32 %v4599_v24, %v4926_v38  ;;  %5341 = vmatprep.subr.bf16.mxu0 %v11610_v40  ;;  %v11642_v24 = vmax.f32 %v10722_v53, %v10725_v11  ;;  %v11643_v49 = vmax.f32 %v10731_v44, %v10734_v26 }
 0x390   : > { %v4997_v31 = vmax.f32 %v11638_v54, %v4973_v51  ;;  %v4975_v22 = vmax.f32 %v4600_v61, %v4927_v0  ;;  %5464 = vmatpush1.bf16.msra.mxu1 %v8297_v30  ;;  %v8303_v30 = vld [vmem:[%s11399_s6 + $0x110] sm:$0xff]   ;;  %v8304_v51 = vld [vmem:[%s11399_s6 + $0xc8] sm:$0xff]  }
 0x391   : > { %v4998_v46 = vmax.f32 %v11639_v33, %v4974_v34  ;;  %v4542_v17 = vpop.f32.mrb[88].mxu0  ;;  %5465 = vmatprep.subr.bf16.mxu1 %v11610_v40 }
 0x392   : > { %v4999_v59 = vmax.f32 %v11640_v23, %v4975_v22  ;;  %5342 = vmatpush1.bf16.msra.mxu0 %v8298_v4  ;;  %v4601_v45 = vadd.f32 %v4542_v17, %v10571_v18  ;;  %v4869_v50 = vpop.f32.mrb[92].mxu1  ;;  %v4544_v55 = vpop.f32.mrb[89].mxu0 }
 0x393   : > { %v10929_v29 = vpack.c.bf16 %v4998_v46, %v4996_v7  ;;  %v4928_v12 = vadd.f32 %v4869_v50, %v10571_v18  ;;  %v4602_v3 = vadd.f32 %v4544_v55, %v10575_v19  ;;  %v4871_v39 = vpop.f32.mrb[93].mxu1  ;;  %v4546_v14 = vpop.f32.mrb[90].mxu0  ;;  %5343 = vmatprep.subr.bf16.mxu0 %v11610_v40 }
 0x394   : > { %v10934_v42 = vpack.c.bf16 %v4999_v59, %v4997_v31  ;;  %v4929_v63 = vadd.f32 %v4871_v39, %v10575_v19  ;;  %5466 = vmatpush1.bf16.msra.mxu1 %v8299_v6  ;;  %v4603_v58 = vadd.f32 %v4546_v14, %v10571_v18  ;;  %v4873_v9 = vpop.f32.mrb[94].mxu1  ;;  %v4548_v21 = vpop.f32.mrb[91].mxu0  ;;  %v8305_v31 = vld [vmem:[%s11399_s6 + $0x118] sm:$0xff]   ;;  %v8306_v59 = vld [vmem:[%s11399_s6 + $0xd0] sm:$0xff]   ;;  %v11649_v14 = vld [vmem:[#allocation15_spill] sm:$0xff] }
 0x395   : > { %v4976_v25 = vmax.f32 %v4601_v45, %v4928_v12  ;;  %v4930_v16 = vadd.f32 %v4873_v9, %v10571_v18  ;;  %v4604_v1 = vadd.f32 %v4548_v21, %v10575_v19  ;;  %v4875_v57 = vpop.f32.mrb[95].mxu1  ;;  %5467 = vmatprep.subr.bf16.mxu1 %v11610_v40  ;;  %v11645_v45 = vmax.f32 %v10761_v20, %v10764_v10  ;;  %v11652_v20 = vld [vmem:[#allocation17_spill] sm:$0xff]  ;;  %v11653_v21 = vld [vmem:[#allocation4_spill] sm:$0xff] }
 0x396   : > { %v4977_v28 = vmax.f32 %v4602_v3, %v4929_v63  ;;  %v4931_v47 = vadd.f32 %v4875_v57, %v10575_v19  ;;  %5344 = vmatpush1.bf16.msra.mxu0 %v8300_v2  ;;  %v11647_v2 = vld [vmem:[#allocation14_spill] sm:$0xff]  ;;  %v11650_v63 = vld [vmem:[#allocation16_spill] sm:$0xff]  ;;  %v5395_v10 = vrot.slane %v10849_v60, 4 }
 0x397   : > { %v5000_v43 = vmax.f32 %v11641_v27, %v4976_v25  ;;  %v4978_v13 = vmax.f32 %v4603_v58, %v4930_v16  ;;  %5345 = vmatprep.subr.bf16.mxu0 %v11610_v40  ;;  %v11651_v58 = vmax.f32 %v11649_v14, %v11650_v63  ;;  %v5635_v16 = vrot.slane %v10894_v62, 4  ;;  %v8311_v27 = vld [vmem:[%s11399_s6 + $0x178] sm:$0xff]   ;;  %v8354_v14 = vld [vmem:[%s11399_s6 + $0x268] sm:$0xff]  }
 0x398   : > { %v5001_v36 = vmax.f32 %v11642_v24, %v4977_v28  ;;  %v4979_v37 = vmax.f32 %v4604_v1, %v4931_v47  ;;  %5468 = vmatpush1.bf16.msra.mxu1 %v8301_v41  ;;  %v11654_v41 = vmax.f32 %v11652_v20, %v11653_v21  ;;  %v8308_v1 = vld [vmem:[%s11399_s6 + $0x120] sm:$0xff]   ;;  %v8309_v47 = vld [vmem:[%s11399_s6 + $0x170] sm:$0xff]   ;;  %v8355_v63 = vld [vmem:[%s11399_s6 + $0x2b8] sm:$0xff]  }
 0x399   : > { %v5002_v38 = vmax.f32 %v11643_v49, %v4978_v13  ;;  %v4552_v61 = vpop.f32.mrb[92].mxu0  ;;  %5469 = vmatprep.subr.bf16.mxu1 %v11610_v40  ;;  %v8315_v13 = vld [vmem:[%s11399_s6 + $0x188] sm:$0xff]   ;;  %v8316_v24 = vld [vmem:[%s11399_s6 + $0x140] sm:$0xff]   ;;  %v8320_v49 = vld [vmem:[%s11399_s6 + $0x150] sm:$0xff]  }
 0x39a   : > { %v5003_v15 = vmax.f32 %v11644_v56, %v4979_v37  ;;  %5346 = vmatpush1.bf16.msra.mxu0 %v8302_v48  ;;  %v4605_v53 = vadd.f32 %v4552_v61, %v10571_v18  ;;  %v4879_v11 = vpop.f32.mrb[96].mxu1  ;;  %v4554_v52 = vpop.f32.mrb[93].mxu0  ;;  %v8310_v48 = vld [vmem:[%s11399_s6 + $0x128] sm:$0xff]   ;;  %v8322_v61 = vld [vmem:[%s11399_s6 + $0x158] sm:$0xff]   ;;  %v8360_v21 = vld [vmem:[%s11399_s6 + $0x280] sm:$0xff]  }
 0x39b   : > { %v10969_v0 = vpack.c.bf16 %v5002_v38, %v5000_v43  ;;  %v4932_v44 = vadd.f32 %v4879_v11, %v10571_v18  ;;  %v4606_v26 = vadd.f32 %v4554_v52, %v10575_v19  ;;  %v4881_v4 = vpop.f32.mrb[97].mxu1  ;;  %v4556_v32 = vpop.f32.mrb[94].mxu0  ;;  %5347 = vmatprep.subr.bf16.mxu0 %v11610_v40  ;;  %v8314_v43 = vld [vmem:[%s11399_s6 + $0x138] sm:$0xff]   ;;  %v8318_v37 = vld [vmem:[%s11399_s6 + $0x148] sm:$0xff]   ;;  %v8321_v38 = vld [vmem:[%s11399_s6 + $0x1a0] sm:$0xff]   ;;  %v5634_v11 = vrot.slane %v10889_v5, 4 }
 0x39c   : > { %v10974_v8 = vpack.c.bf16 %v5003_v15, %v5001_v36  ;;  %v4933_v35 = vadd.f32 %v4881_v4, %v10575_v19  ;;  %5470 = vmatpush1.bf16.msra.mxu1 %v8303_v30  ;;  %v4607_v7 = vadd.f32 %v4556_v32, %v10571_v18  ;;  %v4883_v34 = vpop.f32.mrb[98].mxu1  ;;  %v4558_v54 = vpop.f32.mrb[95].mxu0  ;;  %v8317_v36 = vld [vmem:[%s11399_s6 + $0x190] sm:$0xff]   ;;  %v8319_v30 = vld [vmem:[%s11399_s6 + $0x198] sm:$0xff]   ;;  %v8323_v56 = vld [vmem:[%s11399_s6 + $0x1a8] sm:$0xff]   ;;  %v5874_v52 = vrot.slane %v10934_v42, 4 }
 0x39d   : > { %v4980_v22 = vmax.f32 %v4605_v53, %v4932_v44  ;;  %v4934_v6 = vadd.f32 %v4883_v34, %v10571_v18  ;;  %v4608_v33 = vadd.f32 %v4558_v54, %v10575_v19  ;;  %v4885_v46 = vpop.f32.mrb[99].mxu1  ;;  %5471 = vmatprep.subr.bf16.mxu1 %v11610_v40  ;;  %v11646_v18 = vld [vmem:[#allocation13_spill] sm:$0xff]  ;;  %v8324_v15 = vld [vmem:[%s11399_s6 + $0x160] sm:$0xff]   ;;  %v8325_v53 = vld [vmem:[%s11399_s6 + $0x1f8] sm:$0xff]  }
 0x39e   : > { %v4981_v17 = vmax.f32 %v4606_v26, %v4933_v35  ;;  %v4935_v23 = vadd.f32 %v4885_v46, %v10575_v19  ;;  %5348 = vmatpush1.bf16.msra.mxu0 %v8304_v51  ;;  %v11648_v12 = vmax.f32 %v11646_v18, %v11647_v2  ;;  %v8307_v19 = vld [vmem:[%s11399_s6 + $0x168] sm:$0xff]   ;;  %v8326_v51 = vld [vmem:[%s11399_s6 + $0x1b0] sm:$0xff]   ;;  %v8327_v44 = vld [vmem:[%s11399_s6 + $0x200] sm:$0xff]  }
 0x39f   : > { %v5004_v50 = vmax.f32 %v11645_v45, %v4980_v22  ;;  %v4982_v55 = vmax.f32 %v4607_v7, %v4934_v6  ;;  %5349 = vmatprep.subr.bf16.mxu0 %v11610_v40  ;;  %v8328_v26 = vld [vmem:[%s11399_s6 + $0x1b8] sm:$0xff]   ;;  %v8329_v4 = vld [vmem:[%s11399_s6 + $0x208] sm:$0xff]   ;;  %v8334_v7 = vld [vmem:[%s11399_s6 + $0x1d0] sm:$0xff]   ;;  %v6113_v45 = vrot.slane %v10974_v8, 4 }
 0x3a0   : > { %v5005_v3 = vmax.f32 %v11648_v12, %v4981_v17  ;;  %v4983_v39 = vmax.f32 %v4608_v33, %v4935_v23  ;;  %5472 = vmatpush1.bf16.msra.mxu1 %v8305_v31  ;;  %v8332_v32 = vld [vmem:[%s11399_s6 + $0x1c8] sm:$0xff]   ;;  %v8333_v35 = vld [vmem:[%s11399_s6 + $0x218] sm:$0xff]   ;;  %v8335_v34 = vld [vmem:[%s11399_s6 + $0x220] sm:$0xff]  }
 0x3a1   : > { %v5006_v9 = vmax.f32 %v11651_v58, %v4982_v55  ;;  %5694 = vmatprep.subr.bf16.mxu1 %v11610_v40  ;;  %v8336_v54 = vld [vmem:[%s11399_s6 + $0x1d8] sm:$0xff]   ;;  %v8337_v31 = vld [vmem:[%s11399_s6 + $0x228] sm:$0xff]   ;;  %v8338_v22 = vld [vmem:[%s11399_s6 + $0x1e0] sm:$0xff]  }
 0x3a2   : > { %v5007_v25 = vmax.f32 %v11654_v41, %v4983_v39  ;;  %5350 = vmatpush1.bf16.msra.mxu0 %v8306_v59  ;;  %v8339_v6 = vld [vmem:[%s11399_s6 + $0x230] sm:$0xff]   ;;  %v8340_v33 = vld [vmem:[%s11399_s6 + $0x1e8] sm:$0xff]   ;;  %v8341_v46 = vld [vmem:[%s11399_s6 + $0x238] sm:$0xff]   ;;  %v5873_v59 = vrot.slane %v10929_v29, 4 }
 0x3a3   : > { %v11010_v57 = vpack.c.bf16 %v5006_v9, %v5004_v50  ;;  %5488 = vmatmul.mubr.bf16.vlgmr.msra.gmra.mrb[104].mxu1 %v5395_v10  ;;  %5572 = vmatprep.subr.bf16.mxu0 %v11610_v40  ;;  %v8342_v17 = vld [vmem:[%s11399_s6 + $0x1f0] sm:$0xff]   ;;  %v8343_v23 = vld [vmem:[%s11399_s6 + $0x288] sm:$0xff]   ;;  %v8344_v50 = vld [vmem:[%s11399_s6 + $0x240] sm:$0xff]  }
 0x3a4   : > { %v11013_v28 = vpack.c.bf16 %v5007_v25, %v5005_v3  ;;  %5695 = vmatpush1.bf16.msra.mxu1 %v8307_v19  ;;  %7315 = vmatprep.mubr.msk.bf16.mxu1 %vm5116_vm3, %v5635_v16  ;;  %v8345_v55 = vld [vmem:[%s11399_s6 + $0x290] sm:$0xff]   ;;  %v8346_v18 = vld [vmem:[%s11399_s6 + $0x248] sm:$0xff]   ;;  %v8347_v2 = vld [vmem:[%s11399_s6 + $0x298] sm:$0xff]   ;;  %v6112_v25 = vrot.slane %v10969_v0, 4 }
 0x3a5   : > { %5366 = vmatmul.mubr.bf16.vlgmr.msra.gmra.mrb[100].mxu0 %v10849_v60  ;;  %5696 = vmatprep.subr.bf16.mxu1 %v11610_v40  ;;  %v8312_v60 = vld [vmem:[%s11399_s6 + $0x130] sm:$0xff]   ;;  %v8350_v12 = vld [vmem:[%s11399_s6 + $0x258] sm:$0xff]   ;;  %v8351_v3 = vld [vmem:[%s11399_s6 + $0x2a8] sm:$0xff]  }
 0x3a6   : > { %5573 = vmatpush1.bf16.msra.mxu0 %v8308_v1  ;;  %7287 = vmatprep.mubr.msk.bf16.mxu0 %vm5116_vm3, %v10894_v62  ;;  %v8313_v62 = vld [vmem:[%s11399_s6 + $0x180] sm:$0xff]   ;;  %v8353_v19 = vld [vmem:[%s11399_s6 + $0x2b0] sm:$0xff]   ;;  %v8358_v10 = vld [vmem:[%s11399_s6 + $0x278] sm:$0xff]   ;;  %v6352_v16 = vrot.slane %v11013_v28, 4 }
 0x3a7   : > { %5574 = vmatprep.subr.bf16.mxu0 %v11610_v40  ;;  %v8352_v39 = vld [vmem:[%s11399_s6 + $0x260] sm:$0xff]   ;;  %v8356_v58 = vld [vmem:[%s11399_s6 + $0x270] sm:$0xff]   ;;  %v8359_v20 = vld [vmem:[%s11399_s6 + $0x2c8] sm:$0xff]  }
 0x3a8   : > { %5697 = vmatpush1.bf16.msra.mxu1 %v8309_v47  ;;  %v8357_v9 = vld [vmem:[%s11399_s6 + $0x2c0] sm:$0xff]   ;;  %v8361_v41 = vld [vmem:[%s11399_s6 + $0x318] sm:$0xff]   ;;  %v8362_v1 = vld [vmem:[%s11399_s6 + $0x2d0] sm:$0xff]  }
 0x3a9   : > { %5698 = vmatprep.subr.bf16.mxu1 %v11610_v40  ;;  %v8363_v47 = vld [vmem:[%s11399_s6 + $0x320] sm:$0xff]  }
 0x3aa   : > { %5575 = vmatpush1.bf16.msra.mxu0 %v8310_v48  ;;  %v8364_v48 = vld [vmem:[%s11399_s6 + $0x2d8] sm:$0xff]  }
 0x3ab   : > { %5576 = vmatprep.subr.bf16.mxu0 %v11610_v40 }
 0x3ac   : > { %5699 = vmatpush1.bf16.msra.mxu1 %v8311_v27  ;;  %v8365_v27 = vld [vmem:[%s11399_s6 + $0x328] sm:$0xff]  }
 0x3ad   : > { %5700 = vmatprep.subr.bf16.mxu1 %v11610_v40 }
 0x3ae   : > { %5577 = vmatpush1.bf16.msra.mxu0 %v8312_v60  ;;  %v8368_v60 = vld [vmem:[%s11399_s6 + $0x2e8] sm:$0xff]  }
 0x3af   : > { %5578 = vmatprep.subr.bf16.mxu0 %v11610_v40 }
 0x3b0   : > { %5701 = vmatpush1.bf16.msra.mxu1 %v8313_v62  ;;  %v8369_v62 = vld [vmem:[%s11399_s6 + $0x338] sm:$0xff]  }
 0x3b1   : > { %5702 = vmatprep.subr.bf16.mxu1 %v11610_v40 }
 0x3b2   : > { %5579 = vmatpush1.bf16.msra.mxu0 %v8314_v43  ;;  %v8370_v43 = vld [vmem:[%s11399_s6 + $0x2f0] sm:$0xff]  }
 0x3b3   : > { %5580 = vmatprep.subr.bf16.mxu0 %v11610_v40 }
 0x3b4   : > { %5703 = vmatpush1.bf16.msra.mxu1 %v8315_v13  ;;  %v8371_v13 = vld [vmem:[%s11399_s6 + $0x340] sm:$0xff]  }
 0x3b5   : > { %5704 = vmatprep.subr.bf16.mxu1 %v11610_v40 }
 0x3b6   : > { %5581 = vmatpush1.bf16.msra.mxu0 %v8316_v24  ;;  %v8372_v24 = vld [vmem:[%s11399_s6 + $0x2f8] sm:$0xff]  }
 0x3b7   : > { %5582 = vmatprep.subr.bf16.mxu0 %v11610_v40 }
 0x3b8   : > { %5705 = vmatpush1.bf16.msra.mxu1 %v8317_v36  ;;  %v8373_v36 = vld [vmem:[%s11399_s6 + $0x348] sm:$0xff]  }
 0x3b9   : > { %5706 = vmatprep.subr.bf16.mxu1 %v11610_v40 }
 0x3ba   : > { %5583 = vmatpush1.bf16.msra.mxu0 %v8318_v37  ;;  %v8374_v37 = vld [vmem:[%s11399_s6 + $0x300] sm:$0xff]  }
 0x3bb   : > { %5584 = vmatprep.subr.bf16.mxu0 %v11610_v40 }
 0x3bc   : > { %5707 = vmatpush1.bf16.msra.mxu1 %v8319_v30  ;;  %v8375_v30 = vld [vmem:[%s11399_s6 + $0x350] sm:$0xff]  }
 0x3bd   : > { %5708 = vmatprep.subr.bf16.mxu1 %v11610_v40 }
 0x3be   : > { %5585 = vmatpush1.bf16.msra.mxu0 %v8320_v49  ;;  %v8376_v49 = vld [vmem:[%s11399_s6 + $0x308] sm:$0xff]  }
 0x3bf   : > { %5586 = vmatprep.subr.bf16.mxu0 %v11610_v40 }
 0x3c0   : > { %5709 = vmatpush1.bf16.msra.mxu1 %v8321_v38  ;;  %v8377_v38 = vld [vmem:[%s11399_s6 + $0x358] sm:$0xff]  }
 0x3c1   : > { %5710 = vmatprep.subr.bf16.mxu1 %v11610_v40 }
 0x3c2   : > { %5587 = vmatpush1.bf16.msra.mxu0 %v8322_v61  ;;  %v8378_v61 = vld [vmem:[%s11399_s6 + $0x310] sm:$0xff]  }
 0x3c3   : > { %5588 = vmatprep.subr.bf16.mxu0 %v11610_v40 }
 0x3c4   : > { %5711 = vmatpush1.bf16.msra.mxu1 %v8323_v56  ;;  %v6351_v56 = vrot.slane %v11010_v57, 4 }
 0x3c5   : > { %5933 = vmatprep.subr.bf16.mxu1 %v11610_v40 }
 0x3c6   : > { %5589 = vmatpush1.bf16.msra.mxu0 %v8324_v15 }
 0x3c7   : > { %5727 = vmatmul.mubr.bf16.vlgmr.msra.gmra.mrb[108].mxu1 %v5634_v11  ;;  %5811 = vmatprep.subr.bf16.mxu0 %v11610_v40 }
 0x3c8   : > { %5934 = vmatpush1.bf16.msra.mxu1 %v8325_v53  ;;  %7371 = vmatprep.mubr.msk.bf16.mxu1 %vm5116_vm3, %v5874_v52 }
 0x3c9   : > { %5605 = vmatmul.mubr.bf16.vlgmr.msra.gmra.mrb[104].mxu0 %v10889_v5  ;;  %5935 = vmatprep.subr.bf16.mxu1 %v11610_v40  ;;  %v8330_v5 = vld [vmem:[%s11399_s6 + $0x1c0] sm:$0xff]  }
 0x3ca   : > { %5812 = vmatpush1.bf16.msra.mxu0 %v8326_v51  ;;  %7343 = vmatprep.mubr.msk.bf16.mxu0 %vm5116_vm3, %v10934_v42  ;;  %v8331_v42 = vld [vmem:[%s11399_s6 + $0x210] sm:$0xff]  }
 0x3cb   : > { %5813 = vmatprep.subr.bf16.mxu0 %v11610_v40 }
 0x3cc   : > { %5936 = vmatpush1.bf16.msra.mxu1 %v8327_v44 }
 0x3cd   : > { %5937 = vmatprep.subr.bf16.mxu1 %v11610_v40 }
 0x3ce   : > { %5814 = vmatpush1.bf16.msra.mxu0 %v8328_v26 }
 0x3cf   : > { %5815 = vmatprep.subr.bf16.mxu0 %v11610_v40 }
 0x3d0   : > { %5938 = vmatpush1.bf16.msra.mxu1 %v8329_v4 }
 0x3d1   : > { %5939 = vmatprep.subr.bf16.mxu1 %v11610_v40 }
 0x3d2   : > { %5816 = vmatpush1.bf16.msra.mxu0 %v8330_v5 }
 0x3d3   : > { %5817 = vmatprep.subr.bf16.mxu0 %v11610_v40 }
 0x3d4   : > { %5940 = vmatpush1.bf16.msra.mxu1 %v8331_v42  ;;  %v6462_v42 = vld [vmem:[%s11401_s8 + $0x8] sm:$0xff] }
 0x3d5   : > { %5941 = vmatprep.subr.bf16.mxu1 %v11610_v40 }
 0x3d6   : > { %5818 = vmatpush1.bf16.msra.mxu0 %v8332_v32  ;;  %v8495_v32 = vmov 0.0|0.0  }
 0x3d7   : > { %5819 = vmatprep.subr.bf16.mxu0 %v11610_v40 }
 0x3d8   : > { %5942 = vmatpush1.bf16.msra.mxu1 %v8333_v35 }
 0x3d9   : > { %5943 = vmatprep.subr.bf16.mxu1 %v11610_v40 }
 0x3da   : > { %5820 = vmatpush1.bf16.msra.mxu0 %v8334_v7  ;;  %v6464_v7 = vld [vmem:[%s11401_s8 + $0x18] sm:$0xff] }
 0x3db   : > { %5821 = vmatprep.subr.bf16.mxu0 %v11610_v40 }
 0x3dc   : > { %5944 = vmatpush1.bf16.msra.mxu1 %v8335_v34 }
 0x3dd   : > { %5945 = vmatprep.subr.bf16.mxu1 %v11610_v40 }
 0x3de   : > { %5822 = vmatpush1.bf16.msra.mxu0 %v8336_v54  ;;  %v6465_v54 = vld [vmem:[%s11401_s8 + $0x20] sm:$0xff] }
 0x3df   : > { %5823 = vmatprep.subr.bf16.mxu0 %v11610_v40 }
 0x3e0   : > { %5946 = vmatpush1.bf16.msra.mxu1 %v8337_v31  ;;  %v6466_v31 = vld [vmem:[%s11401_s8 + $0x28] sm:$0xff] }
 0x3e1   : > { %5947 = vmatprep.subr.bf16.mxu1 %v11610_v40 }
 0x3e2   : > { %5824 = vmatpush1.bf16.msra.mxu0 %v8338_v22  ;;  %v7548_v22 = vpack.c.bf16 %v6466_v31, %v6465_v54 }
 0x3e3   : > { %5825 = vmatprep.subr.bf16.mxu0 %v11610_v40 }
 0x3e4   : > { %5948 = vmatpush1.bf16.msra.mxu1 %v8339_v6  ;;  %v6467_v6 = vld [vmem:[%s11401_s8 + $0x30] sm:$0xff] }
 0x3e5   : > { %5949 = vmatprep.subr.bf16.mxu1 %v11610_v40 }
 0x3e6   : > { %5826 = vmatpush1.bf16.msra.mxu0 %v8340_v33  ;;  %v6468_v33 = vld [vmem:[%s11401_s8 + $0x38] sm:$0xff] }
 0x3e7   : > { %5827 = vmatprep.subr.bf16.mxu0 %v11610_v40 }
 0x3e8   : > { %5950 = vmatpush1.bf16.msra.mxu1 %v8341_v46  ;;  %v7551_v46 = vpack.c.bf16 %v6468_v33, %v6467_v6 }
 0x3e9   : > { %6172 = vmatprep.subr.bf16.mxu1 %v11610_v40 }
 0x3ea   : > { %5828 = vmatpush1.bf16.msra.mxu0 %v8342_v17  ;;  %v6469_v17 = vld [vmem:[%s11401_s8 + $0x40] sm:$0xff] }
 0x3eb   : > { %5966 = vmatmul.mubr.bf16.vlgmr.msra.gmra.mrb[112].mxu1 %v5873_v59  ;;  %6050 = vmatprep.subr.bf16.mxu0 %v11610_v40 }
 0x3ec   : > { %6173 = vmatpush1.bf16.msra.mxu1 %v8343_v23  ;;  %7427 = vmatprep.mubr.msk.bf16.mxu1 %vm5116_vm3, %v6113_v45  ;;  %v6470_v23 = vld [vmem:[%s11401_s8 + $0x48] sm:$0xff] }
 0x3ed   : > { %5844 = vmatmul.mubr.bf16.vlgmr.msra.gmra.mrb[108].mxu0 %v10929_v29  ;;  %6174 = vmatprep.subr.bf16.mxu1 %v11610_v40  ;;  %v8348_v29 = vld [vmem:[%s11399_s6 + $0x250] sm:$0xff]   ;;  %v7554_v45 = vpack.c.bf16 %v6470_v23, %v6469_v17 }
 0x3ee   : > { %6051 = vmatpush1.bf16.msra.mxu0 %v8344_v50  ;;  %7399 = vmatprep.mubr.msk.bf16.mxu0 %vm5116_vm3, %v10974_v8  ;;  %v8349_v8 = vld [vmem:[%s11399_s6 + $0x2a0] sm:$0xff]  }
 0x3ef   : > { %6052 = vmatprep.subr.bf16.mxu0 %v11610_v40 }
 0x3f0   : > { %6175 = vmatpush1.bf16.msra.mxu1 %v8345_v55 }
 0x3f1   : > { %6176 = vmatprep.subr.bf16.mxu1 %v11610_v40 }
 0x3f2   : > { %6053 = vmatpush1.bf16.msra.mxu0 %v8346_v18 }
 0x3f3   : > { %6054 = vmatprep.subr.bf16.mxu0 %v11610_v40 }
 0x3f4   : > { %6177 = vmatpush1.bf16.msra.mxu1 %v8347_v2 }
 0x3f5   : > { %6178 = vmatprep.subr.bf16.mxu1 %v11610_v40 }
 0x3f6   : > { %6055 = vmatpush1.bf16.msra.mxu0 %v8348_v29 }
 0x3f7   : > { %6056 = vmatprep.subr.bf16.mxu0 %v11610_v40 }
 0x3f8   : > { %6179 = vmatpush1.bf16.msra.mxu1 %v8349_v8 }
 0x3f9   : > { %6180 = vmatprep.subr.bf16.mxu1 %v11610_v40 }
 0x3fa   : > { %6057 = vmatpush1.bf16.msra.mxu0 %v8350_v12 }
 0x3fb   : > { %6058 = vmatprep.subr.bf16.mxu0 %v11610_v40 }
 0x3fc   : > { %6181 = vmatpush1.bf16.msra.mxu1 %v8351_v3 }
 0x3fd   : > { %6182 = vmatprep.subr.bf16.mxu1 %v11610_v40 }
 0x3fe   : > { %6059 = vmatpush1.bf16.msra.mxu0 %v8352_v39 }
 0x3ff   : > { %6060 = vmatprep.subr.bf16.mxu0 %v11610_v40 }
 0x400   : > { %6183 = vmatpush1.bf16.msra.mxu1 %v8353_v19  ;;  %v6471_v19 = vld [vmem:[%s11401_s8 + $0x50] sm:$0xff] }
 0x401   : > { %6184 = vmatprep.subr.bf16.mxu1 %v11610_v40 }
 0x402   : > { %6061 = vmatpush1.bf16.msra.mxu0 %v8354_v14  ;;  %v6472_v14 = vld [vmem:[%s11401_s8 + $0x58] sm:$0xff] }
 0x403   : > { %6062 = vmatprep.subr.bf16.mxu0 %v11610_v40 }
 0x404   : > { %6185 = vmatpush1.bf16.msra.mxu1 %v8355_v63  ;;  %v7557_v63 = vpack.c.bf16 %v6472_v14, %v6471_v19 }
 0x405   : > { %6186 = vmatprep.subr.bf16.mxu1 %v11610_v40 }
 0x406   : > { %6063 = vmatpush1.bf16.msra.mxu0 %v8356_v58  ;;  %v6473_v58 = vld [vmem:[%s11401_s8 + $0x60] sm:$0xff] }
 0x407   : > { %6064 = vmatprep.subr.bf16.mxu0 %v11610_v40 }
 0x408   : > { %6187 = vmatpush1.bf16.msra.mxu1 %v8357_v9  ;;  %v6474_v9 = vld [vmem:[%s11401_s8 + $0x68] sm:$0xff] }
 0x409   : > { %6188 = vmatprep.subr.bf16.mxu1 %v11610_v40 }
 0x40a   : > { %6065 = vmatpush1.bf16.msra.mxu0 %v8358_v10  ;;  %v7560_v10 = vpack.c.bf16 %v6474_v9, %v6473_v58 }
 0x40b   : > { %6066 = vmatprep.subr.bf16.mxu0 %v11610_v40 }
 0x40c   : > { %6189 = vmatpush1.bf16.msra.mxu1 %v8359_v20  ;;  %v6475_v20 = vld [vmem:[%s11401_s8 + $0x70] sm:$0xff] }
 0x40d   : > { %6411 = vmatprep.subr.bf16.mxu1 %v11610_v40 }
 0x40e   : > { %6067 = vmatpush1.bf16.msra.mxu0 %v8360_v21  ;;  %v6476_v21 = vld [vmem:[%s11401_s8 + $0x78] sm:$0xff] }
 0x40f   : > { %6205 = vmatmul.mubr.bf16.vlgmr.msra.gmra.mrb[116].mxu1 %v6112_v25  ;;  %6289 = vmatprep.subr.bf16.mxu0 %v11610_v40  ;;  %v8497_v25 = vmov 0.0  }
 0x410   : > { %6412 = vmatpush1.bf16.msra.mxu1 %v8361_v41  ;;  %7483 = vmatprep.mubr.msk.bf16.mxu1 %vm5116_vm3, %v6352_v16  ;;  %v7563_v41 = vpack.c.bf16 %v6476_v21, %v6475_v20 }
 0x411   : > { %6083 = vmatmul.mubr.bf16.vlgmr.msra.gmra.mrb[112].mxu0 %v10969_v0  ;;  %6413 = vmatprep.subr.bf16.mxu1 %v11610_v40  ;;  %v8366_v0 = vld [vmem:[%s11399_s6 + $0x2e0] sm:$0xff]  }
 0x412   : > { %6290 = vmatpush1.bf16.msra.mxu0 %v8362_v1  ;;  %7455 = vmatprep.mubr.msk.bf16.mxu0 %vm5116_vm3, %v11013_v28  ;;  %v8367_v28 = vld [vmem:[%s11399_s6 + $0x330] sm:$0xff]  }
 0x413   : > { %6291 = vmatprep.subr.bf16.mxu0 %v11610_v40 }
 0x414   : > { %6414 = vmatpush1.bf16.msra.mxu1 %v8363_v47 }
 0x415   : > { %6415 = vmatprep.subr.bf16.mxu1 %v11610_v40 }
 0x416   : > { %6292 = vmatpush1.bf16.msra.mxu0 %v8364_v48 }
 0x417   : > { %6293 = vmatprep.subr.bf16.mxu0 %v11610_v40 }
 0x418   : > { %6416 = vmatpush1.bf16.msra.mxu1 %v8365_v27 }
 0x419   : > { %6417 = vmatprep.subr.bf16.mxu1 %v11610_v40 }
 0x41a   : > { %6294 = vmatpush1.bf16.msra.mxu0 %v8366_v0 }
 0x41b   : > { %6295 = vmatprep.subr.bf16.mxu0 %v11610_v40 }
 0x41c   : > { %6418 = vmatpush1.bf16.msra.mxu1 %v8367_v28 }
 0x41d   : > { %6419 = vmatprep.subr.bf16.mxu1 %v11610_v40 }
 0x41e   : > { %6296 = vmatpush1.bf16.msra.mxu0 %v8368_v60 }
 0x41f   : > { %6297 = vmatprep.subr.bf16.mxu0 %v11610_v40 }
 0x420   : > { %6420 = vmatpush1.bf16.msra.mxu1 %v8369_v62 }
 0x421   : > { %6421 = vmatprep.subr.bf16.mxu1 %v11610_v40 }
 0x422   : > { %6298 = vmatpush1.bf16.msra.mxu0 %v8370_v43 }
 0x423   : > { %6299 = vmatprep.subr.bf16.mxu0 %v11610_v40 }
 0x424   : > { %6422 = vmatpush1.bf16.msra.mxu1 %v8371_v13 }
 0x425   : > { %6423 = vmatprep.subr.bf16.mxu1 %v11610_v40 }
 0x426   : > { %6300 = vmatpush1.bf16.msra.mxu0 %v8372_v24 }
 0x427   : > { %6301 = vmatprep.subr.bf16.mxu0 %v11610_v40 }
 0x428   : > { %6424 = vmatpush1.bf16.msra.mxu1 %v8373_v36 }
 0x429   : > { %6425 = vmatprep.subr.bf16.mxu1 %v11610_v40 }
 0x42a   : > { %6302 = vmatpush1.bf16.msra.mxu0 %v8374_v37 }
 0x42b   : > { %6303 = vmatprep.subr.bf16.mxu0 %v11610_v40 }
 0x42c   : > { %6426 = vmatpush1.bf16.msra.mxu1 %v8375_v30 }
 0x42d   : > { %6427 = vmatprep.subr.bf16.mxu1 %v11610_v40 }
 0x42e   : > { %6304 = vmatpush1.bf16.msra.mxu0 %v8376_v49 }
 0x42f   : > { %6305 = vmatprep.subr.bf16.mxu0 %v11610_v40  ;;  %v6461_v40 = vld [vmem:[%s11401_s8] sm:$0xff] }
 0x430   : > { %6428 = vmatpush1.bf16.msra.mxu1 %v8377_v38  ;;  %v7542_v35 = vpack.c.bf16 %v6462_v42, %v6461_v40 }
 0x432   : > { %6306 = vmatpush1.bf16.msra.mxu0 %v8378_v61 }
 0x433   : > { %6444 = vmatmul.mubr.bf16.vlgmr.msra.gmra.mrb[120].mxu1 %v6351_v56  ;;  %7541 = vmatprep.subr.bf16.mxu0 %v8495_v32 }
 0x435   : > { %6322 = vmatmul.mubr.bf16.vlgmr.msra.gmra.mrb[116].mxu0 %v11010_v57  ;;  %v6463_v57 = vld [vmem:[%s11401_s8 + $0x10] sm:$0xff] }
 0x436   : > { %7543 = vmatpush3.bf16.msra.mxu0 %v7542_v35  ;;  %v7545_v34 = vpack.c.bf16 %v6464_v7, %v6463_v57  ;;  %7538 = vmatprep.mubr.msk.f32.mxu0 %vm8496_vm4, %v8497_v25 }
 0x437   : > { %7544 = vmatprep.subr.bf16.mxu0 %v8495_v32 }
 0x43a   : > { %7546 = vmatpush3.bf16.msra.mxu0 %v7545_v34 }
 0x43b   : > { %7547 = vmatprep.subr.bf16.mxu0 %v8495_v32 }
 0x43e   : > { %7549 = vmatpush3.bf16.msra.mxu0 %v7548_v22  ;;  %v7484_v22 = vld [vmem:[%s11400_s7] ss:$0 sm:$0xff] }
 0x43f   : > { %7550 = vmatprep.subr.bf16.mxu0 %v8495_v32 }
 0x442   : > { %7552 = vmatpush3.bf16.msra.mxu0 %v7551_v46 }
 0x443   : > { %7553 = vmatprep.subr.bf16.mxu0 %v8495_v32 }
 0x446   : > { %7555 = vmatpush3.bf16.msra.mxu0 %v7554_v45 }
 0x447   : > { %7556 = vmatprep.subr.bf16.mxu0 %v8495_v32 }
 0x44a   : > { %7558 = vmatpush3.bf16.msra.mxu0 %v7557_v63 }
 0x44b   : > { %7559 = vmatprep.subr.bf16.mxu0 %v8495_v32 }
 0x44e   : > { %7561 = vmatpush3.bf16.msra.mxu0 %v7560_v10 }
 0x44f   : > { %7562 = vmatprep.subr.bf16.mxu0 %v8495_v32 }
 0x452   : > { %v5251_v15 = vpop.f32.mrb[100].mxu1  ;;  %7564 = vmatpush3.bf16.msra.mxu0 %v7563_v41 }
 0x453   : > { %v5253_v53 = vpop.f32.mrb[101].mxu1 }
 0x454   : > { %v5154_v11 = vpop.f32.mrb[96].mxu0  ;;  %v5254_v52 = vpop.f32.mrb[102].mxu1 }
 0x455   : > { %v5252_v51 = vadd.f32 %v5251_v15, %v5154_v11  ;;  %v5156_v44 = vpop.f32.mrb[97].mxu0  ;;  %v5255_v26 = vpop.f32.mrb[103].mxu1 }
 0x456   : > { %v5157_v4 = vpop.f32.mrb[98].mxu0 }
 0x457   : > { %v5158_v5 = vpop.f32.mrb[99].mxu0 }
 0x476   : > { %v5489_v59 = vpop.f32.mrb[104].mxu1 }
 0x477   : > { %v5491_v50 = vpop.f32.mrb[105].mxu1 }
 0x478   : > { %v5367_v55 = vpop.f32.mrb[100].mxu0  ;;  %v5492_v18 = vpop.f32.mrb[106].mxu1 }
 0x479   : > { %v5373_v2 = vadd.f32 %v5367_v55, %v5252_v51  ;;  %v5369_v29 = vpop.f32.mrb[101].mxu0  ;;  %v5493_v8 = vpop.f32.mrb[107].mxu1 }
 0x47a   : > { %v5370_v12 = vpop.f32.mrb[102].mxu0 }
 0x47b   : > { %v5371_v3 = vpop.f32.mrb[103].mxu0  ;;  %v5495_v39 = vadd.f32 %v5489_v59, %v5373_v2  ;;  %v7485_v59 = vld [vmem:[%s11402_s9] ss:$0 sm:$0xff] }
 0x49a   : > { %v5728_v16 = vpop.f32.mrb[108].mxu1 }
 0x49b   : > { %v5730_v1 = vpop.f32.mrb[109].mxu1 }
 0x49c   : > { %v5606_v47 = vpop.f32.mrb[104].mxu0  ;;  %v5731_v48 = vpop.f32.mrb[110].mxu1 }
 0x49d   : > { %v5612_v27 = vadd.f32 %v5606_v47, %v5495_v39  ;;  %v5608_v0 = vpop.f32.mrb[105].mxu0  ;;  %v5732_v28 = vpop.f32.mrb[111].mxu1 }
 0x49e   : > { %v5609_v60 = vpop.f32.mrb[106].mxu0 }
 0x49f   : > { %v5610_v62 = vpop.f32.mrb[107].mxu0  ;;  %v5734_v43 = vadd.f32 %v5728_v16, %v5612_v27 }
 0x4be   : > { %v5967_v13 = vpop.f32.mrb[112].mxu1 }
 0x4bf   : > { %v5969_v24 = vpop.f32.mrb[113].mxu1 }
 0x4c0   : > { %v5845_v36 = vpop.f32.mrb[108].mxu0  ;;  %v5970_v37 = vpop.f32.mrb[114].mxu1 }
 0x4c1   : > { %v5851_v30 = vadd.f32 %v5845_v36, %v5734_v43  ;;  %v5847_v49 = vpop.f32.mrb[109].mxu0  ;;  %v5971_v38 = vpop.f32.mrb[115].mxu1 }
 0x4c2   : > { %v5848_v61 = vpop.f32.mrb[110].mxu0 }
 0x4c3   : > { %v5849_v56 = vpop.f32.mrb[111].mxu0  ;;  %v5973_v15 = vadd.f32 %v5967_v13, %v5851_v30 }
 0x4e2   : > { %v6206_v53 = vpop.f32.mrb[116].mxu1 }
 0x4e3   : > { %v6208_v11 = vpop.f32.mrb[117].mxu1 }
 0x4e4   : > { %v6084_v52 = vpop.f32.mrb[112].mxu0  ;;  %v6209_v51 = vpop.f32.mrb[118].mxu1 }
 0x4e5   : > { %v6090_v44 = vadd.f32 %v6084_v52, %v5973_v15  ;;  %v6086_v26 = vpop.f32.mrb[113].mxu0  ;;  %v6210_v4 = vpop.f32.mrb[119].mxu1 }
 0x4e6   : > { %v6087_v5 = vpop.f32.mrb[114].mxu0 }
 0x4e7   : > { %v6088_v40 = vpop.f32.mrb[115].mxu0  ;;  %v6212_v42 = vadd.f32 %v6206_v53, %v6090_v44 }
 0x506   : > { %v6445_v57 = vpop.f32.mrb[120].mxu1 }
 0x507   : > { %v6447_v32 = vpop.f32.mrb[121].mxu1 }
 0x508   : > { %v6323_v35 = vpop.f32.mrb[116].mxu0  ;;  %v6448_v7 = vpop.f32.mrb[122].mxu1 }
 0x509   : > { %v6329_v34 = vadd.f32 %v6323_v35, %v6212_v42  ;;  %v6325_v54 = vpop.f32.mrb[117].mxu0  ;;  %v6449_v31 = vpop.f32.mrb[123].mxu1 }
 0x50a   : > { %v6326_v6 = vpop.f32.mrb[118].mxu0 }
 0x50b   : > { %v6451_v33 = vadd.f32 %v6445_v57, %v6329_v34  ;;  %v6327_v46 = vpop.f32.mrb[119].mxu0 }
 0x50d   : > { %v6459_v17 = vadd.f32 %v7484_v22, %v6451_v33 }
 0x50f   : > { %v6460_v23 = vmax.f32 %v6459_v17, 0.0 }
 0x511   : > { %7539 = vmatmul.mubr.f32.vlgmr.msra.gmra.mrb[120].mxu0 %v6460_v23 }
 0x5e4   : > { %v6550_v45 = vpop.f32.mrb[120].mxu0 }
 0x5e5   : > { %v6551_v50 = vadd.f32 %v7485_v59, %v6550_v45  ;;  %v7540_v55 = vpop.f32.mrb[121].mxu0 }
 0x5e7   : > { %v6555_v18 = vsel %vm6554_vm5, %v6551_v50, -inf }
 0x5e8   : > { %6556 = vmax.xlane.f32.xlu0 %v6555_v18 }
 0x675   : > { %v6557_v2 = vpop.xlane.xlu0 %6556 }
 0x676   : > { %v6558_v29 = vsub.f32 %v6551_v50, %v6557_v2 }
 0x678   : > { %v6559_v8 = vmul.f32 1.442695, %v6558_v29 }
 0x67a   : > { %8379 = vpow2.f32 %v6559_v8 }
 0x684   : > { %v8380_v12 = vpop.eup %8379 }
 0x685   : > { %v6561_v3 = vsel %vm6554_vm5, %v8380_v12, 0.0 }
 0x686   : > { %6562 = vadd.xlane.f32.xlu0 %v6561_v3 }
 0x713   : > { %v6563_v39 = vpop.xlane.xlu0 %6562 }
 0x714   : > { %8381 = vlog2.f32 %v6563_v39 }
 0x71e   : > { %v8382_v19 = vpop.eup %8381 }
 0x71f   : > { %v6565_v14 = vmul.f32 0.6931472, %v8382_v19 }
 0x721   : > { %v6566_v63 = vsub.f32 %v6558_v29, %v6565_v14 }
 0x723   : > { %6567 = vst.msk [vmem:[%s684_s18] sm:$0xff] %vm6554_vm5, %v6566_v63 }
 0x724 PF: > { %p17_p9 = scmp.ge.s32.totalorder %s8570_s17, 4   ;;  %s11655_s13 = smov %s8488_s14 }
 0x725   : > { %s11656_s14 = smov %s8579_s20  ;;  %s11657_s15 = smov %s8570_s17 }
 0x726   :  { %19 = sbr.rel (!%p17_p9) target bundleno = 2 (0x2), region = 158 }

</bundles_post_ra>
